<compile_context>
chip_gen: v7x
topology: tpu7x:2x2x1
jax: 0.10.0
libtpu: 0.0.40
codegen_flags: <defaults>
</compile_context>

<pallas_src>
import functools

import jax
import jax.numpy as jnp
from jax.experimental import pallas as pl
from jax.experimental.pallas import tpu as pltpu


def _fflayer_kernel(x_ref, w_ref, b_ref, o_ref, *, tk):
    """grid = (N//tn parallel, K//tk reduction).

    Accumulates x @ W directly into the VMEM-resident (B, tn) output block.
    The bias seeds the accumulator on the first reduction step; tanh is
    applied on the last step.
    """
    k = pl.program_id(1)

    @pl.when(k == 0)
    def _():
        # Fold the bias into the accumulator init (saves a VPU add later).
        o_ref[...] = jnp.broadcast_to(b_ref[...], o_ref.shape).astype(
            jnp.float32
        )

    start = pl.multiple_of(k * tk, tk)
    x_blk = x_ref[:, pl.ds(start, tk)].astype(w_ref.dtype)
    o_ref[...] += jnp.dot(x_blk, w_ref[...], preferred_element_type=jnp.float32)

    @pl.when(k == pl.num_programs(1) - 1)
    def _():
        o_ref[...] = jnp.tanh(o_ref[...])


@functools.partial(jax.jit, static_argnames=("tk", "tn"))
def image_embedding_fflayer(x, w, b, *, tk=2048, tn=512):
    """tanh(x @ w + b): N split across a parallel grid axis, K tiled reduction.

    x: (B, K) float32, w: (K, N) float32 or bfloat16, b: (N,) -> (B, N) float32
    """
    B, K = x.shape
    K2, N = w.shape
    assert K == K2, (K, K2)
    assert K % tk == 0, (K, tk)
    assert N % tn == 0, (N, tn)
    b2d = b.reshape(1, N).astype(jnp.float32)

    kernel = functools.partial(_fflayer_kernel, tk=tk)

    flops = 2 * B * K * N
    bytes_accessed = (
        x.size * x.dtype.itemsize
        + w.size * w.dtype.itemsize
        + b2d.size * 4
        + B * N * 4
    )

    return pl.pallas_call(
        kernel,
        out_shape=jax.ShapeDtypeStruct((B, N), jnp.float32),
        grid_spec=pltpu.PrefetchScalarGridSpec(
            num_scalar_prefetch=0,
            grid=(N // tn, K // tk),  # reduction axis last
            in_specs=[
                pl.BlockSpec((B, K), lambda j, k: (0, 0)),     # x: fully resident
                pl.BlockSpec((tk, tn), lambda j, k: (k, j)),   # W tile (4 MiB)
                pl.BlockSpec((1, tn), lambda j, k: (0, j)),    # bias tile
            ],
            out_specs=pl.BlockSpec((B, tn), lambda j, k: (0, j)),
        ),
        compiler_params=pltpu.CompilerParams(
            dimension_semantics=("parallel", "arbitrary"),
        ),
        cost_estimate=pl.CostEstimate(
            flops=flops,
            transcendentals=B * N,
            bytes_accessed=bytes_accessed,
        ),
    )(x, w, b2d)


def _reference(x, w, b):
    return jnp.tanh(x @ w + b)


if __name__ == "__main__":
    # Shapes implied by the module: Linear(4096, output_size=1024) in
    # train/val mode (input is the (B, 4096) VGG feature vector).
    B, K, N = 2, 4096, 1024

    key = jax.random.PRNGKey(0)
    kx, kw, kb = jax.random.split(key, 3)

    # Deterministic "parameters" matching nn.Linear's default init scale.
    bound = 1.0 / (K ** 0.5)
    w = jax.random.uniform(kw, (K, N), jnp.float32, minval=-bound, maxval=bound)
    b = jax.random.uniform(kb, (N,), jnp.float32, minval=-bound, maxval=bound)

    x = jax.random.normal(kx, (B, K), jnp.float32)

    ref = _reference(x, w, b)

    # f32 weight path (exact).
    out = jax.block_until_ready(image_embedding_fflayer(x, w, b))
    assert out.shape == (B, N), out.shape
    assert jnp.allclose(out, ref, atol=1e-5, rtol=1e-5), float(
        jnp.max(jnp.abs(out - ref))
    )

    # Optional bf16 weight path (halves HBM traffic; f32 accumulation).
    out_bf16 = jax.block_until_ready(
        image_embedding_fflayer(x, w.astype(jnp.bfloat16), b)
    )
    assert out_bf16.shape == (B, N), out_bf16.shape
    assert jnp.allclose(out_bf16, ref, atol=5e-2, rtol=5e-2), float(
        jnp.max(jnp.abs(out_bf16 - ref))
    )

    print("KERNEL_OK")
</pallas_src>

<mosaic_0001>
module attributes {stable_mosaic.version = 11 : i64} {
  func.func @_fflayer_kernel(%arg0: i32, %arg1: i32, %arg2: memref<2x4096xf32, #tpu.memory_space<vmem>>, %arg3: memref<2048x512xf32, #tpu.memory_space<vmem>>, %arg4: memref<1x512xf32, #tpu.memory_space<vmem>>, %arg5: memref<2x512xf32, #tpu.memory_space<vmem>>) attributes {dimension_semantics = [#tpu.dimension_semantics<parallel>, #tpu.dimension_semantics<arbitrary>], iteration_bounds = array<i64: 2, 2>, scalar_prefetch = 0 : i64, scratch_operands = 0 : i64, tpu.core_type = #tpu.core_type<tc>, window_params = [{pipeline_mode = #tpu.pipeline_mode<synchronous>, transform_indices = @transform_0, window_bounds = array<i64: 2, 4096>}, {transform_indices = @transform_1, window_bounds = array<i64: 2048, 512>}, {transform_indices = @transform_2, window_bounds = array<i64: 1, 512>}, {transform_indices = @transform_3, window_bounds = array<i64: 2, 512>}]} {
    %c0_i32 = arith.constant 0 : i32
    %0 = arith.cmpi eq, %arg1, %c0_i32 : i32
    %1 = arith.extui %0 : i1 to i32
    %c0_i32_0 = arith.constant 0 : i32
    %2 = arith.cmpi ne, %1, %c0_i32_0 : i32
    scf.if %2 {
      %c0_8 = arith.constant 0 : index
      %c0_9 = arith.constant 0 : index
      %15 = vector.load %arg4[%c0_8, %c0_9] : memref<1x512xf32, #tpu.memory_space<vmem>>, vector<1x512xf32>
      %16 = vector.shape_cast %15 : vector<1x512xf32> to vector<1x512xf32>
      %17 = vector.broadcast %16 : vector<1x512xf32> to vector<2x512xf32>
      %c0_10 = arith.constant 0 : index
      %c0_11 = arith.constant 0 : index
      %18 = vector.load %arg5[%c0_10, %c0_11] : memref<2x512xf32, #tpu.memory_space<vmem>>, vector<2x512xf32>
      tpu.vector_store %arg5[%c0_10, %c0_11], %17 {strides = array<i32>} : memref<2x512xf32, #tpu.memory_space<vmem>>, vector<2x512xf32>,
    } else {
    }
    %c2048_i32 = arith.constant 2048 : i32
    %3 = arith.muli %arg1, %c2048_i32 : i32
    %4 = tpu.assume_multiple %3, 2048 : i32
    %c0 = arith.constant 0 : index
    %5 = arith.index_cast %4 : i32 to index
    %6 = vector.load %arg2[%c0, %5] : memref<2x4096xf32, #tpu.memory_space<vmem>>, vector<2x2048xf32>
    %c0_1 = arith.constant 0 : index
    %c0_2 = arith.constant 0 : index
    %7 = vector.load %arg5[%c0_1, %c0_2] : memref<2x512xf32, #tpu.memory_space<vmem>>, vector<2x512xf32>
    %c0_3 = arith.constant 0 : index
    %c0_4 = arith.constant 0 : index
    %8 = vector.load %arg3[%c0_3, %c0_4] : memref<2048x512xf32, #tpu.memory_space<vmem>>, vector<2048x512xf32>
    %cst = arith.constant dense<0.000000e+00> : vector<2x512xf32>
    %9 = tpu.matmul %6, %8, %cst {dimension_numbers = #tpu.dot_dimension_numbers<[1], [0], [0], [1], [0, 0, 1, 1], [], []>} : vector<2x2048xf32>, vector<2048x512xf32>, vector<2x512xf32> -> vector<2x512xf32>
    %10 = arith.addf %7, %9 : vector<2x512xf32>
    %c0_5 = arith.constant 0 : index
    %c0_6 = arith.constant 0 : index
    %11 = vector.load %arg5[%c0_5, %c0_6] : memref<2x512xf32, #tpu.memory_space<vmem>>, vector<2x512xf32>
    tpu.vector_store %arg5[%c0_5, %c0_6], %10 {strides = array<i32>} : memref<2x512xf32, #tpu.memory_space<vmem>>, vector<2x512xf32>,
    %c1_i32 = arith.constant 1 : i32
    %12 = arith.cmpi eq, %arg1, %c1_i32 : i32
    %13 = arith.extui %12 : i1 to i32
    %c0_i32_7 = arith.constant 0 : i32
    %14 = arith.cmpi ne, %13, %c0_i32_7 : i32
    scf.if %14 {
      %c0_8 = arith.constant 0 : index
      %c0_9 = arith.constant 0 : index
      %15 = vector.load %arg5[%c0_8, %c0_9] : memref<2x512xf32, #tpu.memory_space<vmem>>, vector<2x512xf32>
      %16 = math.tanh %15 : vector<2x512xf32>
      %c0_10 = arith.constant 0 : index
      %c0_11 = arith.constant 0 : index
      %17 = vector.load %arg5[%c0_10, %c0_11] : memref<2x512xf32, #tpu.memory_space<vmem>>, vector<2x512xf32>
      tpu.vector_store %arg5[%c0_10, %c0_11], %16 {strides = array<i32>} : memref<2x512xf32, #tpu.memory_space<vmem>>, vector<2x512xf32>,
    } else {
    }
    return
  }
  func.func @transform_0(%arg0: i32, %arg1: i32) -> (i32, i32) {
    %c0_i32 = arith.constant 0 : i32
    %c0_i32_0 = arith.constant 0 : i32
    %c0_i32_1 = arith.constant 0 : i32
    return %c0_i32, %c0_i32_0 : i32, i32
  }
  func.func @transform_1(%arg0: i32, %arg1: i32) -> (i32, i32) {
    %c0_i32 = arith.constant 0 : i32
    return %arg1, %arg0 : i32, i32
  }
  func.func @transform_2(%arg0: i32, %arg1: i32) -> (i32, i32) {
    %c0_i32 = arith.constant 0 : i32
    %c0_i32_0 = arith.constant 0 : i32
    return %c0_i32, %arg0 : i32, i32
  }
  func.func @transform_3(%arg0: i32, %arg1: i32) -> (i32, i32) {
    %c0_i32 = arith.constant 0 : i32
    %c0_i32_0 = arith.constant 0 : i32
    return %c0_i32, %arg0 : i32, i32
  }
}

</mosaic_0001>

<bundles_post_ra>
// kernel: image_embedding_fflayer.1
= control target key start
LH: loop header
LB: loop body
LE: loop exit
PB: predicated region body
PF: predicated region fallthrough
CT: control target
= control target key end

     0   :  { %s5645_s0 = inlined_call_operand.hbm [shape: f32[2,4096], index: 0, kind: input, shape index: {}]   ;;  %s5646_s1 = inlined_call_operand.hbm [shape: f32[4096,1024], index: 1, kind: input, shape index: {}]   ;;  %s5647_s2 = inlined_call_operand.hbm [shape: f32[1,1024], index: 2, kind: input, shape index: {}]   ;;  %s5648_s3 = inlined_call_operand.hbm [shape: f32[2,1024], index: 3, kind: output, shape index: {}]  }
   0x1   :  { %5659 = sst [smem:[#allocation16_spill]] %s5646_s1 }
   0x2   :  { %5660 = sst [smem:[#allocation17_spill]] %s5648_s3 }
   0x3   :  { %8 = vsyncpa [#allocation3], 0 }
   0x4   :  { %9 = vsyncpa [#allocation6], 0 }
   0x5   :  { %11 = vsyncpa [#allocation6 + $0x1], 0 }
   0x6   :  { %12 = vsyncpa [#allocation4], 0 }
   0x7   :  { %14 = vsyncpa [#allocation4 + $0x1], 0  ;;  %s4181_s12 = smov 0   ;;  %s4183_s13 = smov 0  }
   0x8   :  { %s4185_s14 = smov 0   ;;  %s4187_s15 = smov 0  }
   0x9   :  { %s4189_s16 = smov 0   ;;  %s4191_s17 = smov 0  }
   0xa   :  { %s4193_s18 = smov 0   ;;  %s4195_s19 = smov 0  }
   0xb   :  { %s4197_s20 = smov 0   ;;  %s4199_s21 = smov 0  }
   0xc   :  { %s4201_s22 = smov 0  }
   0xd LB: > { %5661 = sst [smem:[#allocation13_spill]] %s4142_s20  ;;  %s29_s23 = sadd.s32 1, %s4142_s20  ;;  %s4150_s22 = sphi %s4201_s22, %s20_s22   ;;  %s4146_s21 = sphi %s4199_s21, %s5696_s21   ;;  %s4142_s20 = sphi %s4197_s20, %s5687_s20   ;;  %s4138_s19 = sphi %s4195_s19, %s5695_s19   ;;  %s4134_s18 = sphi %s4193_s18, %s5686_s18   ;;  %s4130_s17 = sphi %s4191_s17, %s5694_s17   ;;  %s4126_s16 = sphi %s4189_s16, %s5693_s16   ;;  %s4122_s15 = sphi %s4187_s15, %s5692_s15   ;;  %s4118_s14 = sphi %s4185_s14, %s5691_s14   ;;  %s4114_s13 = sphi %s4183_s13, %s5690_s13   ;;  %s4110_s12 = sphi %s4181_s12, %s5689_s12  }
   0xe   : > { %s32_s24 = sadd.s32 1, %s4146_s21  ;;  %p30_p0 = scmp.ge.s32.totalorder %s29_s23, 2 }
   0xf   : > { %s62_s25 = sadd.s32 1, %s4130_s17  ;;  %p69_p1 = scmp.ne.s32.totalorder %s4130_s17, %s4126_s16 }
  0x10   : > { %p70_p2 = scmp.eq.s32.totalorder %s4150_s22, 0  ;;  %s5698_s23 = smov (%p30_p0, %s29_s23), 0 }
  0x11   : > { %5662 = sst [smem:[#allocation14_spill]] %s5698_s23  ;;  %s5700_s24 = smov (!%p30_p0, %s32_s24), %s4146_s21 }
  0x12   : > { %s57_s26 = ssub.s32 %s4142_s20, %s5698_s23  ;;  %p4249_p3 = por %p70_p2, %p69_p1 }
  0x13   : > { %p34_p4 = scmp.ge.s32.totalorder %s5700_s24, 2  ;;  %p5652_p5 = scmp.lt.s32.totalorder %s4150_s22, 4 }
  0x14   : > { %s162_s28 = sand.u32 1, %s4150_s22   ;;  %s164_s29 = sand.u32 1, %s4130_s17  }
  0x15   : > { %s5702_s24 = smov (%p34_p4, %s5700_s24), 0  ;;  %s2726_s4 = sshll.u32 %s164_s29, 13 }
  0x16   : > { %5664 = sst [smem:[#allocation15_spill]] %s5702_s24  ;;  %s4260_s30 = ssub.s32 %s4146_s21, %s5702_s24 }
  0x17   : > { %s59_s5 = sor.u32 %s4260_s30, %s57_s26  ;;  %s2728_s6 = sshll.u32 %s4146_s21, 2 }
  0x18   : > { %p60_p6 = scmp.eq.s32.totalorder %s59_s5, 0  ;;  %s2748_s7 = sshll.u32 %s4142_s20, 11 }
  0x19   : > { %s166_s8 = scalar_lea.vmem [#allocation5], %s2726_s4  ;;  %s173_s11 = sadd.s32 %s2748_s7, %s2728_s6 }
  0x1a   : > { %s176_s9 = sshll.u32 %s166_s8, 4  ;;  %s2730_s23 = sshll.u32 %s173_s11, 7  ;;  %s4268_s9 = int_to_ptr.vmem [resolvable:$true] %s176_s9 }
  0x1b   : > { %s4266_s10 = scalar_select %p60_p6, %s4130_s17, %s62_s25  }
  0x1c   : > { %p4274_p7 = pnand %p5652_p5, %p4249_p3  ;;  %s5666_s1 = sld [smem:[#allocation16_spill]] }
  0x1d   : > { %s4283_s25 = scalar_lea.sflag [#allocation6], %s162_s28 }
  0x1e   : > { %p3934_p9 = pneg %p4274_p7 }
  0x22   : > { %s4281_s26 = scalar_lea.hbm %s5666_s1, %s2730_s23  ;;  %s3937_s5 = scalar_lea.hbm %s5666_s1, 524288 }
  0x23   : > { %s3932_s4 = scalar_lea.hbm %s4281_s26, 131072  ;;  %p3938_p12 = scmp.lt.u32.totalorder %s4281_s26, %s5666_s1 }
  0x24   : > { %p3933_p8 = scmp.ne.s32.totalorder %s4281_s26, %s3932_s4  ;;  %p3939_p13 = scmp.lt.u32.totalorder %s3937_s5, %s3932_s4 }
  0x25   : > { %p3941_p1 = scmp.lt.u32.totalorder %s3932_s4, %s4281_s26 }
  0x26   : > { %p3935_p10 = pnand %p3934_p9, %p3933_p8  ;;  %p3940_p0 = por %p3939_p13, %p3938_p12 }
  0x28   : > { %p3936_p11 = pneg %p3935_p10  ;;  %p3942_p3 = por %p3941_p1, %p3940_p0 }
  0x2a   : > { %p3943_p4 = pnand %p3942_p3, %p3936_p11 }
  0x2c   : > { %3946 = shalt.err (!%p3943_p4)
}
  0x2d   : > { %s3947_s28 = scalar_lea.vmem %s4268_s9, 131072  ;;  %s4152_s7 = smov [#allocation5]  }
  0x2e   : > { %p3948_p6 = scmp.ne.s32.totalorder %s4268_s9, %s3947_s28  ;;  %s3952_s8 = sshll.u32 %s4152_s7, 4  ;;  %s3953_s8 = int_to_ptr.vmem [resolvable:$false] %s3952_s8 }
  0x2f   : > { %s3954_s11 = scalar_lea.vmem %s3953_s8, 262144  ;;  %p3955_p5 = scmp.lt.s32.totalorder %s4268_s9, %s3953_s8 }
  0x30   : > { %p3950_p8 = pnand %p3948_p6, %p3934_p9  ;;  %p3956_p12 = scmp.lt.s32.totalorder %s3954_s11, %s3947_s28 }
  0x32   : > { %p3951_p10 = pneg %p3950_p8  ;;  %p3957_p13 = por %p3956_p12, %p3955_p5 }
  0x34   : > { %p3958_p0 = pnand %p3957_p13, %p3951_p10 }
  0x36   : > { %3961 = shalt.err (!%p3958_p0)
}
  0x37   : > { %s4153_s29 = smov 1024   ;;  %s4154_s4 = smov 512  }
  0x38   : > { %s4155_s27 = smov 32   ;;  %s4312_s24 = sadd.s32 4294967295, %s4150_s22  }
  0x39   : > { %3820 = dma.hbm_to_vmem [thread:$0]  (!%p4274_p7), %s4281_s26, 131072, %s4268_s9, %s4283_s25, %s4153_s29, %s4154_s4, %s4155_s27  }
  0x3a   : > { %s2722_s5 = sadd.s32 4294967294, %s4150_s22   ;;  %p75_p5 = scmp.ne.s32.totalorder %s4126_s16, %s4122_s15 }
  0x3b   : > { %p5653_p9 = scmp.eq.s32.totalorder %s4312_s24, 0  ;;  %p101_p11 = scmp.ne.s32.totalorder %s4114_s13, %s4110_s12 }
  0x3c   : > { %p131_p3 = scmp.eq.s32.totalorder %s2722_s5, 3  ;;  %p2723_p8 = scmp.ge.s32.totalorder %s4150_s22, 1 }
  0x3d   : > { %p4323_p7 = por %p5653_p9, %p75_p5  ;;  %p4329_p4 = por %p101_p11, %p5653_p9 }
  0x3e   : > { %p4333_p6 = por %p131_p3, %p101_p11  ;;  %p138_p10 = scmp.lt.s32.totalorder %s4150_s22, 5 }
  0x3f   : > { %s5667_s3 = scalar_select %p4323_p7, 1, 0 }
  0x40   : > { %s5668_s15 = scalar_select %p4329_p4, 1, 0 }
  0x41   : > { %s5669_s9 = scalar_select %p4333_p6, 1, 0 }
  0x42   : > { %p4339_p12 = pnand %p2723_p8, %p138_p10  ;;  %s4156_s23 = smov [#allocation2]  }
  0x43   : > { %s151_s6 = sshll.u32 %s4156_s23, 4  ;;  %p86_p0 = scmp.eq.s32.totalorder %s4260_s30, 0  ;;  %s152_s6 = int_to_ptr.vmem [resolvable:$true] %s151_s6 }
  0x44   : > { %s5670_s26 = scalar_select %p4339_p12, 1, 0 }
  0x45   : > { %p3813_p13 = pneg %p4339_p12  ;;  %s88_s28 = sadd.s32 1, %s4118_s14 }
  0x46   : > { %p5655_p5 = scmp.ne.s32.totalorder %s4118_s14, %s4114_s13  ;;  %s188_s8 = sand.u32 1, %s4118_s14  }
  0x47   : > { %p4351_p11 = pnand %p3813_p13, %p5653_p9  ;;  %s3962_s30 = scalar_lea.hbm %s5645_s0, 1024 }
  0x48   : > { %s4357_s11 = scalar_select %p86_p0, %s4118_s14, %s88_s28  }
  0x49   : > { %p4364_p3 = por %p5655_p5, %p70_p2  ;;  %p3963_p8 = scmp.ne.s32.totalorder %s5645_s0, %s3962_s30 }
  0x4a   : > { %p3964_p10 = pneg %p4351_p11  ;;  %p3969_p0 = scmp.lt.u32.totalorder %s3962_s30, %s5645_s0 }
  0x4b   : > { %s5672_s29 = scalar_select %p4364_p3, 1, 0 }
  0x4c   : > { %p3965_p13 = pnand %p3964_p10, %p3963_p8 }
  0x4e   : > { %p3966_p9 = pneg %p3965_p13 }
  0x50   : > { %p3971_p2 = pnand %p3969_p0, %p3966_p9 }
  0x52   : > { %3974 = shalt.err (!%p3971_p2)
}
  0x53   : > { %s3975_s20 = scalar_lea.vmem %s152_s6, 1024  ;;  %p3983_p4 = scmp.lt.s32.totalorder %s152_s6, %s152_s6 }
  0x54   : > { %p3976_p1 = scmp.ne.s32.totalorder %s152_s6, %s3975_s20  ;;  %p3984_p7 = scmp.lt.s32.totalorder %s3975_s20, %s3975_s20 }
  0x56   : > { %p3978_p5 = pnand %p3976_p1, %p3964_p10  ;;  %p3985_p12 = por %p3984_p7, %p3983_p4 }
  0x58   : > { %p3979_p6 = pneg %p3978_p5 }
  0x5a   : > { %p3986_p3 = pnand %p3985_p12, %p3979_p6 }
  0x5c   : > { %3989 = shalt.err (!%p3986_p3)
}
  0x5d   : > { %3816 = dma.hbm_to_vmem [thread:$0]  (!%p4351_p11), %s5645_s0, 1024, %s152_s6, [#allocation3]  }
  0x5e   : > { %p5673_p9 = scmp.ne.s32.totalorder %s4118_s14, %s4114_s13  ;;  %p5674_p1 = scmp.eq.s32.totalorder %s4312_s24, 3 }
  0x5f   : > { %s2731_s20 = sshll.u32 %s188_s8, 2  ;;  %s2749_s30 = sshll.u32 %s4146_s21, 6 }
  0x60   : > { %p4389_p5 = por %p5674_p1, %p5673_p9  ;;  %s4397_s23 = scalar_lea.hbm %s5647_s2, %s2749_s30 }
  0x61   : > { %s190_s28 = scalar_lea.vmem [#allocation7], %s2731_s20  ;;  %p5676_p7 = scmp.ne.s32.totalorder %s5672_s29, 0 }
  0x62   : > { %s198_s4 = sshll.u32 %s190_s28, 4  ;;  %p5677_p4 = scmp.lt.s32.totalorder %s4150_s22, 4  ;;  %s4399_s4 = int_to_ptr.vmem [resolvable:$true] %s198_s4 }
  0x63   : > { %s3990_s8 = scalar_lea.hbm %s4397_s23, 64  ;;  %s3995_s30 = scalar_lea.hbm %s5647_s2, 128 }
  0x64   : > { %p4405_p6 = pnand %p5677_p4, %p5676_p7  ;;  %p3991_p12 = scmp.ne.s32.totalorder %s4397_s23, %s3990_s8 }
  0x65   : > { %p3996_p10 = scmp.lt.u32.totalorder %s4397_s23, %s5647_s2  ;;  %p3997_p13 = scmp.lt.u32.totalorder %s3995_s30, %s3990_s8 }
  0x66   : > { %p3992_p11 = pneg %p4405_p6  ;;  %p3999_p2 = scmp.lt.u32.totalorder %s3990_s8, %s4397_s23 }
  0x67   : > { %p3998_p0 = por %p3997_p13, %p3996_p10 }
  0x68   : > { %p3993_p3 = pnand %p3992_p11, %p3991_p12 }
  0x69   : > { %p4000_p9 = por %p3999_p2, %p3998_p0 }
  0x6a   : > { %p3994_p8 = pneg %p3993_p3 }
  0x6c   : > { %p4001_p1 = pnand %p4000_p9, %p3994_p8 }
  0x6e   : > { %4004 = shalt.err (!%p4001_p1)
}
  0x6f   : > { %s4005_s7 = scalar_lea.vmem %s4399_s4, 64  ;;  %s4157_s28 = smov [#allocation7]  }
  0x70   : > { %p4006_p7 = scmp.ne.s32.totalorder %s4399_s4, %s4005_s7  ;;  %s4010_s27 = sshll.u32 %s4157_s28, 4  ;;  %s4011_s27 = int_to_ptr.vmem [resolvable:$false] %s4010_s27 }
  0x71   : > { %s4012_s20 = scalar_lea.vmem %s4011_s27, 128  ;;  %p4013_p3 = scmp.lt.s32.totalorder %s4399_s4, %s4011_s27 }
  0x72   : > { %p4008_p4 = pnand %p4006_p7, %p3992_p11  ;;  %p4014_p10 = scmp.lt.s32.totalorder %s4012_s20, %s4005_s7 }
  0x74   : > { %p4009_p12 = pneg %p4008_p4  ;;  %p4015_p13 = por %p4014_p10, %p4013_p3 }
  0x76   : > { %p4016_p0 = pnand %p4015_p13, %p4009_p12 }
  0x78   : > { %4019 = shalt.err (!%p4016_p0)
}
  0x79   : > { %3823 = dma.hbm_to_vmem [thread:$0]  (!%p4405_p6), %s4397_s23, 64, %s4399_s4, %s4283_s25  }
  0x7a   : > { %p5679_p8 = scmp.ne.s32.totalorder %s5670_s26, 0 }
  0x7b   : > { %p5680_p11 = scmp.eq.s32.totalorder (!%p5679_p8), %s4312_s24, 0 }
  0x7c   : > { %207 = sbr.rel (%p5679_p8) target bundleno = 939 (0x3ab), region = 32 }
  0x83   : > { %4093 = dma.done.wait (%p5680_p11), [#allocation3], 1024   ;;  %p5681_p2 = pmov %p5680_p11 }
  0x84   : > { %s213_s8 = sand.u32 1, %s4312_s24   ;;  %s215_s30 = sand.u32 1, %s4126_s16  }
  0x85   : > { %4095 = vsyncadd (%p5681_p2), [#allocation3], 4294966272  ;;  %s2736_s29 = sshll.u32 %s215_s30, 13  ;;  %s214_s6 = scalar_lea.sflag [#allocation6], %s213_s8 }
  0x86   : > { %s4443_s5 = scalar_lea.vmem [#allocation5], %s2736_s29  ;;  %p5682_p9 = scmp.ne.s32.totalorder %s5667_s3, 0 }
  0x88   : > { %4097 = dma.done.wait (%p5682_p9), %s214_s6, 131072  }
  0x89   : > { %4099 = vsyncadd (%p5682_p9), %s214_s6, 4294836224  ;;  %s4450_s25 = sand.u32 1, %s4114_s13   ;;  %p5683_p6 = scmp.ne.s32.totalorder %s5668_s15, 0 }
  0x8a   : > { %s2737_s26 = sshll.u32 %s4450_s25, 2 }
  0x8b   : > { %s226_s23 = scalar_lea.vmem [#allocation7], %s2737_s26 }
  0x8c   : > { %4101 = dma.done.wait (%p5683_p6), %s214_s6, 64  }
  0x8d   : > { %4103 = vsyncadd (%p5683_p6), %s214_s6, 4294967232  ;;  %s2738_s24 = sshll.u32 %s4450_s25, 3  ;;  %p2739_p1 = scmp.ne.s32.totalorder %s4134_s18, 0 }
  0x8e   : > { %s4458_s4 = scalar_lea.vmem [#allocation8], %s2738_s24  ;;  %v264_v0 = vlaneseq (!%p2739_p1)  ;;  %v4158_v1 = vmov (!%p2739_p1), 1983009808   ;;  %v262_v4 = vld [vmem:[%s226_s23] sm:$0xf] (!%p2739_p1) }
  0x8f   : > { %261 = sbr.rel (%p2739_p1) target bundleno = 157 (0x9d), region = 48  ;;  %v283_v2 = vunpack.c.l.s4 (!%p2739_p1), %v4158_v1 }
  0x90   : > { %v265_v3 = vshrl.u32 (!%p2739_p1), %v264_v0, 7 }
  0x91   : > { %v284_v5 = vunpack.c.0.s8 (!%p2739_p1), %v283_v2 }
  0x92   : > { %v266_v6 = vsub.s32 (!%p2739_p1), 0, %v265_v3  ;;  %v270_v7 = vsub.s32 (!%p2739_p1), 1, %v265_v3  ;;  %v274_v8 = vsub.s32 (!%p2739_p1), 2, %v265_v3  ;;  %v278_v9 = vsub.s32 (!%p2739_p1), 3, %v265_v3 }
  0x93   : > { %v287_v10 = vsub.s32 (!%p2739_p1), %v284_v5, %v265_v3 }
  0x94   : > { %v267_v11 = vrot.slane (!%p2739_p1), %v262_v4, %v266_v6  ;;  %v271_v12 = vrot.slane (!%p2739_p1), %v262_v4, %v270_v7  ;;  %v275_v13 = vrot.slane (!%p2739_p1), %v262_v4, %v274_v8  ;;  %v279_v14 = vrot.slane (!%p2739_p1), %v262_v4, %v278_v9 }
  0x96   : > { %v280_v15 = vcombine.low %v267_v11, %v271_v12  ;;  %v281_v16 = vcombine.low %v275_v13, %v279_v14 }
  0x98   : > { %v288_v17 = vrot.slane %v280_v15, %v287_v10  ;;  %v295_v18 = vrot.slane %v281_v16, %v287_v10 }
  0x9a   : > { %v296_v19 = vcombine.low %v288_v17, %v295_v18 }
  0x9c   : > { %298 = vst [vmem:[%s4458_s4] sm:$0xff] %v296_v19 }
  0x9d PF: > { %v310_v20 = vld [vmem:[%s4443_s5 + $0x8] sm:$0xff]  ;;  %v312_v22 = vld [vmem:[%s4443_s5 + $0x18] sm:$0xff]  ;;  %v309_v25 = vld [vmem:[%s4443_s5] sm:$0xff]  ;;  %s2740_s3 = sshll.u32 %s4134_s18, 11  ;;  %p2742_p7 = scmp.ne.s32.totalorder %s4134_s18, 1 }
  0x9e   : > { %v314_v21 = vld [vmem:[%s4443_s5 + $0x28] sm:$0xff]  ;;  %v316_v24 = vld [vmem:[%s4443_s5 + $0x38] sm:$0xff]  ;;  %v313_v26 = vld [vmem:[%s4443_s5 + $0x20] sm:$0xff]  ;;  %s4542_s15 = sshra.s32 %s2740_s3, 7 }
  0x9f   : > { %v2751_v23 = vpack.c.bf16 %v314_v21, %v310_v20  ;;  %v3263_v27 = vpack.c.bf16 %v316_v24, %v312_v22  ;;  %v2753_v28 = vpack.c.bf16 %v313_v26, %v309_v25  ;;  %v311_v29 = vld [vmem:[%s4443_s5 + $0x10] sm:$0xff]  ;;  %v318_v31 = vld [vmem:[%s4443_s5 + $0x48] sm:$0xff]  ;;  %v320_v34 = vld [vmem:[%s4443_s5 + $0x58] sm:$0xff]  ;;  %s2741_s7 = sshll.u32 %s4542_s15, 1 }
  0xa0   : > { %v315_v30 = vld [vmem:[%s4443_s5 + $0x30] sm:$0xff]  ;;  %v322_v33 = vld [vmem:[%s4443_s5 + $0x68] sm:$0xff]  ;;  %v324_v35 = vld [vmem:[%s4443_s5 + $0x78] sm:$0xff]  ;;  %s4568_s28 = scalar_lea.vmem [#allocation2], %s2741_s7 }
  0xa1   : > { %2752 = vmatprep.subr.bf16.mxu0 %v2751_v23  ;;  %v3265_v32 = vpack.c.bf16 %v315_v30, %v311_v29  ;;  %3264 = vmatprep.subr.bf16.mxu1 %v3263_v27  ;;  %v2755_v36 = vpack.c.bf16 %v322_v33, %v318_v31  ;;  %v3267_v37 = vpack.c.bf16 %v324_v35, %v320_v34  ;;  %v317_v38 = vld [vmem:[%s4443_s5 + $0x40] sm:$0xff]  ;;  %v319_v40 = vld [vmem:[%s4443_s5 + $0x50] sm:$0xff]  ;;  %v326_v43 = vld [vmem:[%s4443_s5 + $0x88] sm:$0xff] }
  0xa2   : > { %2754 = vmatpush1.bf16.msra.mxu0 %v2753_v28  ;;  %v321_v39 = vld [vmem:[%s4443_s5 + $0x60] sm:$0xff]  ;;  %v323_v42 = vld [vmem:[%s4443_s5 + $0x70] sm:$0xff]  ;;  %v330_v44 = vld [vmem:[%s4443_s5 + $0xa8] sm:$0xff] }
  0xa3   : > { %3266 = vmatpush1.bf16.msra.mxu1 %v3265_v32  ;;  %v2757_v41 = vpack.c.bf16 %v321_v39, %v317_v38  ;;  %2756 = vmatprep.subr.bf16.mxu0 %v2755_v36  ;;  %v3269_v45 = vpack.c.bf16 %v323_v42, %v319_v40  ;;  %v2759_v46 = vpack.c.bf16 %v330_v44, %v326_v43  ;;  %v328_v47 = vld [vmem:[%s4443_s5 + $0x98] sm:$0xff]  ;;  %v325_v49 = vld [vmem:[%s4443_s5 + $0x80] sm:$0xff]  ;;  %v327_v52 = vld [vmem:[%s4443_s5 + $0x90] sm:$0xff] }
  0xa4   : > { %3268 = vmatprep.subr.bf16.mxu1 %v3267_v37  ;;  %v332_v48 = vld [vmem:[%s4443_s5 + $0xb8] sm:$0xff]  ;;  %v329_v51 = vld [vmem:[%s4443_s5 + $0xa0] sm:$0xff]  ;;  %v331_v53 = vld [vmem:[%s4443_s5 + $0xb0] sm:$0xff] }
  0xa5   : > { %v3271_v50 = vpack.c.bf16 %v332_v48, %v328_v47  ;;  %v2761_v54 = vpack.c.bf16 %v329_v51, %v325_v49  ;;  %v334_v55 = vld [vmem:[%s4443_s5 + $0xc8] sm:$0xff]  ;;  %v336_v57 = vld [vmem:[%s4443_s5 + $0xd8] sm:$0xff]  ;;  %v3273_v58 = vpack.c.bf16 %v331_v53, %v327_v52  ;;  %v333_v61 = vld [vmem:[%s4443_s5 + $0xc0] sm:$0xff] }
  0xa6   : > { %2758 = vmatpush1.bf16.msra.mxu0 %v2757_v41  ;;  %v338_v56 = vld [vmem:[%s4443_s5 + $0xe8] sm:$0xff]  ;;  %v340_v60 = vld [vmem:[%s4443_s5 + $0xf8] sm:$0xff]  ;;  %v337_v62 = vld [vmem:[%s4443_s5 + $0xe0] sm:$0xff] }
  0xa7   : > { %3270 = vmatpush1.bf16.msra.mxu1 %v3269_v45  ;;  %2760 = vmatprep.subr.bf16.mxu0 %v2759_v46  ;;  %v2763_v59 = vpack.c.bf16 %v338_v56, %v334_v55  ;;  %v3275_v63 = vpack.c.bf16 %v340_v60, %v336_v57  ;;  %v335_v0 = vld [vmem:[%s4443_s5 + $0xd0] sm:$0xff]  ;;  %v342_v2 = vld [vmem:[%s4443_s5 + $0x108] sm:$0xff]  ;;  %v344_v4 = vld [vmem:[%s4443_s5 + $0x118] sm:$0xff]  ;;  %v2765_v6 = vpack.c.bf16 %v337_v62, %v333_v61 }
  0xa8   : > { %3272 = vmatprep.subr.bf16.mxu1 %v3271_v50  ;;  %v339_v1 = vld [vmem:[%s4443_s5 + $0xf0] sm:$0xff]  ;;  %v346_v3 = vld [vmem:[%s4443_s5 + $0x128] sm:$0xff]  ;;  %v348_v5 = vld [vmem:[%s4443_s5 + $0x138] sm:$0xff] }
  0xa9   : > { %v3277_v7 = vpack.c.bf16 %v339_v1, %v335_v0  ;;  %v2767_v8 = vpack.c.bf16 %v346_v3, %v342_v2  ;;  %v341_v9 = vld [vmem:[%s4443_s5 + $0x100] sm:$0xff]  ;;  %v343_v11 = vld [vmem:[%s4443_s5 + $0x110] sm:$0xff]  ;;  %v3279_v12 = vpack.c.bf16 %v348_v5, %v344_v4  ;;  %v350_v14 = vld [vmem:[%s4443_s5 + $0x148] sm:$0xff]  ;;  %v4159_v2 = vmov 1983009808  }
  0xaa   : > { %2762 = vmatpush1.bf16.msra.mxu0 %v2761_v54  ;;  %v345_v10 = vld [vmem:[%s4443_s5 + $0x120] sm:$0xff]  ;;  %v347_v13 = vld [vmem:[%s4443_s5 + $0x130] sm:$0xff]  ;;  %v354_v15 = vld [vmem:[%s4443_s5 + $0x168] sm:$0xff]  ;;  %v1339_v3 = vunpack.c.l.s4 %v4159_v2  ;;  %v1341_v4 = vlaneseq }
  0xab   : > { %3274 = vmatpush1.bf16.msra.mxu1 %v3273_v58  ;;  %2764 = vmatprep.subr.bf16.mxu0 %v2763_v59  ;;  %v352_v16 = vld [vmem:[%s4443_s5 + $0x158] sm:$0xff]  ;;  %v2769_v18 = vpack.c.bf16 %v345_v10, %v341_v9  ;;  %v3281_v19 = vpack.c.bf16 %v347_v13, %v343_v11  ;;  %v2771_v20 = vpack.c.bf16 %v354_v15, %v350_v14  ;;  %v349_v21 = vld [vmem:[%s4443_s5 + $0x140] sm:$0xff]  ;;  %v351_v23 = vld [vmem:[%s4443_s5 + $0x150] sm:$0xff] }
  0xac   : > { %3276 = vmatprep.subr.bf16.mxu1 %v3275_v63  ;;  %v356_v17 = vld [vmem:[%s4443_s5 + $0x178] sm:$0xff]  ;;  %v353_v22 = vld [vmem:[%s4443_s5 + $0x160] sm:$0xff]  ;;  %v355_v25 = vld [vmem:[%s4443_s5 + $0x170] sm:$0xff] }
  0xad   : > { %v3283_v24 = vpack.c.bf16 %v356_v17, %v352_v16  ;;  %v358_v26 = vld [vmem:[%s4443_s5 + $0x188] sm:$0xff]  ;;  %v360_v28 = vld [vmem:[%s4443_s5 + $0x198] sm:$0xff]  ;;  %v2773_v30 = vpack.c.bf16 %v353_v22, %v349_v21  ;;  %v3285_v31 = vpack.c.bf16 %v355_v25, %v351_v23  ;;  %v357_v33 = vld [vmem:[%s4443_s5 + $0x180] sm:$0xff]  ;;  %v1340_v17 = vunpack.c.0.s8 %v1339_v3 }
  0xae   : > { %2766 = vmatpush1.bf16.msra.mxu0 %v2765_v6  ;;  %v362_v27 = vld [vmem:[%s4443_s5 + $0x1a8] sm:$0xff]  ;;  %v364_v29 = vld [vmem:[%s4443_s5 + $0x1b8] sm:$0xff]  ;;  %v361_v34 = vld [vmem:[%s4443_s5 + $0x1a0] sm:$0xff] }
  0xaf   : > { %3278 = vmatpush1.bf16.msra.mxu1 %v3277_v7  ;;  %2768 = vmatprep.subr.bf16.mxu0 %v2767_v8  ;;  %v2775_v32 = vpack.c.bf16 %v362_v27, %v358_v26  ;;  %v359_v35 = vld [vmem:[%s4443_s5 + $0x190] sm:$0xff]  ;;  %v3287_v36 = vpack.c.bf16 %v364_v29, %v360_v28  ;;  %v366_v38 = vld [vmem:[%s4443_s5 + $0x1c8] sm:$0xff]  ;;  %v368_v40 = vld [vmem:[%s4443_s5 + $0x1d8] sm:$0xff]  ;;  %v2777_v42 = vpack.c.bf16 %v361_v34, %v357_v33 }
  0xb0   : > { %3280 = vmatprep.subr.bf16.mxu1 %v3279_v12  ;;  %v363_v37 = vld [vmem:[%s4443_s5 + $0x1b0] sm:$0xff]  ;;  %v370_v39 = vld [vmem:[%s4443_s5 + $0x1e8] sm:$0xff]  ;;  %v372_v41 = vld [vmem:[%s4443_s5 + $0x1f8] sm:$0xff] }
  0xb1   : > { %v3289_v43 = vpack.c.bf16 %v363_v37, %v359_v35  ;;  %v2779_v44 = vpack.c.bf16 %v370_v39, %v366_v38  ;;  %v365_v45 = vld [vmem:[%s4443_s5 + $0x1c0] sm:$0xff]  ;;  %v367_v47 = vld [vmem:[%s4443_s5 + $0x1d0] sm:$0xff]  ;;  %v3291_v48 = vpack.c.bf16 %v372_v41, %v368_v40  ;;  %v374_v50 = vld [vmem:[%s4443_s5 + $0x208] sm:$0xff] }
  0xb2   : > { %2770 = vmatpush1.bf16.msra.mxu0 %v2769_v18  ;;  %v369_v46 = vld [vmem:[%s4443_s5 + $0x1e0] sm:$0xff]  ;;  %v371_v49 = vld [vmem:[%s4443_s5 + $0x1f0] sm:$0xff]  ;;  %v378_v51 = vld [vmem:[%s4443_s5 + $0x228] sm:$0xff]  ;;  %v1342_v18 = vshrl.u32 %v1341_v4, 7 }
  0xb3   : > { %3282 = vmatpush1.bf16.msra.mxu1 %v3281_v19  ;;  %2772 = vmatprep.subr.bf16.mxu0 %v2771_v20  ;;  %v376_v52 = vld [vmem:[%s4443_s5 + $0x218] sm:$0xff]  ;;  %v2781_v54 = vpack.c.bf16 %v369_v46, %v365_v45  ;;  %v3293_v55 = vpack.c.bf16 %v371_v49, %v367_v47  ;;  %v2783_v56 = vpack.c.bf16 %v378_v51, %v374_v50  ;;  %v373_v57 = vld [vmem:[%s4443_s5 + $0x200] sm:$0xff]  ;;  %v375_v59 = vld [vmem:[%s4443_s5 + $0x210] sm:$0xff] }
  0xb4   : > { %3284 = vmatprep.subr.bf16.mxu1 %v3283_v24  ;;  %v380_v53 = vld [vmem:[%s4443_s5 + $0x238] sm:$0xff]  ;;  %v377_v58 = vld [vmem:[%s4443_s5 + $0x220] sm:$0xff]  ;;  %v379_v61 = vld [vmem:[%s4443_s5 + $0x230] sm:$0xff] }
  0xb5   : > { %v3295_v60 = vpack.c.bf16 %v380_v53, %v376_v52  ;;  %v382_v62 = vld [vmem:[%s4443_s5 + $0x248] sm:$0xff]  ;;  %v384_v0 = vld [vmem:[%s4443_s5 + $0x258] sm:$0xff]  ;;  %v2785_v5 = vpack.c.bf16 %v377_v58, %v373_v57  ;;  %v3297_v6 = vpack.c.bf16 %v379_v61, %v375_v59  ;;  %v381_v8 = vld [vmem:[%s4443_s5 + $0x240] sm:$0xff] }
  0xb6   : > { %2774 = vmatpush1.bf16.msra.mxu0 %v2773_v30  ;;  %v386_v63 = vld [vmem:[%s4443_s5 + $0x268] sm:$0xff]  ;;  %v388_v1 = vld [vmem:[%s4443_s5 + $0x278] sm:$0xff]  ;;  %v385_v9 = vld [vmem:[%s4443_s5 + $0x260] sm:$0xff] }
  0xb7   : > { %3286 = vmatpush1.bf16.msra.mxu1 %v3285_v31  ;;  %2776 = vmatprep.subr.bf16.mxu0 %v2775_v32  ;;  %v2787_v7 = vpack.c.bf16 %v386_v63, %v382_v62  ;;  %v383_v10 = vld [vmem:[%s4443_s5 + $0x250] sm:$0xff]  ;;  %v3299_v11 = vpack.c.bf16 %v388_v1, %v384_v0  ;;  %v390_v13 = vld [vmem:[%s4443_s5 + $0x288] sm:$0xff]  ;;  %v392_v15 = vld [vmem:[%s4443_s5 + $0x298] sm:$0xff]  ;;  %v2789_v19 = vpack.c.bf16 %v385_v9, %v381_v8 }
  0xb8   : > { %3288 = vmatprep.subr.bf16.mxu1 %v3287_v36  ;;  %v387_v12 = vld [vmem:[%s4443_s5 + $0x270] sm:$0xff]  ;;  %v394_v14 = vld [vmem:[%s4443_s5 + $0x2a8] sm:$0xff]  ;;  %v396_v16 = vld [vmem:[%s4443_s5 + $0x2b8] sm:$0xff]  ;;  %v4558_v31 = vsub.s32 %v1340_v17, %v1342_v18 }
  0xb9   : > { %v3301_v20 = vpack.c.bf16 %v387_v12, %v383_v10  ;;  %v2791_v21 = vpack.c.bf16 %v394_v14, %v390_v13  ;;  %v389_v22 = vld [vmem:[%s4443_s5 + $0x280] sm:$0xff]  ;;  %v391_v24 = vld [vmem:[%s4443_s5 + $0x290] sm:$0xff]  ;;  %v3303_v25 = vpack.c.bf16 %v396_v16, %v392_v15  ;;  %v398_v27 = vld [vmem:[%s4443_s5 + $0x2c8] sm:$0xff] }
  0xba   : > { %2778 = vmatpush1.bf16.msra.mxu0 %v2777_v42  ;;  %v393_v23 = vld [vmem:[%s4443_s5 + $0x2a0] sm:$0xff]  ;;  %v395_v26 = vld [vmem:[%s4443_s5 + $0x2b0] sm:$0xff]  ;;  %v402_v28 = vld [vmem:[%s4443_s5 + $0x2e8] sm:$0xff] }
  0xbb   : > { %3290 = vmatpush1.bf16.msra.mxu1 %v3289_v43  ;;  %2780 = vmatprep.subr.bf16.mxu0 %v2779_v44  ;;  %v400_v29 = vld [vmem:[%s4443_s5 + $0x2d8] sm:$0xff]  ;;  %v2793_v32 = vpack.c.bf16 %v393_v23, %v389_v22  ;;  %v397_v33 = vld [vmem:[%s4443_s5 + $0x2c0] sm:$0xff]  ;;  %v3305_v34 = vpack.c.bf16 %v395_v26, %v391_v24  ;;  %v2795_v35 = vpack.c.bf16 %v402_v28, %v398_v27  ;;  %v399_v37 = vld [vmem:[%s4443_s5 + $0x2d0] sm:$0xff] }
  0xbc   : > { %3292 = vmatprep.subr.bf16.mxu1 %v3291_v48  ;;  %v404_v30 = vld [vmem:[%s4443_s5 + $0x2f8] sm:$0xff]  ;;  %v401_v36 = vld [vmem:[%s4443_s5 + $0x2e0] sm:$0xff]  ;;  %v403_v38 = vld [vmem:[%s4443_s5 + $0x2f0] sm:$0xff] }
  0xbd   : > { %v3307_v39 = vpack.c.bf16 %v404_v30, %v400_v29  ;;  %v406_v40 = vld [vmem:[%s4443_s5 + $0x308] sm:$0xff]  ;;  %v4571_v42 = vld [vmem:[%s4568_s28] sm:$0xff]  ;;  %v408_v43 = vld [vmem:[%s4443_s5 + $0x318] sm:$0xff]  ;;  %v2797_v46 = vpack.c.bf16 %v401_v36, %v397_v33  ;;  %v3309_v47 = vpack.c.bf16 %v403_v38, %v399_v37 }
  0xbe   : > { %2782 = vmatpush1.bf16.msra.mxu0 %v2781_v54  ;;  %v410_v41 = vld [vmem:[%s4443_s5 + $0x328] sm:$0xff]  ;;  %v412_v44 = vld [vmem:[%s4443_s5 + $0x338] sm:$0xff]  ;;  %v4577_v45 = vrot.slane %v4571_v42, %v4558_v31  ;;  %v405_v49 = vld [vmem:[%s4443_s5 + $0x300] sm:$0xff]  ;;  %v1337_v27 = vcombine.high %v4571_v42, %v4571_v42 }
  0xbf   : > { %3294 = vmatpush1.bf16.msra.mxu1 %v3293_v55  ;;  %2784 = vmatprep.subr.bf16.mxu0 %v2783_v56  ;;  %v2799_v48 = vpack.c.bf16 %v410_v41, %v406_v40  ;;  %v409_v50 = vld [vmem:[%s4443_s5 + $0x320] sm:$0xff]  ;;  %v407_v51 = vld [vmem:[%s4443_s5 + $0x310] sm:$0xff]  ;;  %v3311_v53 = vpack.c.bf16 %v412_v44, %v408_v43  ;;  %v414_v55 = vld [vmem:[%s4443_s5 + $0x348] sm:$0xff] }
  0xc0   : > { %3296 = vmatprep.subr.bf16.mxu1 %v3295_v60  ;;  %v1352_v52 = vcombine.high %v4577_v45, %v4577_v45  ;;  %v411_v54 = vld [vmem:[%s4443_s5 + $0x330] sm:$0xff]  ;;  %v418_v56 = vld [vmem:[%s4443_s5 + $0x368] sm:$0xff]  ;;  %v416_v57 = vld [vmem:[%s4443_s5 + $0x358] sm:$0xff]  ;;  %v2801_v59 = vpack.c.bf16 %v409_v50, %v405_v49  ;;  %v4622_v43 = vrot.slane %v1337_v27, %v4558_v31 }
  0xc1   : > { %v420_v58 = vld [vmem:[%s4443_s5 + $0x378] sm:$0xff]  ;;  %v3313_v60 = vpack.c.bf16 %v411_v54, %v407_v51  ;;  %v2803_v61 = vpack.c.bf16 %v418_v56, %v414_v55  ;;  %v413_v62 = vld [vmem:[%s4443_s5 + $0x340] sm:$0xff]  ;;  %v415_v0 = vld [vmem:[%s4443_s5 + $0x350] sm:$0xff] }
  0xc2   : > { %2786 = vmatpush1.bf16.msra.mxu0 %v2785_v5  ;;  %1485 = vmatprep.mubr.f32.mxu0 %v1352_v52  ;;  %v417_v63 = vld [vmem:[%s4443_s5 + $0x360] sm:$0xff]  ;;  %v3315_v1 = vpack.c.bf16 %v420_v58, %v416_v57  ;;  %v419_v2 = vld [vmem:[%s4443_s5 + $0x370] sm:$0xff]  ;;  %v422_v3 = vld [vmem:[%s4443_s5 + $0x388] sm:$0xff]  ;;  %v1353_v57 = vcombine.high %v4622_v43, %v4622_v43 }
  0xc3   : > { %3298 = vmatpush1.bf16.msra.mxu1 %v3297_v6  ;;  %2788 = vmatprep.subr.bf16.mxu0 %v2787_v7  ;;  %v426_v4 = vld [vmem:[%s4443_s5 + $0x3a8] sm:$0xff]  ;;  %v424_v5 = vld [vmem:[%s4443_s5 + $0x398] sm:$0xff]  ;;  %v2805_v7 = vpack.c.bf16 %v417_v63, %v413_v62  ;;  %v3317_v8 = vpack.c.bf16 %v419_v2, %v415_v0  ;;  %v421_v10 = vld [vmem:[%s4443_s5 + $0x380] sm:$0xff] }
  0xc4   : > { %3300 = vmatprep.subr.bf16.mxu1 %v3299_v11  ;;  %2053 = vmatprep.mubr.f32.mxu1 %v1352_v52  ;;  %v428_v6 = vld [vmem:[%s4443_s5 + $0x3b8] sm:$0xff]  ;;  %v2807_v9 = vpack.c.bf16 %v426_v4, %v422_v3  ;;  %v425_v11 = vld [vmem:[%s4443_s5 + $0x3a0] sm:$0xff]  ;;  %v423_v12 = vld [vmem:[%s4443_s5 + $0x390] sm:$0xff] }
  0xc5   : > { %v3319_v13 = vpack.c.bf16 %v428_v6, %v424_v5  ;;  %v427_v14 = vld [vmem:[%s4443_s5 + $0x3b0] sm:$0xff]  ;;  %v430_v15 = vld [vmem:[%s4443_s5 + $0x3c8] sm:$0xff]  ;;  %v432_v17 = vld [vmem:[%s4443_s5 + $0x3d8] sm:$0xff] }
  0xc6   : > { %2790 = vmatpush1.bf16.msra.mxu0 %v2789_v19  ;;  %v434_v16 = vld [vmem:[%s4443_s5 + $0x3e8] sm:$0xff]  ;;  %v436_v18 = vld [vmem:[%s4443_s5 + $0x3f8] sm:$0xff]  ;;  %v2809_v19 = vpack.c.bf16 %v425_v11, %v421_v10  ;;  %v429_v22 = vld [vmem:[%s4443_s5 + $0x3c0] sm:$0xff] }
  0xc7   : > { %3302 = vmatpush1.bf16.msra.mxu1 %v3301_v20  ;;  %2792 = vmatprep.subr.bf16.mxu0 %v2791_v21  ;;  %v3321_v20 = vpack.c.bf16 %v427_v14, %v423_v12  ;;  %v2811_v21 = vpack.c.bf16 %v434_v16, %v430_v15  ;;  %v433_v23 = vld [vmem:[%s4443_s5 + $0x3e0] sm:$0xff]  ;;  %v431_v24 = vld [vmem:[%s4443_s5 + $0x3d0] sm:$0xff]  ;;  %v438_v28 = vld [vmem:[%s4443_s5 + $0x408] sm:$0xff] }
  0xc8   : > { %3304 = vmatprep.subr.bf16.mxu1 %v3303_v25  ;;  %v3323_v25 = vpack.c.bf16 %v436_v18, %v432_v17  ;;  %v435_v26 = vld [vmem:[%s4443_s5 + $0x3f0] sm:$0xff]  ;;  %v442_v29 = vld [vmem:[%s4443_s5 + $0x428] sm:$0xff]  ;;  %v440_v30 = vld [vmem:[%s4443_s5 + $0x418] sm:$0xff]  ;;  %v2813_v33 = vpack.c.bf16 %v433_v23, %v429_v22 }
  0xc9   : > { %v437_v36 = vld [vmem:[%s4443_s5 + $0x400] sm:$0xff]  ;;  %v439_v38 = vld [vmem:[%s4443_s5 + $0x410] sm:$0xff]  ;;  %v446_v41 = vld [vmem:[%s4443_s5 + $0x448] sm:$0xff] }
  0xca   : > { %2794 = vmatpush1.bf16.msra.mxu0 %v2793_v32  ;;  %v444_v32 = vld [vmem:[%s4443_s5 + $0x438] sm:$0xff]  ;;  %v441_v37 = vld [vmem:[%s4443_s5 + $0x420] sm:$0xff]  ;;  %v443_v40 = vld [vmem:[%s4443_s5 + $0x430] sm:$0xff] }
  0xcb   : > { %3306 = vmatpush1.bf16.msra.mxu1 %v3305_v34  ;;  %2796 = vmatprep.subr.bf16.mxu0 %v2795_v35  ;;  %v3325_v34 = vpack.c.bf16 %v435_v26, %v431_v24  ;;  %v2815_v35 = vpack.c.bf16 %v442_v29, %v438_v28  ;;  %v450_v42 = vld [vmem:[%s4443_s5 + $0x468] sm:$0xff]  ;;  %v448_v44 = vld [vmem:[%s4443_s5 + $0x458] sm:$0xff]  ;;  %v445_v50 = vld [vmem:[%s4443_s5 + $0x440] sm:$0xff] }
  0xcc   : > { %3308 = vmatprep.subr.bf16.mxu1 %v3307_v39  ;;  %v3327_v39 = vpack.c.bf16 %v444_v32, %v440_v30  ;;  %v2819_v49 = vpack.c.bf16 %v450_v42, %v446_v41  ;;  %v449_v51 = vld [vmem:[%s4443_s5 + $0x460] sm:$0xff]  ;;  %v447_v52 = vld [vmem:[%s4443_s5 + $0x450] sm:$0xff]  ;;  %v454_v55 = vld [vmem:[%s4443_s5 + $0x488] sm:$0xff] }
  0xcd   : > { %v451_v54 = vld [vmem:[%s4443_s5 + $0x470] sm:$0xff]  ;;  %v458_v56 = vld [vmem:[%s4443_s5 + $0x4a8] sm:$0xff]  ;;  %v456_v58 = vld [vmem:[%s4443_s5 + $0x498] sm:$0xff] }
  0xce   : > { %2798 = vmatpush1.bf16.msra.mxu0 %v2797_v46  ;;  %v452_v46 = vld [vmem:[%s4443_s5 + $0x478] sm:$0xff]  ;;  %v2823_v62 = vpack.c.bf16 %v458_v56, %v454_v55  ;;  %v453_v63 = vld [vmem:[%s4443_s5 + $0x480] sm:$0xff]  ;;  %v459_v3 = vld [vmem:[%s4443_s5 + $0x4b0] sm:$0xff] }
  0xcf   : > { %3310 = vmatpush1.bf16.msra.mxu1 %v3309_v47  ;;  %2800 = vmatprep.subr.bf16.mxu0 %v2799_v48  ;;  %v2817_v47 = vpack.c.bf16 %v441_v37, %v437_v36  ;;  %v3329_v48 = vpack.c.bf16 %v443_v40, %v439_v38  ;;  %v457_v0 = vld [vmem:[%s4443_s5 + $0x4a0] sm:$0xff]  ;;  %v462_v4 = vld [vmem:[%s4443_s5 + $0x4c8] sm:$0xff]  ;;  %v468_v6 = vld [vmem:[%s4443_s5 + $0x4f8] sm:$0xff] }
  0xd0   : > { %3312 = vmatprep.subr.bf16.mxu1 %v3311_v53  ;;  %v3331_v53 = vpack.c.bf16 %v452_v46, %v448_v44  ;;  %v466_v5 = vld [vmem:[%s4443_s5 + $0x4e8] sm:$0xff]  ;;  %v461_v10 = vld [vmem:[%s4443_s5 + $0x4c0] sm:$0xff]  ;;  %v463_v12 = vld [vmem:[%s4443_s5 + $0x4d0] sm:$0xff] }
  0xd1   : > { %v465_v11 = vld [vmem:[%s4443_s5 + $0x4e0] sm:$0xff]  ;;  %v467_v14 = vld [vmem:[%s4443_s5 + $0x4f0] sm:$0xff]  ;;  %v470_v15 = vld [vmem:[%s4443_s5 + $0x508] sm:$0xff] }
  0xd2   : > { %2802 = vmatpush1.bf16.msra.mxu0 %v2801_v59  ;;  %v460_v59 = vld [vmem:[%s4443_s5 + $0x4b8] sm:$0xff]  ;;  %v474_v16 = vld [vmem:[%s4443_s5 + $0x528] sm:$0xff]  ;;  %v469_v22 = vld [vmem:[%s4443_s5 + $0x500] sm:$0xff] }
  0xd3   : > { %3314 = vmatpush1.bf16.msra.mxu1 %v3313_v60  ;;  %2804 = vmatprep.subr.bf16.mxu0 %v2803_v61  ;;  %v2821_v60 = vpack.c.bf16 %v449_v51, %v445_v50  ;;  %v3333_v61 = vpack.c.bf16 %v451_v54, %v447_v52  ;;  %v3335_v2 = vpack.c.bf16 %v460_v59, %v456_v58  ;;  %v472_v17 = vld [vmem:[%s4443_s5 + $0x518] sm:$0xff]  ;;  %v473_v23 = vld [vmem:[%s4443_s5 + $0x520] sm:$0xff]  ;;  %v471_v24 = vld [vmem:[%s4443_s5 + $0x510] sm:$0xff] }
  0xd4   : > { %3316 = vmatprep.subr.bf16.mxu1 %v3315_v1  ;;  %v455_v1 = vld [vmem:[%s4443_s5 + $0x490] sm:$0xff]  ;;  %v476_v18 = vld [vmem:[%s4443_s5 + $0x538] sm:$0xff]  ;;  %v478_v27 = vld [vmem:[%s4443_s5 + $0x548] sm:$0xff]  ;;  %v2833_v32 = vpack.c.bf16 %v473_v23, %v469_v22 }
  0xd5   : > { %v475_v26 = vld [vmem:[%s4443_s5 + $0x530] sm:$0xff]  ;;  %v482_v28 = vld [vmem:[%s4443_s5 + $0x568] sm:$0xff]  ;;  %v480_v29 = vld [vmem:[%s4443_s5 + $0x558] sm:$0xff] }
  0xd6   : > { %2806 = vmatpush1.bf16.msra.mxu0 %v2805_v7  ;;  %v2825_v7 = vpack.c.bf16 %v457_v0, %v453_v63  ;;  %v484_v30 = vld [vmem:[%s4443_s5 + $0x578] sm:$0xff]  ;;  %v481_v36 = vld [vmem:[%s4443_s5 + $0x560] sm:$0xff]  ;;  %v479_v37 = vld [vmem:[%s4443_s5 + $0x550] sm:$0xff] }
  0xd7   : > { %3318 = vmatpush1.bf16.msra.mxu1 %v3317_v8  ;;  %2808 = vmatprep.subr.bf16.mxu0 %v2807_v9  ;;  %v3337_v8 = vpack.c.bf16 %v459_v3, %v455_v1  ;;  %v2827_v9 = vpack.c.bf16 %v466_v5, %v462_v4  ;;  %v3347_v38 = vpack.c.bf16 %v484_v30, %v480_v29  ;;  %v486_v40 = vld [vmem:[%s4443_s5 + $0x588] sm:$0xff]  ;;  %v488_v42 = vld [vmem:[%s4443_s5 + $0x598] sm:$0xff]  ;;  %v489_v50 = vld [vmem:[%s4443_s5 + $0x5a0] sm:$0xff] }
  0xd8   : > { %3320 = vmatprep.subr.bf16.mxu1 %v3319_v13  ;;  %v490_v41 = vld [vmem:[%s4443_s5 + $0x5a8] sm:$0xff]  ;;  %v492_v44 = vld [vmem:[%s4443_s5 + $0x5b8] sm:$0xff]  ;;  %v487_v51 = vld [vmem:[%s4443_s5 + $0x590] sm:$0xff] }
  0xd9   : > { %v3351_v52 = vpack.c.bf16 %v492_v44, %v488_v42  ;;  %v494_v54 = vld [vmem:[%s4443_s5 + $0x5c8] sm:$0xff]  ;;  %v496_v56 = vld [vmem:[%s4443_s5 + $0x5d8] sm:$0xff]  ;;  %v495_v63 = vld [vmem:[%s4443_s5 + $0x5d0] sm:$0xff] }
  0xda   : > { %2810 = vmatpush1.bf16.msra.mxu0 %v2809_v19  ;;  %v2829_v19 = vpack.c.bf16 %v465_v11, %v461_v10  ;;  %v498_v55 = vld [vmem:[%s4443_s5 + $0x5e8] sm:$0xff]  ;;  %v499_v1 = vld [vmem:[%s4443_s5 + $0x5f0] sm:$0xff]  ;;  %v504_v4 = vld [vmem:[%s4443_s5 + $0x618] sm:$0xff] }
  0xdb   : > { %3322 = vmatpush1.bf16.msra.mxu1 %v3321_v20  ;;  %2812 = vmatprep.subr.bf16.mxu0 %v2811_v21  ;;  %v3341_v20 = vpack.c.bf16 %v467_v14, %v463_v12  ;;  %v2831_v21 = vpack.c.bf16 %v474_v16, %v470_v15  ;;  %v506_v3 = vld [vmem:[%s4443_s5 + $0x628] sm:$0xff]  ;;  %v508_v5 = vld [vmem:[%s4443_s5 + $0x638] sm:$0xff]  ;;  %v503_v10 = vld [vmem:[%s4443_s5 + $0x610] sm:$0xff] }
  0xdc   : > { %3324 = vmatprep.subr.bf16.mxu1 %v3323_v25  ;;  %v3343_v25 = vpack.c.bf16 %v476_v18, %v472_v17  ;;  %v3359_v11 = vpack.c.bf16 %v508_v5, %v504_v4  ;;  %v507_v12 = vld [vmem:[%s4443_s5 + $0x630] sm:$0xff]  ;;  %v514_v14 = vld [vmem:[%s4443_s5 + $0x668] sm:$0xff]  ;;  %v512_v15 = vld [vmem:[%s4443_s5 + $0x658] sm:$0xff] }
  0xdd   : > { %v516_v16 = vld [vmem:[%s4443_s5 + $0x678] sm:$0xff]  ;;  %v3361_v18 = vpack.c.bf16 %v507_v12, %v503_v10  ;;  %v511_v22 = vld [vmem:[%s4443_s5 + $0x650] sm:$0xff]  ;;  %v554_v12 = vld [vmem:[%s4443_s5 + $0x7a8] sm:$0xff] }
  0xde   : > { %2814 = vmatpush1.bf16.msra.mxu0 %v2813_v33  ;;  %v3345_v33 = vpack.c.bf16 %v475_v26, %v471_v24  ;;  %v3363_v23 = vpack.c.bf16 %v516_v16, %v512_v15  ;;  %v515_v24 = vld [vmem:[%s4443_s5 + $0x670] sm:$0xff]  ;;  %v522_v26 = vld [vmem:[%s4443_s5 + $0x6a8] sm:$0xff] }
  0xdf   : > { %3326 = vmatpush1.bf16.msra.mxu1 %v3325_v34  ;;  %2816 = vmatprep.subr.bf16.mxu0 %v2815_v35  ;;  %v2835_v34 = vpack.c.bf16 %v482_v28, %v478_v27  ;;  %v477_v35 = vld [vmem:[%s4443_s5 + $0x540] sm:$0xff]  ;;  %v520_v27 = vld [vmem:[%s4443_s5 + $0x698] sm:$0xff]  ;;  %v3365_v30 = vpack.c.bf16 %v515_v24, %v511_v22  ;;  %v547_v10 = vld [vmem:[%s4443_s5 + $0x770] sm:$0xff] }
  0xe0   : > { %3328 = vmatprep.subr.bf16.mxu1 %v3327_v39  ;;  %v483_v39 = vld [vmem:[%s4443_s5 + $0x570] sm:$0xff]  ;;  %v2837_v46 = vpack.c.bf16 %v481_v36, %v477_v35  ;;  %v524_v28 = vld [vmem:[%s4443_s5 + $0x6b8] sm:$0xff]  ;;  %v562_v24 = vld [vmem:[%s4443_s5 + $0x7e8] sm:$0xff] }
  0xe1   : > { %1486 = vmatmul.mubr.f32.vlgmr.msra.gmra.mrb[0].mxu0 %v4577_v45  ;;  %v519_v35 = vld [vmem:[%s4443_s5 + $0x690] sm:$0xff]  ;;  %v3367_v36 = vpack.c.bf16 %v524_v28, %v520_v27 }
  0xe2   : > { %2818 = vmatpush1.bf16.msra.mxu0 %v2817_v47  ;;  %2054 = vmatmul.mubr.f32.vlgmr.msra.gmra.mrb[0].mxu1 %v4577_v45  ;;  %v464_v45 = vld [vmem:[%s4443_s5 + $0x4d8] sm:$0xff]  ;;  %v3349_v47 = vpack.c.bf16 %v483_v39, %v479_v37  ;;  %v523_v37 = vld [vmem:[%s4443_s5 + $0x6b0] sm:$0xff]  ;;  %v530_v39 = vld [vmem:[%s4443_s5 + $0x6e8] sm:$0xff] }
  0xe3   : > { %3330 = vmatpush1.bf16.msra.mxu1 %v3329_v48  ;;  %2820 = vmatprep.subr.bf16.mxu0 %v2819_v49  ;;  %v3339_v13 = vpack.c.bf16 %v468_v6, %v464_v45  ;;  %v2839_v48 = vpack.c.bf16 %v490_v41, %v486_v40  ;;  %v485_v49 = vld [vmem:[%s4443_s5 + $0x580] sm:$0xff]  ;;  %v3357_v6 = vpack.c.bf16 %v499_v1, %v495_v63  ;;  %v528_v40 = vld [vmem:[%s4443_s5 + $0x6d8] sm:$0xff]  ;;  %v539_v63 = vld [vmem:[%s4443_s5 + $0x730] sm:$0xff] }
  0xe4   : > { %3332 = vmatprep.subr.bf16.mxu1 %v3331_v53  ;;  %1556 = vmatprep.mubr.f32.mxu0 %v1353_v57  ;;  %v491_v53 = vld [vmem:[%s4443_s5 + $0x5b0] sm:$0xff]  ;;  %v2841_v58 = vpack.c.bf16 %v489_v50, %v485_v49  ;;  %v532_v41 = vld [vmem:[%s4443_s5 + $0x6f8] sm:$0xff]  ;;  %v3369_v44 = vpack.c.bf16 %v523_v37, %v519_v35  ;;  %v546_v1 = vld [vmem:[%s4443_s5 + $0x768] sm:$0xff] }
  0xe5   : > { %2124 = vmatprep.mubr.f32.mxu1 %v1353_v57  ;;  %v500_v57 = vld [vmem:[%s4443_s5 + $0x5f8] sm:$0xff]  ;;  %v3353_v59 = vpack.c.bf16 %v491_v53, %v487_v51  ;;  %v527_v49 = vld [vmem:[%s4443_s5 + $0x6d0] sm:$0xff]  ;;  %v3371_v50 = vpack.c.bf16 %v532_v41, %v528_v40  ;;  %v538_v53 = vld [vmem:[%s4443_s5 + $0x728] sm:$0xff] }
  0xe6   : > { %2822 = vmatpush1.bf16.msra.mxu0 %v2821_v60  ;;  %v2843_v60 = vpack.c.bf16 %v498_v55, %v494_v54  ;;  %v3355_v0 = vpack.c.bf16 %v500_v57, %v496_v56  ;;  %v531_v51 = vld [vmem:[%s4443_s5 + $0x6f0] sm:$0xff]  ;;  %v536_v54 = vld [vmem:[%s4443_s5 + $0x718] sm:$0xff]  ;;  %v570_v37 = vld [vmem:[%s4443_s5 + $0x828] sm:$0xff] }
  0xe7   : > { %3334 = vmatpush1.bf16.msra.mxu1 %v3333_v61  ;;  %2824 = vmatprep.subr.bf16.mxu0 %v2823_v62  ;;  %v493_v61 = vld [vmem:[%s4443_s5 + $0x5c0] sm:$0xff]  ;;  %v540_v55 = vld [vmem:[%s4443_s5 + $0x738] sm:$0xff]  ;;  %v3373_v57 = vpack.c.bf16 %v531_v51, %v527_v49  ;;  %v555_v22 = vld [vmem:[%s4443_s5 + $0x7b0] sm:$0xff] }
  0xe8   : > { %3336 = vmatprep.subr.bf16.mxu1 %v3335_v2  ;;  %v497_v62 = vld [vmem:[%s4443_s5 + $0x5e0] sm:$0xff]  ;;  %v502_v2 = vld [vmem:[%s4443_s5 + $0x608] sm:$0xff]  ;;  %v563_v35 = vld [vmem:[%s4443_s5 + $0x7f0] sm:$0xff] }
  0xe9   : > { %v2845_v45 = vpack.c.bf16 %v497_v62, %v493_v61  ;;  %v535_v61 = vld [vmem:[%s4443_s5 + $0x710] sm:$0xff]  ;;  %v3375_v62 = vpack.c.bf16 %v540_v55, %v536_v54  ;;  %v578_v51 = vld [vmem:[%s4443_s5 + $0x868] sm:$0xff] }
  0xea   : > { %2826 = vmatpush1.bf16.msra.mxu0 %v2825_v7  ;;  %v2847_v7 = vpack.c.bf16 %v506_v3, %v502_v2  ;;  %v544_v2 = vld [vmem:[%s4443_s5 + $0x758] sm:$0xff]  ;;  %v3377_v5 = vpack.c.bf16 %v539_v63, %v535_v61  ;;  %v571_v49 = vld [vmem:[%s4443_s5 + $0x830] sm:$0xff]  ;;  %v4759_v55 = vld [vmem:[%s4568_s28 + $0x8] sm:$0xff] }
  0xeb   : > { %3338 = vmatpush1.bf16.msra.mxu1 %v3337_v8  ;;  %2828 = vmatprep.subr.bf16.mxu0 %v2827_v9  ;;  %v501_v8 = vld [vmem:[%s4443_s5 + $0x600] sm:$0xff]  ;;  %v548_v3 = vld [vmem:[%s4443_s5 + $0x778] sm:$0xff]  ;;  %v4766_v61 = vrot.slane %v4759_v55, %v4558_v31  ;;  %v579_v63 = vld [vmem:[%s4443_s5 + $0x870] sm:$0xff] }
  0xec   : > { %3340 = vmatprep.subr.bf16.mxu1 %v3339_v13  ;;  %v505_v9 = vld [vmem:[%s4443_s5 + $0x620] sm:$0xff]  ;;  %v510_v13 = vld [vmem:[%s4443_s5 + $0x648] sm:$0xff] }
  0xed   : > { %v2849_v17 = vpack.c.bf16 %v505_v9, %v501_v8  ;;  %v543_v8 = vld [vmem:[%s4443_s5 + $0x750] sm:$0xff]  ;;  %v3379_v9 = vpack.c.bf16 %v548_v3, %v544_v2  ;;  %v584_v2 = vld [vmem:[%s4443_s5 + $0x898] sm:$0xff] }
  0xee   : > { %2830 = vmatpush1.bf16.msra.mxu0 %v2829_v19  ;;  %v2851_v19 = vpack.c.bf16 %v514_v14, %v510_v13  ;;  %v552_v13 = vld [vmem:[%s4443_s5 + $0x798] sm:$0xff]  ;;  %v3381_v16 = vpack.c.bf16 %v547_v10, %v543_v8  ;;  %v585_v8 = vld [vmem:[%s4443_s5 + $0x8a0] sm:$0xff] }
  0xef   : > { %3342 = vmatpush1.bf16.msra.mxu1 %v3341_v20  ;;  %2832 = vmatprep.subr.bf16.mxu0 %v2831_v21  ;;  %v509_v20 = vld [vmem:[%s4443_s5 + $0x640] sm:$0xff]  ;;  %v556_v14 = vld [vmem:[%s4443_s5 + $0x7b8] sm:$0xff] }
  0xf0   : > { %3344 = vmatprep.subr.bf16.mxu1 %v3343_v25  ;;  %v513_v21 = vld [vmem:[%s4443_s5 + $0x660] sm:$0xff]  ;;  %v518_v25 = vld [vmem:[%s4443_s5 + $0x688] sm:$0xff]  ;;  %v588_v3 = vld [vmem:[%s4443_s5 + $0x8b8] sm:$0xff] }
  0xf1   : > { %v2853_v29 = vpack.c.bf16 %v513_v21, %v509_v20  ;;  %v551_v20 = vld [vmem:[%s4443_s5 + $0x790] sm:$0xff]  ;;  %v3383_v21 = vpack.c.bf16 %v556_v14, %v552_v13  ;;  %v3399_v10 = vpack.c.bf16 %v588_v3, %v584_v2  ;;  %v594_v13 = vld [vmem:[%s4443_s5 + $0x8e8] sm:$0xff]  ;;  %v596_v14 = vld [vmem:[%s4443_s5 + $0x8f8] sm:$0xff] }
  0xf2   : > { %2834 = vmatpush1.bf16.msra.mxu0 %v2833_v32  ;;  %v2855_v32 = vpack.c.bf16 %v522_v26, %v518_v25  ;;  %v560_v25 = vld [vmem:[%s4443_s5 + $0x7d8] sm:$0xff]  ;;  %v3385_v28 = vpack.c.bf16 %v555_v22, %v551_v20  ;;  %v591_v20 = vld [vmem:[%s4443_s5 + $0x8d0] sm:$0xff] }
  0xf3   : > { %3346 = vmatpush1.bf16.msra.mxu1 %v3345_v33  ;;  %2836 = vmatprep.subr.bf16.mxu0 %v2835_v34  ;;  %v517_v33 = vld [vmem:[%s4443_s5 + $0x680] sm:$0xff]  ;;  %v564_v26 = vld [vmem:[%s4443_s5 + $0x7f8] sm:$0xff]  ;;  %v595_v22 = vld [vmem:[%s4443_s5 + $0x8f0] sm:$0xff] }
  0xf4   : > { %3348 = vmatprep.subr.bf16.mxu1 %v3347_v38  ;;  %v521_v34 = vld [vmem:[%s4443_s5 + $0x6a0] sm:$0xff]  ;;  %v526_v38 = vld [vmem:[%s4443_s5 + $0x6c8] sm:$0xff]  ;;  %v624_v2 = vld [vmem:[%s4443_s5 + $0x9d8] sm:$0xff] }
  0xf5   : > { %v2857_v42 = vpack.c.bf16 %v521_v34, %v517_v33  ;;  %v559_v33 = vld [vmem:[%s4443_s5 + $0x7d0] sm:$0xff]  ;;  %v3387_v34 = vpack.c.bf16 %v564_v26, %v560_v25  ;;  %v600_v25 = vld [vmem:[%s4443_s5 + $0x918] sm:$0xff] }
  0xf6   : > { %2838 = vmatpush1.bf16.msra.mxu0 %v2837_v46  ;;  %v2859_v46 = vpack.c.bf16 %v530_v39, %v526_v38  ;;  %v568_v38 = vld [vmem:[%s4443_s5 + $0x818] sm:$0xff]  ;;  %v3389_v41 = vpack.c.bf16 %v563_v35, %v559_v33  ;;  %v599_v33 = vld [vmem:[%s4443_s5 + $0x910] sm:$0xff] }
  0xf7   : > { %3350 = vmatpush1.bf16.msra.mxu1 %v3349_v47  ;;  %2840 = vmatprep.subr.bf16.mxu0 %v2839_v48  ;;  %v525_v47 = vld [vmem:[%s4443_s5 + $0x6c0] sm:$0xff]  ;;  %v572_v39 = vld [vmem:[%s4443_s5 + $0x838] sm:$0xff]  ;;  %v603_v35 = vld [vmem:[%s4443_s5 + $0x930] sm:$0xff] }
  0xf8   : > { %3352 = vmatprep.subr.bf16.mxu1 %v3351_v52  ;;  %v529_v48 = vld [vmem:[%s4443_s5 + $0x6e0] sm:$0xff]  ;;  %v534_v52 = vld [vmem:[%s4443_s5 + $0x708] sm:$0xff]  ;;  %v604_v26 = vld [vmem:[%s4443_s5 + $0x938] sm:$0xff] }
  0xf9   : > { %v2861_v56 = vpack.c.bf16 %v529_v48, %v525_v47  ;;  %v567_v47 = vld [vmem:[%s4443_s5 + $0x810] sm:$0xff]  ;;  %v3391_v48 = vpack.c.bf16 %v572_v39, %v568_v38  ;;  %v608_v38 = vld [vmem:[%s4443_s5 + $0x958] sm:$0xff] }
  0xfa   : > { %2842 = vmatpush1.bf16.msra.mxu0 %v2841_v58  ;;  %v2863_v58 = vpack.c.bf16 %v538_v53, %v534_v52  ;;  %v576_v52 = vld [vmem:[%s4443_s5 + $0x858] sm:$0xff] }
  0xfb   : > { %3354 = vmatpush1.bf16.msra.mxu1 %v3353_v59  ;;  %2844 = vmatprep.subr.bf16.mxu0 %v2843_v60  ;;  %v533_v59 = vld [vmem:[%s4443_s5 + $0x700] sm:$0xff]  ;;  %v580_v53 = vld [vmem:[%s4443_s5 + $0x878] sm:$0xff] }
  0xfc   : > { %3356 = vmatprep.subr.bf16.mxu1 %v3355_v0  ;;  %v537_v60 = vld [vmem:[%s4443_s5 + $0x720] sm:$0xff]  ;;  %v542_v0 = vld [vmem:[%s4443_s5 + $0x748] sm:$0xff]  ;;  %v612_v39 = vld [vmem:[%s4443_s5 + $0x978] sm:$0xff] }
  0xfd   : > { %v2865_v4 = vpack.c.bf16 %v537_v60, %v533_v59  ;;  %v577_v59 = vld [vmem:[%s4443_s5 + $0x860] sm:$0xff]  ;;  %v575_v60 = vld [vmem:[%s4443_s5 + $0x850] sm:$0xff]  ;;  %v628_v3 = vld [vmem:[%s4443_s5 + $0x9f8] sm:$0xff] }
  0xfe   : > { %2846 = vmatpush1.bf16.msra.mxu0 %v2845_v45  ;;  %v2867_v45 = vpack.c.bf16 %v546_v1, %v542_v0  ;;  %v582_v0 = vld [vmem:[%s4443_s5 + $0x888] sm:$0xff] }
  0xff   : > { %3358 = vmatpush1.bf16.msra.mxu1 %v3357_v6  ;;  %2848 = vmatprep.subr.bf16.mxu0 %v2847_v7  ;;  %v541_v6 = vld [vmem:[%s4443_s5 + $0x740] sm:$0xff]  ;;  %v586_v1 = vld [vmem:[%s4443_s5 + $0x8a8] sm:$0xff] }
 0x100   : > { %3360 = vmatprep.subr.bf16.mxu1 %v3359_v11  ;;  %v545_v7 = vld [vmem:[%s4443_s5 + $0x760] sm:$0xff]  ;;  %v550_v11 = vld [vmem:[%s4443_s5 + $0x788] sm:$0xff] }
 0x101   : > { %v2869_v15 = vpack.c.bf16 %v545_v7, %v541_v6  ;;  %v2887_v6 = vpack.c.bf16 %v586_v1, %v582_v0  ;;  %v581_v7 = vld [vmem:[%s4443_s5 + $0x880] sm:$0xff]  ;;  %v622_v0 = vld [vmem:[%s4443_s5 + $0x9c8] sm:$0xff] }
 0x102   : > { %2850 = vmatpush1.bf16.msra.mxu0 %v2849_v17  ;;  %v2871_v17 = vpack.c.bf16 %v554_v12, %v550_v11  ;;  %v587_v11 = vld [vmem:[%s4443_s5 + $0x8b0] sm:$0xff]  ;;  %v590_v12 = vld [vmem:[%s4443_s5 + $0x8c8] sm:$0xff] }
 0x103   : > { %3362 = vmatpush1.bf16.msra.mxu1 %v3361_v18  ;;  %2852 = vmatprep.subr.bf16.mxu0 %v2851_v19  ;;  %v549_v18 = vld [vmem:[%s4443_s5 + $0x780] sm:$0xff]  ;;  %v626_v1 = vld [vmem:[%s4443_s5 + $0x9e8] sm:$0xff] }
 0x104   : > { %3364 = vmatprep.subr.bf16.mxu1 %v3363_v23  ;;  %v553_v19 = vld [vmem:[%s4443_s5 + $0x7a0] sm:$0xff]  ;;  %v558_v23 = vld [vmem:[%s4443_s5 + $0x7c8] sm:$0xff] }
 0x105   : > { %v2873_v27 = vpack.c.bf16 %v553_v19, %v549_v18  ;;  %v589_v18 = vld [vmem:[%s4443_s5 + $0x8c0] sm:$0xff] }
 0x106   : > { %2854 = vmatpush1.bf16.msra.mxu0 %v2853_v29  ;;  %v2875_v29 = vpack.c.bf16 %v562_v24, %v558_v23  ;;  %v593_v19 = vld [vmem:[%s4443_s5 + $0x8e0] sm:$0xff]  ;;  %v598_v23 = vld [vmem:[%s4443_s5 + $0x908] sm:$0xff] }
 0x107   : > { %3366 = vmatpush1.bf16.msra.mxu1 %v3365_v30  ;;  %2856 = vmatprep.subr.bf16.mxu0 %v2855_v32  ;;  %v557_v30 = vld [vmem:[%s4443_s5 + $0x7c0] sm:$0xff]  ;;  %v602_v24 = vld [vmem:[%s4443_s5 + $0x928] sm:$0xff] }
 0x108   : > { %3368 = vmatprep.subr.bf16.mxu1 %v3367_v36  ;;  %v561_v32 = vld [vmem:[%s4443_s5 + $0x7e0] sm:$0xff]  ;;  %v566_v36 = vld [vmem:[%s4443_s5 + $0x808] sm:$0xff] }
 0x109   : > { %v2877_v40 = vpack.c.bf16 %v561_v32, %v557_v30  ;;  %v597_v30 = vld [vmem:[%s4443_s5 + $0x900] sm:$0xff] }
 0x10a   : > { %2858 = vmatpush1.bf16.msra.mxu0 %v2857_v42  ;;  %v2879_v42 = vpack.c.bf16 %v570_v37, %v566_v36  ;;  %v601_v32 = vld [vmem:[%s4443_s5 + $0x920] sm:$0xff]  ;;  %v606_v36 = vld [vmem:[%s4443_s5 + $0x948] sm:$0xff] }
 0x10b   : > { %3370 = vmatpush1.bf16.msra.mxu1 %v3369_v44  ;;  %2860 = vmatprep.subr.bf16.mxu0 %v2859_v46  ;;  %v565_v44 = vld [vmem:[%s4443_s5 + $0x800] sm:$0xff]  ;;  %v610_v37 = vld [vmem:[%s4443_s5 + $0x968] sm:$0xff] }
 0x10c   : > { %3372 = vmatprep.subr.bf16.mxu1 %v3371_v50  ;;  %v569_v46 = vld [vmem:[%s4443_s5 + $0x820] sm:$0xff]  ;;  %v574_v50 = vld [vmem:[%s4443_s5 + $0x848] sm:$0xff] }
 0x10d   : > { %v2881_v54 = vpack.c.bf16 %v569_v46, %v565_v44  ;;  %v605_v44 = vld [vmem:[%s4443_s5 + $0x940] sm:$0xff] }
 0x10e   : > { %2862 = vmatpush1.bf16.msra.mxu0 %v2861_v56  ;;  %v3393_v56 = vpack.c.bf16 %v571_v49, %v567_v47  ;;  %v609_v46 = vld [vmem:[%s4443_s5 + $0x960] sm:$0xff]  ;;  %v607_v47 = vld [vmem:[%s4443_s5 + $0x950] sm:$0xff] }
 0x10f   : > { %3374 = vmatpush1.bf16.msra.mxu1 %v3373_v57  ;;  %2864 = vmatprep.subr.bf16.mxu0 %v2863_v58  ;;  %v2883_v57 = vpack.c.bf16 %v578_v51, %v574_v50  ;;  %v573_v58 = vld [vmem:[%s4443_s5 + $0x840] sm:$0xff]  ;;  %v611_v49 = vld [vmem:[%s4443_s5 + $0x970] sm:$0xff]  ;;  %v614_v50 = vld [vmem:[%s4443_s5 + $0x988] sm:$0xff] }
 0x110   : > { %3376 = vmatprep.subr.bf16.mxu1 %v3375_v62  ;;  %v3395_v62 = vpack.c.bf16 %v580_v53, %v576_v52  ;;  %v618_v51 = vld [vmem:[%s4443_s5 + $0x9a8] sm:$0xff]  ;;  %v616_v52 = vld [vmem:[%s4443_s5 + $0x998] sm:$0xff] }
 0x111   : > { %v620_v53 = vld [vmem:[%s4443_s5 + $0x9b8] sm:$0xff] }
 0x112   : > { %2866 = vmatpush1.bf16.msra.mxu0 %v2865_v4  ;;  %v1369_v4 = vcombine.high %v4766_v61, %v4766_v61 }
 0x113   : > { %3378 = vmatpush1.bf16.msra.mxu1 %v3377_v5  ;;  %2868 = vmatprep.subr.bf16.mxu0 %v2867_v45  ;;  %v2885_v5 = vpack.c.bf16 %v577_v59, %v573_v58  ;;  %v3397_v45 = vpack.c.bf16 %v579_v63, %v575_v60  ;;  %v613_v58 = vld [vmem:[%s4443_s5 + $0x980] sm:$0xff]  ;;  %v615_v60 = vld [vmem:[%s4443_s5 + $0x990] sm:$0xff] }
 0x114   : > { %3380 = vmatprep.subr.bf16.mxu1 %v3379_v9  ;;  %v583_v9 = vld [vmem:[%s4443_s5 + $0x890] sm:$0xff]  ;;  %v617_v59 = vld [vmem:[%s4443_s5 + $0x9a0] sm:$0xff] }
 0x115   : > { %v619_v63 = vld [vmem:[%s4443_s5 + $0x9b0] sm:$0xff] }
 0x116   : > { %2870 = vmatpush1.bf16.msra.mxu0 %v2869_v15  ;;  %v2889_v15 = vpack.c.bf16 %v585_v8, %v581_v7  ;;  %v625_v7 = vld [vmem:[%s4443_s5 + $0x9e0] sm:$0xff]  ;;  %v623_v8 = vld [vmem:[%s4443_s5 + $0x9d0] sm:$0xff] }
 0x117   : > { %3382 = vmatpush1.bf16.msra.mxu1 %v3381_v16  ;;  %2872 = vmatprep.subr.bf16.mxu0 %v2871_v17  ;;  %v3401_v16 = vpack.c.bf16 %v587_v11, %v583_v9  ;;  %v2891_v17 = vpack.c.bf16 %v594_v13, %v590_v12  ;;  %v3419_v9 = vpack.c.bf16 %v628_v3, %v624_v2  ;;  %v630_v11 = vld [vmem:[%s4443_s5 + $0xa08] sm:$0xff]  ;;  %v632_v13 = vld [vmem:[%s4443_s5 + $0xa18] sm:$0xff] }
 0x118   : > { %3384 = vmatprep.subr.bf16.mxu1 %v3383_v21  ;;  %v634_v12 = vld [vmem:[%s4443_s5 + $0xa28] sm:$0xff]  ;;  %v668_v2 = vld [vmem:[%s4443_s5 + $0xb38] sm:$0xff] }
 0x11a   : > { %2874 = vmatpush1.bf16.msra.mxu0 %v2873_v27  ;;  %v2893_v27 = vpack.c.bf16 %v593_v19, %v589_v18  ;;  %v633_v18 = vld [vmem:[%s4443_s5 + $0xa20] sm:$0xff]  ;;  %v631_v19 = vld [vmem:[%s4443_s5 + $0xa10] sm:$0xff] }
 0x11b   : > { %3386 = vmatpush1.bf16.msra.mxu1 %v3385_v28  ;;  %2876 = vmatprep.subr.bf16.mxu0 %v2875_v29  ;;  %v3405_v28 = vpack.c.bf16 %v595_v22, %v591_v20  ;;  %v2895_v29 = vpack.c.bf16 %v602_v24, %v598_v23  ;;  %v638_v22 = vld [vmem:[%s4443_s5 + $0xa48] sm:$0xff]  ;;  %v640_v24 = vld [vmem:[%s4443_s5 + $0xa58] sm:$0xff] }
 0x11c   : > { %3388 = vmatprep.subr.bf16.mxu1 %v3387_v34  ;;  %v3407_v34 = vpack.c.bf16 %v604_v26, %v600_v25  ;;  %v642_v23 = vld [vmem:[%s4443_s5 + $0xa68] sm:$0xff]  ;;  %v644_v25 = vld [vmem:[%s4443_s5 + $0xa78] sm:$0xff] }
 0x11e   : > { %2878 = vmatpush1.bf16.msra.mxu0 %v2877_v40  ;;  %v2897_v40 = vpack.c.bf16 %v601_v32, %v597_v30  ;;  %v641_v30 = vld [vmem:[%s4443_s5 + $0xa60] sm:$0xff]  ;;  %v639_v32 = vld [vmem:[%s4443_s5 + $0xa50] sm:$0xff] }
 0x11f   : > { %3390 = vmatpush1.bf16.msra.mxu1 %v3389_v41  ;;  %2880 = vmatprep.subr.bf16.mxu0 %v2879_v42  ;;  %v3409_v41 = vpack.c.bf16 %v603_v35, %v599_v33  ;;  %v2899_v42 = vpack.c.bf16 %v610_v37, %v606_v36  ;;  %v3427_v33 = vpack.c.bf16 %v644_v25, %v640_v24  ;;  %v646_v35 = vld [vmem:[%s4443_s5 + $0xa88] sm:$0xff]  ;;  %v648_v37 = vld [vmem:[%s4443_s5 + $0xa98] sm:$0xff] }
 0x120   : > { %3392 = vmatprep.subr.bf16.mxu1 %v3391_v48  ;;  %v3411_v48 = vpack.c.bf16 %v612_v39, %v608_v38  ;;  %v650_v36 = vld [vmem:[%s4443_s5 + $0xaa8] sm:$0xff]  ;;  %v652_v38 = vld [vmem:[%s4443_s5 + $0xab8] sm:$0xff] }
 0x121   : > { %1557 = vmatmul.mubr.f32.vlgmr.msra.gmra.mrb[0].mxu0 %v4622_v43  ;;  %v684_v24 = vld [vmem:[%s4443_s5 + $0xbb8] sm:$0xff] }
 0x122   : > { %2882 = vmatpush1.bf16.msra.mxu0 %v2881_v54  ;;  %2125 = vmatmul.mubr.f32.vlgmr.msra.gmra.mrb[0].mxu1 %v4622_v43  ;;  %v592_v43 = vld [vmem:[%s4443_s5 + $0x8d8] sm:$0xff]  ;;  %v2901_v54 = vpack.c.bf16 %v609_v46, %v605_v44  ;;  %v649_v44 = vld [vmem:[%s4443_s5 + $0xaa0] sm:$0xff]  ;;  %v647_v46 = vld [vmem:[%s4443_s5 + $0xa90] sm:$0xff] }
 0x123   : > { %3394 = vmatpush1.bf16.msra.mxu1 %v3393_v56  ;;  %2884 = vmatprep.subr.bf16.mxu0 %v2883_v57  ;;  %v3403_v21 = vpack.c.bf16 %v596_v14, %v592_v43  ;;  %v3413_v56 = vpack.c.bf16 %v611_v49, %v607_v47  ;;  %v2903_v57 = vpack.c.bf16 %v618_v51, %v614_v50  ;;  %v636_v43 = vld [vmem:[%s4443_s5 + $0xa38] sm:$0xff]  ;;  %v654_v49 = vld [vmem:[%s4443_s5 + $0xac8] sm:$0xff] }
 0x124   : > { %3396 = vmatprep.subr.bf16.mxu1 %v3395_v62  ;;  %1627 = vmatprep.mubr.f32.mxu0 %v1369_v4  ;;  %v3415_v62 = vpack.c.bf16 %v620_v53, %v616_v52  ;;  %v3423_v20 = vpack.c.bf16 %v636_v43, %v632_v13  ;;  %v3431_v47 = vpack.c.bf16 %v652_v38, %v648_v37  ;;  %v658_v50 = vld [vmem:[%s4443_s5 + $0xae8] sm:$0xff]  ;;  %v656_v51 = vld [vmem:[%s4443_s5 + $0xad8] sm:$0xff] }
 0x125   : > { %2195 = vmatprep.mubr.f32.mxu1 %v1369_v4  ;;  %v2905_v4 = vpack.c.bf16 %v617_v59, %v613_v58  ;;  %v660_v52 = vld [vmem:[%s4443_s5 + $0xaf8] sm:$0xff]  ;;  %v657_v58 = vld [vmem:[%s4443_s5 + $0xae0] sm:$0xff]  ;;  %v655_v59 = vld [vmem:[%s4443_s5 + $0xad0] sm:$0xff] }
 0x126   : > { %2886 = vmatpush1.bf16.msra.mxu0 %v2885_v5  ;;  %v3417_v5 = vpack.c.bf16 %v619_v63, %v615_v60  ;;  %v3435_v60 = vpack.c.bf16 %v660_v52, %v656_v51  ;;  %v662_v63 = vld [vmem:[%s4443_s5 + $0xb08] sm:$0xff]  ;;  %v676_v13 = vld [vmem:[%s4443_s5 + $0xb78] sm:$0xff] }
 0x127   : > { %3398 = vmatpush1.bf16.msra.mxu1 %v3397_v45  ;;  %2888 = vmatprep.subr.bf16.mxu0 %v2887_v6  ;;  %v2907_v45 = vpack.c.bf16 %v626_v1, %v622_v0  ;;  %v621_v6 = vld [vmem:[%s4443_s5 + $0x9c0] sm:$0xff]  ;;  %v666_v0 = vld [vmem:[%s4443_s5 + $0xb28] sm:$0xff]  ;;  %v664_v1 = vld [vmem:[%s4443_s5 + $0xb18] sm:$0xff] }
 0x128   : > { %3400 = vmatprep.subr.bf16.mxu1 %v3399_v10  ;;  %v627_v10 = vld [vmem:[%s4443_s5 + $0x9f0] sm:$0xff]  ;;  %v2909_v14 = vpack.c.bf16 %v625_v7, %v621_v6  ;;  %v665_v6 = vld [vmem:[%s4443_s5 + $0xb20] sm:$0xff]  ;;  %v692_v37 = vld [vmem:[%s4443_s5 + $0xbf8] sm:$0xff] }
 0x129   : > { %v663_v7 = vld [vmem:[%s4443_s5 + $0xb10] sm:$0xff]  ;;  %v696_v51 = vld [vmem:[%s4443_s5 + $0xc18] sm:$0xff] }
 0x12a   : > { %2890 = vmatpush1.bf16.msra.mxu0 %v2889_v15  ;;  %v3421_v15 = vpack.c.bf16 %v627_v10, %v623_v8  ;;  %v3439_v8 = vpack.c.bf16 %v668_v2, %v664_v1  ;;  %v670_v10 = vld [vmem:[%s4443_s5 + $0xb48] sm:$0xff]  ;;  %v700_v52 = vld [vmem:[%s4443_s5 + $0xc38] sm:$0xff] }
 0x12b   : > { %3402 = vmatpush1.bf16.msra.mxu1 %v3401_v16  ;;  %2892 = vmatprep.subr.bf16.mxu0 %v2891_v17  ;;  %v2911_v16 = vpack.c.bf16 %v634_v12, %v630_v11  ;;  %v629_v17 = vld [vmem:[%s4443_s5 + $0xa00] sm:$0xff]  ;;  %v674_v11 = vld [vmem:[%s4443_s5 + $0xb68] sm:$0xff]  ;;  %v672_v12 = vld [vmem:[%s4443_s5 + $0xb58] sm:$0xff] }
 0x12c   : > { %3404 = vmatprep.subr.bf16.mxu1 %v3403_v21  ;;  %v635_v21 = vld [vmem:[%s4443_s5 + $0xa30] sm:$0xff]  ;;  %v2913_v26 = vpack.c.bf16 %v633_v18, %v629_v17  ;;  %v673_v17 = vld [vmem:[%s4443_s5 + $0xb60] sm:$0xff]  ;;  %v704_v1 = vld [vmem:[%s4443_s5 + $0xc58] sm:$0xff] }
 0x12d   : > { %v671_v18 = vld [vmem:[%s4443_s5 + $0xb50] sm:$0xff]  ;;  %v708_v2 = vld [vmem:[%s4443_s5 + $0xc78] sm:$0xff] }
 0x12e   : > { %2894 = vmatpush1.bf16.msra.mxu0 %v2893_v27  ;;  %v3425_v27 = vpack.c.bf16 %v635_v21, %v631_v19  ;;  %v3443_v19 = vpack.c.bf16 %v676_v13, %v672_v12  ;;  %v678_v21 = vld [vmem:[%s4443_s5 + $0xb88] sm:$0xff]  ;;  %v712_v13 = vld [vmem:[%s4443_s5 + $0xc98] sm:$0xff] }
 0x12f   : > { %3406 = vmatpush1.bf16.msra.mxu1 %v3405_v28  ;;  %2896 = vmatprep.subr.bf16.mxu0 %v2895_v29  ;;  %v2915_v28 = vpack.c.bf16 %v642_v23, %v638_v22  ;;  %v637_v29 = vld [vmem:[%s4443_s5 + $0xa40] sm:$0xff]  ;;  %v682_v22 = vld [vmem:[%s4443_s5 + $0xba8] sm:$0xff]  ;;  %v680_v23 = vld [vmem:[%s4443_s5 + $0xb98] sm:$0xff] }
 0x130   : > { %3408 = vmatprep.subr.bf16.mxu1 %v3407_v34  ;;  %v643_v34 = vld [vmem:[%s4443_s5 + $0xa70] sm:$0xff]  ;;  %v2917_v39 = vpack.c.bf16 %v641_v30, %v637_v29  ;;  %v681_v29 = vld [vmem:[%s4443_s5 + $0xba0] sm:$0xff] }
 0x131   : > { %v679_v30 = vld [vmem:[%s4443_s5 + $0xb90] sm:$0xff] }
 0x132   : > { %2898 = vmatpush1.bf16.msra.mxu0 %v2897_v40  ;;  %v3429_v40 = vpack.c.bf16 %v643_v34, %v639_v32  ;;  %v3447_v32 = vpack.c.bf16 %v684_v24, %v680_v23  ;;  %v686_v34 = vld [vmem:[%s4443_s5 + $0xbc8] sm:$0xff]  ;;  %v724_v24 = vld [vmem:[%s4443_s5 + $0xcf8] sm:$0xff] }
 0x133   : > { %3410 = vmatpush1.bf16.msra.mxu1 %v3409_v41  ;;  %2900 = vmatprep.subr.bf16.mxu0 %v2899_v42  ;;  %v2919_v41 = vpack.c.bf16 %v650_v36, %v646_v35  ;;  %v645_v42 = vld [vmem:[%s4443_s5 + $0xa80] sm:$0xff]  ;;  %v690_v35 = vld [vmem:[%s4443_s5 + $0xbe8] sm:$0xff]  ;;  %v688_v36 = vld [vmem:[%s4443_s5 + $0xbd8] sm:$0xff] }
 0x134   : > { %3412 = vmatprep.subr.bf16.mxu1 %v3411_v48  ;;  %v651_v48 = vld [vmem:[%s4443_s5 + $0xab0] sm:$0xff]  ;;  %v2921_v53 = vpack.c.bf16 %v649_v44, %v645_v42  ;;  %v689_v42 = vld [vmem:[%s4443_s5 + $0xbe0] sm:$0xff]  ;;  %v722_v23 = vld [vmem:[%s4443_s5 + $0xce8] sm:$0xff] }
 0x135   : > { %v687_v44 = vld [vmem:[%s4443_s5 + $0xbd0] sm:$0xff] }
 0x136   : > { %2902 = vmatpush1.bf16.msra.mxu0 %v2901_v54  ;;  %v3433_v54 = vpack.c.bf16 %v651_v48, %v647_v46  ;;  %v3451_v46 = vpack.c.bf16 %v692_v37, %v688_v36  ;;  %v694_v48 = vld [vmem:[%s4443_s5 + $0xc08] sm:$0xff]  ;;  %v728_v36 = vld [vmem:[%s4443_s5 + $0xd18] sm:$0xff] }
 0x137   : > { %3414 = vmatpush1.bf16.msra.mxu1 %v3413_v56  ;;  %2904 = vmatprep.subr.bf16.mxu0 %v2903_v57  ;;  %v2923_v56 = vpack.c.bf16 %v658_v50, %v654_v49  ;;  %v653_v57 = vld [vmem:[%s4443_s5 + $0xac0] sm:$0xff]  ;;  %v698_v49 = vld [vmem:[%s4443_s5 + $0xc28] sm:$0xff]  ;;  %v1354_v50 = vcombine.high %v4759_v55, %v4759_v55  ;;  %v699_v55 = vld [vmem:[%s4443_s5 + $0xc30] sm:$0xff] }
 0x138   : > { %3416 = vmatprep.subr.bf16.mxu1 %v3415_v62  ;;  %v659_v62 = vld [vmem:[%s4443_s5 + $0xaf0] sm:$0xff]  ;;  %v2925_v3 = vpack.c.bf16 %v657_v58, %v653_v57  ;;  %v693_v57 = vld [vmem:[%s4443_s5 + $0xc00] sm:$0xff]  ;;  %v732_v37 = vld [vmem:[%s4443_s5 + $0xd38] sm:$0xff] }
 0x139   : > { %v697_v58 = vld [vmem:[%s4443_s5 + $0xc20] sm:$0xff] }
 0x13a   : > { %2906 = vmatpush1.bf16.msra.mxu0 %v2905_v4  ;;  %v3437_v4 = vpack.c.bf16 %v659_v62, %v655_v59  ;;  %v695_v59 = vld [vmem:[%s4443_s5 + $0xc10] sm:$0xff]  ;;  %v702_v62 = vld [vmem:[%s4443_s5 + $0xc48] sm:$0xff] }
 0x13b   : > { %3418 = vmatpush1.bf16.msra.mxu1 %v3417_v5  ;;  %2908 = vmatprep.subr.bf16.mxu0 %v2907_v45  ;;  %v2927_v5 = vpack.c.bf16 %v666_v0, %v662_v63  ;;  %v661_v45 = vld [vmem:[%s4443_s5 + $0xb00] sm:$0xff]  ;;  %v706_v63 = vld [vmem:[%s4443_s5 + $0xc68] sm:$0xff]  ;;  %v4898_v0 = vrot.slane %v1354_v50, %v4558_v31  ;;  %v736_v50 = vld [vmem:[%s4443_s5 + $0xd58] sm:$0xff] }
 0x13c   : > { %3420 = vmatprep.subr.bf16.mxu1 %v3419_v9  ;;  %v667_v9 = vld [vmem:[%s4443_s5 + $0xb30] sm:$0xff]  ;;  %v2929_v43 = vpack.c.bf16 %v665_v6, %v661_v45  ;;  %v701_v45 = vld [vmem:[%s4443_s5 + $0xc40] sm:$0xff] }
 0x13d   : > { %v705_v6 = vld [vmem:[%s4443_s5 + $0xc60] sm:$0xff]  ;;  %v1370_v12 = vcombine.high %v4898_v0, %v4898_v0 }
 0x13e   : > { %2910 = vmatpush1.bf16.msra.mxu0 %v2909_v14  ;;  %v3441_v14 = vpack.c.bf16 %v667_v9, %v663_v7  ;;  %v703_v7 = vld [vmem:[%s4443_s5 + $0xc50] sm:$0xff] }
 0x13f   : > { %3422 = vmatpush1.bf16.msra.mxu1 %v3421_v15  ;;  %2912 = vmatprep.subr.bf16.mxu0 %v2911_v16  ;;  %v2931_v15 = vpack.c.bf16 %v674_v11, %v670_v10  ;;  %v669_v16 = vld [vmem:[%s4443_s5 + $0xb40] sm:$0xff]  ;;  %v707_v9 = vld [vmem:[%s4443_s5 + $0xc70] sm:$0xff]  ;;  %v710_v10 = vld [vmem:[%s4443_s5 + $0xc88] sm:$0xff] }
 0x140   : > { %3424 = vmatprep.subr.bf16.mxu1 %v3423_v20  ;;  %v675_v20 = vld [vmem:[%s4443_s5 + $0xb70] sm:$0xff]  ;;  %v2933_v25 = vpack.c.bf16 %v673_v17, %v669_v16  ;;  %v714_v11 = vld [vmem:[%s4443_s5 + $0xca8] sm:$0xff]  ;;  %v709_v17 = vld [vmem:[%s4443_s5 + $0xc80] sm:$0xff] }
 0x141   : > { %v2951_v16 = vpack.c.bf16 %v714_v11, %v710_v10  ;;  %v754_v10 = vld [vmem:[%s4443_s5 + $0xde8] sm:$0xff]  ;;  %v752_v11 = vld [vmem:[%s4443_s5 + $0xdd8] sm:$0xff] }
 0x142   : > { %2914 = vmatpush1.bf16.msra.mxu0 %v2913_v26  ;;  %v3445_v26 = vpack.c.bf16 %v675_v20, %v671_v18  ;;  %v713_v18 = vld [vmem:[%s4443_s5 + $0xca0] sm:$0xff] }
 0x143   : > { %3426 = vmatpush1.bf16.msra.mxu1 %v3425_v27  ;;  %2916 = vmatprep.subr.bf16.mxu0 %v2915_v28  ;;  %v2935_v27 = vpack.c.bf16 %v682_v22, %v678_v21  ;;  %v677_v28 = vld [vmem:[%s4443_s5 + $0xb80] sm:$0xff]  ;;  %v715_v21 = vld [vmem:[%s4443_s5 + $0xcb0] sm:$0xff]  ;;  %v718_v22 = vld [vmem:[%s4443_s5 + $0xcc8] sm:$0xff] }
 0x144   : > { %3428 = vmatprep.subr.bf16.mxu1 %v3427_v33  ;;  %v683_v33 = vld [vmem:[%s4443_s5 + $0xbb0] sm:$0xff]  ;;  %v2937_v38 = vpack.c.bf16 %v681_v29, %v677_v28  ;;  %v717_v28 = vld [vmem:[%s4443_s5 + $0xcc0] sm:$0xff] }
 0x145   : > { %v721_v29 = vld [vmem:[%s4443_s5 + $0xce0] sm:$0xff] }
 0x146   : > { %2918 = vmatpush1.bf16.msra.mxu0 %v2917_v39  ;;  %v3449_v39 = vpack.c.bf16 %v683_v33, %v679_v30  ;;  %v719_v30 = vld [vmem:[%s4443_s5 + $0xcd0] sm:$0xff] }
 0x147   : > { %3430 = vmatpush1.bf16.msra.mxu1 %v3429_v40  ;;  %2920 = vmatprep.subr.bf16.mxu0 %v2919_v41  ;;  %v2939_v40 = vpack.c.bf16 %v690_v35, %v686_v34  ;;  %v685_v41 = vld [vmem:[%s4443_s5 + $0xbc0] sm:$0xff]  ;;  %v723_v33 = vld [vmem:[%s4443_s5 + $0xcf0] sm:$0xff]  ;;  %v726_v34 = vld [vmem:[%s4443_s5 + $0xd08] sm:$0xff] }
 0x148   : > { %3432 = vmatprep.subr.bf16.mxu1 %v3431_v47  ;;  %v691_v47 = vld [vmem:[%s4443_s5 + $0xbf0] sm:$0xff]  ;;  %v730_v35 = vld [vmem:[%s4443_s5 + $0xd28] sm:$0xff] }
 0x14a   : > { %2922 = vmatpush1.bf16.msra.mxu0 %v2921_v53  ;;  %v2941_v53 = vpack.c.bf16 %v689_v42, %v685_v41  ;;  %v725_v41 = vld [vmem:[%s4443_s5 + $0xd00] sm:$0xff] }
 0x14b   : > { %3434 = vmatpush1.bf16.msra.mxu1 %v3433_v54  ;;  %2924 = vmatprep.subr.bf16.mxu0 %v2923_v56  ;;  %v3453_v54 = vpack.c.bf16 %v691_v47, %v687_v44  ;;  %v2943_v56 = vpack.c.bf16 %v698_v49, %v694_v48  ;;  %v729_v42 = vld [vmem:[%s4443_s5 + $0xd20] sm:$0xff]  ;;  %v727_v44 = vld [vmem:[%s4443_s5 + $0xd10] sm:$0xff]  ;;  %v734_v48 = vld [vmem:[%s4443_s5 + $0xd48] sm:$0xff] }
 0x14c   : > { %3436 = vmatprep.subr.bf16.mxu1 %v3435_v60  ;;  %v3455_v60 = vpack.c.bf16 %v700_v52, %v696_v51  ;;  %v731_v47 = vld [vmem:[%s4443_s5 + $0xd30] sm:$0xff]  ;;  %v738_v49 = vld [vmem:[%s4443_s5 + $0xd68] sm:$0xff]  ;;  %v740_v51 = vld [vmem:[%s4443_s5 + $0xd78] sm:$0xff]  ;;  %v2961_v52 = vpack.c.bf16 %v729_v42, %v725_v41 }
 0x14d   : > { %v767_v41 = vld [vmem:[%s4443_s5 + $0xe50] sm:$0xff] }
 0x14e   : > { %2926 = vmatpush1.bf16.msra.mxu0 %v2925_v3  ;;  %v2945_v3 = vpack.c.bf16 %v697_v58, %v693_v57  ;;  %v737_v57 = vld [vmem:[%s4443_s5 + $0xd60] sm:$0xff]  ;;  %v735_v58 = vld [vmem:[%s4443_s5 + $0xd50] sm:$0xff] }
 0x14f   : > { %3438 = vmatpush1.bf16.msra.mxu1 %v3437_v4  ;;  %2928 = vmatprep.subr.bf16.mxu0 %v2927_v5  ;;  %v3457_v4 = vpack.c.bf16 %v699_v55, %v695_v59  ;;  %v2947_v5 = vpack.c.bf16 %v706_v63, %v702_v62  ;;  %v3475_v59 = vpack.c.bf16 %v740_v51, %v736_v50  ;;  %v742_v55 = vld [vmem:[%s4443_s5 + $0xd88] sm:$0xff]  ;;  %v744_v63 = vld [vmem:[%s4443_s5 + $0xd98] sm:$0xff] }
 0x150   : > { %3440 = vmatprep.subr.bf16.mxu1 %v3439_v8  ;;  %v3459_v8 = vpack.c.bf16 %v708_v2, %v704_v1  ;;  %v746_v62 = vld [vmem:[%s4443_s5 + $0xda8] sm:$0xff]  ;;  %v748_v1 = vld [vmem:[%s4443_s5 + $0xdb8] sm:$0xff] }
 0x152   : > { %2930 = vmatpush1.bf16.msra.mxu0 %v2929_v43  ;;  %v716_v43 = vld [vmem:[%s4443_s5 + $0xcb8] sm:$0xff] }
 0x153   : > { %3442 = vmatpush1.bf16.msra.mxu1 %v3441_v14  ;;  %2932 = vmatprep.subr.bf16.mxu0 %v2931_v15  ;;  %v2949_v14 = vpack.c.bf16 %v705_v6, %v701_v45  ;;  %v3461_v15 = vpack.c.bf16 %v707_v9, %v703_v7  ;;  %v3463_v20 = vpack.c.bf16 %v716_v43, %v712_v13  ;;  %v745_v45 = vld [vmem:[%s4443_s5 + $0xda0] sm:$0xff]  ;;  %v743_v6 = vld [vmem:[%s4443_s5 + $0xd90] sm:$0xff]  ;;  %v750_v9 = vld [vmem:[%s4443_s5 + $0xdc8] sm:$0xff] }
 0x154   : > { %3444 = vmatprep.subr.bf16.mxu1 %v3443_v19  ;;  %v711_v19 = vld [vmem:[%s4443_s5 + $0xc90] sm:$0xff]  ;;  %v3479_v7 = vpack.c.bf16 %v748_v1, %v744_v63 }
 0x156   : > { %2934 = vmatpush1.bf16.msra.mxu0 %v2933_v25  ;;  %v2953_v25 = vpack.c.bf16 %v713_v18, %v709_v17  ;;  %v751_v17 = vld [vmem:[%s4443_s5 + $0xdd0] sm:$0xff] }
 0x157   : > { %3446 = vmatpush1.bf16.msra.mxu1 %v3445_v26  ;;  %2936 = vmatprep.subr.bf16.mxu0 %v2935_v27  ;;  %v3465_v26 = vpack.c.bf16 %v715_v21, %v711_v19  ;;  %v2955_v27 = vpack.c.bf16 %v722_v23, %v718_v22  ;;  %v755_v19 = vld [vmem:[%s4443_s5 + $0xdf0] sm:$0xff]  ;;  %v762_v21 = vld [vmem:[%s4443_s5 + $0xe28] sm:$0xff]  ;;  %v760_v22 = vld [vmem:[%s4443_s5 + $0xe18] sm:$0xff] }
 0x158   : > { %3448 = vmatprep.subr.bf16.mxu1 %v3447_v32  ;;  %v764_v23 = vld [vmem:[%s4443_s5 + $0xe38] sm:$0xff] }
 0x15a   : > { %2938 = vmatpush1.bf16.msra.mxu0 %v2937_v38  ;;  %v2957_v38 = vpack.c.bf16 %v721_v29, %v717_v28  ;;  %v759_v28 = vld [vmem:[%s4443_s5 + $0xe10] sm:$0xff]  ;;  %v3487_v29 = vpack.c.bf16 %v764_v23, %v760_v22 }
 0x15b   : > { %3450 = vmatpush1.bf16.msra.mxu1 %v3449_v39  ;;  %2940 = vmatprep.subr.bf16.mxu0 %v2939_v40  ;;  %v3469_v39 = vpack.c.bf16 %v723_v33, %v719_v30  ;;  %v2959_v40 = vpack.c.bf16 %v730_v35, %v726_v34  ;;  %v763_v30 = vld [vmem:[%s4443_s5 + $0xe30] sm:$0xff]  ;;  %v770_v33 = vld [vmem:[%s4443_s5 + $0xe68] sm:$0xff]  ;;  %v768_v34 = vld [vmem:[%s4443_s5 + $0xe58] sm:$0xff] }
 0x15c   : > { %3452 = vmatprep.subr.bf16.mxu1 %v3451_v46  ;;  %v3471_v46 = vpack.c.bf16 %v732_v37, %v728_v36  ;;  %v772_v35 = vld [vmem:[%s4443_s5 + $0xe78] sm:$0xff]  ;;  %v3489_v37 = vpack.c.bf16 %v763_v30, %v759_v28  ;;  %v803_v28 = vld [vmem:[%s4443_s5 + $0xf70] sm:$0xff]  ;;  %v810_v30 = vld [vmem:[%s4443_s5 + $0xfa8] sm:$0xff] }
 0x15d   : > { %v3491_v42 = vpack.c.bf16 %v772_v35, %v768_v34 }
 0x15e   : > { %2942 = vmatpush1.bf16.msra.mxu0 %v2941_v53  ;;  %v3473_v53 = vpack.c.bf16 %v731_v47, %v727_v44  ;;  %v771_v44 = vld [vmem:[%s4443_s5 + $0xe70] sm:$0xff]  ;;  %v778_v47 = vld [vmem:[%s4443_s5 + $0xea8] sm:$0xff] }
 0x15f   : > { %3454 = vmatpush1.bf16.msra.mxu1 %v3453_v54  ;;  %2944 = vmatprep.subr.bf16.mxu0 %v2943_v56  ;;  %v2963_v54 = vpack.c.bf16 %v738_v49, %v734_v48  ;;  %v733_v56 = vld [vmem:[%s4443_s5 + $0xd40] sm:$0xff]  ;;  %v776_v48 = vld [vmem:[%s4443_s5 + $0xe98] sm:$0xff]  ;;  %v3493_v51 = vpack.c.bf16 %v771_v44, %v767_v41  ;;  %v811_v41 = vld [vmem:[%s4443_s5 + $0xfb0] sm:$0xff] }
 0x160   : > { %3456 = vmatprep.subr.bf16.mxu1 %v3455_v60  ;;  %v739_v60 = vld [vmem:[%s4443_s5 + $0xd70] sm:$0xff]  ;;  %v2965_v2 = vpack.c.bf16 %v737_v57, %v733_v56  ;;  %v780_v49 = vld [vmem:[%s4443_s5 + $0xeb8] sm:$0xff]  ;;  %v818_v44 = vld [vmem:[%s4443_s5 + $0xfe8] sm:$0xff] }
 0x161   : > { %1628 = vmatmul.mubr.f32.vlgmr.msra.gmra.mrb[0].mxu0 %v4766_v61  ;;  %v775_v56 = vld [vmem:[%s4443_s5 + $0xe90] sm:$0xff]  ;;  %v3495_v57 = vpack.c.bf16 %v780_v49, %v776_v48 }
 0x162   : > { %2946 = vmatpush1.bf16.msra.mxu0 %v2945_v3  ;;  %2196 = vmatmul.mubr.f32.vlgmr.msra.gmra.mrb[0].mxu1 %v4766_v61  ;;  %v720_v61 = vld [vmem:[%s4443_s5 + $0xcd8] sm:$0xff]  ;;  %v3477_v3 = vpack.c.bf16 %v739_v60, %v735_v58  ;;  %v779_v58 = vld [vmem:[%s4443_s5 + $0xeb0] sm:$0xff]  ;;  %v786_v60 = vld [vmem:[%s4443_s5 + $0xee8] sm:$0xff] }
 0x163   : > { %3458 = vmatpush1.bf16.msra.mxu1 %v3457_v4  ;;  %2948 = vmatprep.subr.bf16.mxu0 %v2947_v5  ;;  %v3467_v32 = vpack.c.bf16 %v724_v24, %v720_v61  ;;  %v2967_v4 = vpack.c.bf16 %v746_v62, %v742_v55  ;;  %v741_v5 = vld [vmem:[%s4443_s5 + $0xd80] sm:$0xff]  ;;  %v3485_v24 = vpack.c.bf16 %v755_v19, %v751_v17  ;;  %v784_v55 = vld [vmem:[%s4443_s5 + $0xed8] sm:$0xff]  ;;  %v795_v17 = vld [vmem:[%s4443_s5 + $0xf30] sm:$0xff] }
 0x164   : > { %3460 = vmatprep.subr.bf16.mxu1 %v3459_v8  ;;  %1698 = vmatprep.mubr.f32.mxu0 %v1370_v12  ;;  %v747_v8 = vld [vmem:[%s4443_s5 + $0xdb0] sm:$0xff]  ;;  %v2969_v13 = vpack.c.bf16 %v745_v45, %v741_v5  ;;  %v788_v62 = vld [vmem:[%s4443_s5 + $0xef8] sm:$0xff]  ;;  %v3497_v1 = vpack.c.bf16 %v779_v58, %v775_v56  ;;  %v802_v19 = vld [vmem:[%s4443_s5 + $0xf68] sm:$0xff] }
 0x165   : > { %2266 = vmatprep.mubr.f32.mxu1 %v1370_v12  ;;  %v756_v12 = vld [vmem:[%s4443_s5 + $0xdf8] sm:$0xff]  ;;  %v3481_v43 = vpack.c.bf16 %v747_v8, %v743_v6  ;;  %v783_v5 = vld [vmem:[%s4443_s5 + $0xed0] sm:$0xff]  ;;  %v3499_v45 = vpack.c.bf16 %v788_v62, %v784_v55  ;;  %v794_v8 = vld [vmem:[%s4443_s5 + $0xf28] sm:$0xff] }
 0x166   : > { %2950 = vmatpush1.bf16.msra.mxu0 %v2949_v14  ;;  %v2971_v14 = vpack.c.bf16 %v754_v10, %v750_v9  ;;  %v3483_v18 = vpack.c.bf16 %v756_v12, %v752_v11  ;;  %v787_v6 = vld [vmem:[%s4443_s5 + $0xef0] sm:$0xff]  ;;  %v792_v9 = vld [vmem:[%s4443_s5 + $0xf18] sm:$0xff]  ;;  %v826_v58 = vld [vmem:[%s4443_s5 + $0x1028] sm:$0xff] }
 0x167   : > { %3462 = vmatpush1.bf16.msra.mxu1 %v3461_v15  ;;  %2952 = vmatprep.subr.bf16.mxu0 %v2951_v16  ;;  %v749_v15 = vld [vmem:[%s4443_s5 + $0xdc0] sm:$0xff]  ;;  %v796_v10 = vld [vmem:[%s4443_s5 + $0xf38] sm:$0xff]  ;;  %v3501_v12 = vpack.c.bf16 %v787_v6, %v783_v5  ;;  %v819_v56 = vld [vmem:[%s4443_s5 + $0xff0] sm:$0xff] }
 0x168   : > { %3464 = vmatprep.subr.bf16.mxu1 %v3463_v20  ;;  %v753_v16 = vld [vmem:[%s4443_s5 + $0xde0] sm:$0xff]  ;;  %v758_v20 = vld [vmem:[%s4443_s5 + $0xe08] sm:$0xff]  ;;  %v5027_v55 = vld [vmem:[%s4568_s28 + $0x10] sm:$0xff] }
 0x169   : > { %v2973_v61 = vpack.c.bf16 %v753_v16, %v749_v15  ;;  %v791_v15 = vld [vmem:[%s4443_s5 + $0xf10] sm:$0xff]  ;;  %v3503_v16 = vpack.c.bf16 %v796_v10, %v792_v9  ;;  %v830_v6 = vld [vmem:[%s4443_s5 + $0x1048] sm:$0xff]  ;;  %v832_v9 = vld [vmem:[%s4443_s5 + $0x1058] sm:$0xff] }
 0x16a   : > { %2954 = vmatpush1.bf16.msra.mxu0 %v2953_v25  ;;  %v2975_v25 = vpack.c.bf16 %v762_v21, %v758_v20  ;;  %v800_v20 = vld [vmem:[%s4443_s5 + $0xf58] sm:$0xff]  ;;  %v3505_v23 = vpack.c.bf16 %v795_v17, %v791_v15  ;;  %v831_v15 = vld [vmem:[%s4443_s5 + $0x1050] sm:$0xff] }
 0x16b   : > { %3466 = vmatpush1.bf16.msra.mxu1 %v3465_v26  ;;  %2956 = vmatprep.subr.bf16.mxu0 %v2955_v27  ;;  %v757_v26 = vld [vmem:[%s4443_s5 + $0xe00] sm:$0xff]  ;;  %v804_v21 = vld [vmem:[%s4443_s5 + $0xf78] sm:$0xff]  ;;  %v835_v17 = vld [vmem:[%s4443_s5 + $0x1070] sm:$0xff] }
 0x16c   : > { %3468 = vmatprep.subr.bf16.mxu1 %v3467_v32  ;;  %v761_v27 = vld [vmem:[%s4443_s5 + $0xe20] sm:$0xff]  ;;  %v766_v32 = vld [vmem:[%s4443_s5 + $0xe48] sm:$0xff]  ;;  %v836_v10 = vld [vmem:[%s4443_s5 + $0x1078] sm:$0xff] }
 0x16d   : > { %v2977_v36 = vpack.c.bf16 %v761_v27, %v757_v26  ;;  %v799_v26 = vld [vmem:[%s4443_s5 + $0xf50] sm:$0xff]  ;;  %v3507_v27 = vpack.c.bf16 %v804_v21, %v800_v20  ;;  %v840_v21 = vld [vmem:[%s4443_s5 + $0x1098] sm:$0xff] }
 0x16e   : > { %2958 = vmatpush1.bf16.msra.mxu0 %v2957_v38  ;;  %v2979_v38 = vpack.c.bf16 %v770_v33, %v766_v32  ;;  %v808_v32 = vld [vmem:[%s4443_s5 + $0xf98] sm:$0xff]  ;;  %v3509_v35 = vpack.c.bf16 %v803_v28, %v799_v26  ;;  %v841_v26 = vld [vmem:[%s4443_s5 + $0x10a0] sm:$0xff] }
 0x16f   : > { %3470 = vmatpush1.bf16.msra.mxu1 %v3469_v39  ;;  %2960 = vmatprep.subr.bf16.mxu0 %v2959_v40  ;;  %v765_v39 = vld [vmem:[%s4443_s5 + $0xe40] sm:$0xff]  ;;  %v812_v33 = vld [vmem:[%s4443_s5 + $0xfb8] sm:$0xff] }
 0x170   : > { %3472 = vmatprep.subr.bf16.mxu1 %v3471_v46  ;;  %v769_v40 = vld [vmem:[%s4443_s5 + $0xe60] sm:$0xff]  ;;  %v774_v46 = vld [vmem:[%s4443_s5 + $0xe88] sm:$0xff] }
 0x171   : > { %v2981_v50 = vpack.c.bf16 %v769_v40, %v765_v39  ;;  %v807_v39 = vld [vmem:[%s4443_s5 + $0xf90] sm:$0xff]  ;;  %v3511_v40 = vpack.c.bf16 %v812_v33, %v808_v32  ;;  %v850_v32 = vld [vmem:[%s4443_s5 + $0x10e8] sm:$0xff]  ;;  %v852_v33 = vld [vmem:[%s4443_s5 + $0x10f8] sm:$0xff] }
 0x172   : > { %2962 = vmatpush1.bf16.msra.mxu0 %v2961_v52  ;;  %v2983_v52 = vpack.c.bf16 %v778_v47, %v774_v46  ;;  %v816_v46 = vld [vmem:[%s4443_s5 + $0xfd8] sm:$0xff]  ;;  %v3513_v49 = vpack.c.bf16 %v811_v41, %v807_v39  ;;  %v847_v39 = vld [vmem:[%s4443_s5 + $0x10d0] sm:$0xff] }
 0x173   : > { %3474 = vmatpush1.bf16.msra.mxu1 %v3473_v53  ;;  %2964 = vmatprep.subr.bf16.mxu0 %v2963_v54  ;;  %v773_v53 = vld [vmem:[%s4443_s5 + $0xe80] sm:$0xff]  ;;  %v820_v47 = vld [vmem:[%s4443_s5 + $0xff8] sm:$0xff]  ;;  %v851_v41 = vld [vmem:[%s4443_s5 + $0x10f0] sm:$0xff] }
 0x174   : > { %3476 = vmatprep.subr.bf16.mxu1 %v3475_v59  ;;  %v777_v54 = vld [vmem:[%s4443_s5 + $0xea0] sm:$0xff]  ;;  %v782_v59 = vld [vmem:[%s4443_s5 + $0xec8] sm:$0xff] }
 0x175   : > { %v2985_v63 = vpack.c.bf16 %v777_v54, %v773_v53  ;;  %v815_v53 = vld [vmem:[%s4443_s5 + $0xfd0] sm:$0xff]  ;;  %v3515_v54 = vpack.c.bf16 %v820_v47, %v816_v46  ;;  %v856_v46 = vld [vmem:[%s4443_s5 + $0x1118] sm:$0xff] }
 0x176   : > { %2966 = vmatpush1.bf16.msra.mxu0 %v2965_v2  ;;  %v2987_v2 = vpack.c.bf16 %v786_v60, %v782_v59  ;;  %v824_v59 = vld [vmem:[%s4443_s5 + $0x1018] sm:$0xff] }
 0x177   : > { %3478 = vmatpush1.bf16.msra.mxu1 %v3477_v3  ;;  %2968 = vmatprep.subr.bf16.mxu0 %v2967_v4  ;;  %v781_v3 = vld [vmem:[%s4443_s5 + $0xec0] sm:$0xff]  ;;  %v828_v60 = vld [vmem:[%s4443_s5 + $0x1038] sm:$0xff] }
 0x178   : > { %3480 = vmatprep.subr.bf16.mxu1 %v3479_v7  ;;  %v785_v4 = vld [vmem:[%s4443_s5 + $0xee0] sm:$0xff]  ;;  %v790_v7 = vld [vmem:[%s4443_s5 + $0xf08] sm:$0xff]  ;;  %v3519_v5 = vpack.c.bf16 %v828_v60, %v824_v59  ;;  %v860_v47 = vld [vmem:[%s4443_s5 + $0x1138] sm:$0xff] }
 0x179   : > { %v2989_v11 = vpack.c.bf16 %v785_v4, %v781_v3  ;;  %v825_v3 = vld [vmem:[%s4443_s5 + $0x1020] sm:$0xff]  ;;  %v823_v4 = vld [vmem:[%s4443_s5 + $0x1010] sm:$0xff]  ;;  %v864_v59 = vld [vmem:[%s4443_s5 + $0x1158] sm:$0xff] }
 0x17a   : > { %2970 = vmatpush1.bf16.msra.mxu0 %v2969_v13  ;;  %v2991_v13 = vpack.c.bf16 %v794_v8, %v790_v7  ;;  %v834_v7 = vld [vmem:[%s4443_s5 + $0x1068] sm:$0xff]  ;;  %v5037_v8 = vrot.slane %v5027_v55, %v4558_v31  ;;  %v868_v60 = vld [vmem:[%s4443_s5 + $0x1178] sm:$0xff] }
 0x17b   : > { %3482 = vmatpush1.bf16.msra.mxu1 %v3481_v43  ;;  %2972 = vmatprep.subr.bf16.mxu0 %v2971_v14  ;;  %v789_v43 = vld [vmem:[%s4443_s5 + $0xf00] sm:$0xff] }
 0x17c   : > { %3484 = vmatprep.subr.bf16.mxu1 %v3483_v18  ;;  %v793_v14 = vld [vmem:[%s4443_s5 + $0xf20] sm:$0xff]  ;;  %v798_v18 = vld [vmem:[%s4443_s5 + $0xf48] sm:$0xff]  ;;  %v1386_v20 = vcombine.high %v5037_v8, %v5037_v8 }
 0x17d   : > { %v2993_v22 = vpack.c.bf16 %v793_v14, %v789_v43  ;;  %v829_v43 = vld [vmem:[%s4443_s5 + $0x1040] sm:$0xff] }
 0x17e   : > { %2974 = vmatpush1.bf16.msra.mxu0 %v2973_v61  ;;  %v2995_v61 = vpack.c.bf16 %v802_v19, %v798_v18  ;;  %v833_v14 = vld [vmem:[%s4443_s5 + $0x1060] sm:$0xff]  ;;  %v838_v18 = vld [vmem:[%s4443_s5 + $0x1088] sm:$0xff] }
 0x17f   : > { %3486 = vmatpush1.bf16.msra.mxu1 %v3485_v24  ;;  %2976 = vmatprep.subr.bf16.mxu0 %v2975_v25  ;;  %v797_v24 = vld [vmem:[%s4443_s5 + $0xf40] sm:$0xff]  ;;  %v842_v19 = vld [vmem:[%s4443_s5 + $0x10a8] sm:$0xff] }
 0x180   : > { %3488 = vmatprep.subr.bf16.mxu1 %v3487_v29  ;;  %v801_v25 = vld [vmem:[%s4443_s5 + $0xf60] sm:$0xff]  ;;  %v806_v29 = vld [vmem:[%s4443_s5 + $0xf88] sm:$0xff] }
 0x181   : > { %v2997_v34 = vpack.c.bf16 %v801_v25, %v797_v24  ;;  %v3015_v24 = vpack.c.bf16 %v842_v19, %v838_v18  ;;  %v837_v25 = vld [vmem:[%s4443_s5 + $0x1080] sm:$0xff]  ;;  %v878_v18 = vld [vmem:[%s4443_s5 + $0x11c8] sm:$0xff] }
 0x182   : > { %2978 = vmatpush1.bf16.msra.mxu0 %v2977_v36  ;;  %v2999_v36 = vpack.c.bf16 %v810_v30, %v806_v29  ;;  %v843_v29 = vld [vmem:[%s4443_s5 + $0x10b0] sm:$0xff]  ;;  %v846_v30 = vld [vmem:[%s4443_s5 + $0x10c8] sm:$0xff] }
 0x183   : > { %3490 = vmatpush1.bf16.msra.mxu1 %v3489_v37  ;;  %2980 = vmatprep.subr.bf16.mxu0 %v2979_v38  ;;  %v805_v37 = vld [vmem:[%s4443_s5 + $0xf80] sm:$0xff]  ;;  %v882_v19 = vld [vmem:[%s4443_s5 + $0x11e8] sm:$0xff] }
 0x184   : > { %3492 = vmatprep.subr.bf16.mxu1 %v3491_v42  ;;  %v809_v38 = vld [vmem:[%s4443_s5 + $0xfa0] sm:$0xff]  ;;  %v814_v42 = vld [vmem:[%s4443_s5 + $0xfc8] sm:$0xff] }
 0x185   : > { %v3001_v48 = vpack.c.bf16 %v809_v38, %v805_v37  ;;  %v845_v37 = vld [vmem:[%s4443_s5 + $0x10c0] sm:$0xff] }
 0x186   : > { %2982 = vmatpush1.bf16.msra.mxu0 %v2981_v50  ;;  %v3003_v50 = vpack.c.bf16 %v818_v44, %v814_v42  ;;  %v849_v38 = vld [vmem:[%s4443_s5 + $0x10e0] sm:$0xff]  ;;  %v854_v42 = vld [vmem:[%s4443_s5 + $0x1108] sm:$0xff] }
 0x187   : > { %3494 = vmatpush1.bf16.msra.mxu1 %v3493_v51  ;;  %2984 = vmatprep.subr.bf16.mxu0 %v2983_v52  ;;  %v813_v51 = vld [vmem:[%s4443_s5 + $0xfc0] sm:$0xff]  ;;  %v858_v44 = vld [vmem:[%s4443_s5 + $0x1128] sm:$0xff] }
 0x188   : > { %3496 = vmatprep.subr.bf16.mxu1 %v3495_v57  ;;  %v817_v52 = vld [vmem:[%s4443_s5 + $0xfe0] sm:$0xff]  ;;  %v822_v57 = vld [vmem:[%s4443_s5 + $0x1008] sm:$0xff] }
 0x189   : > { %v3005_v62 = vpack.c.bf16 %v817_v52, %v813_v51  ;;  %v853_v51 = vld [vmem:[%s4443_s5 + $0x1100] sm:$0xff] }
 0x18a   : > { %2986 = vmatpush1.bf16.msra.mxu0 %v2985_v63  ;;  %v3517_v63 = vpack.c.bf16 %v819_v56, %v815_v53  ;;  %v857_v52 = vld [vmem:[%s4443_s5 + $0x1120] sm:$0xff]  ;;  %v855_v53 = vld [vmem:[%s4443_s5 + $0x1110] sm:$0xff] }
 0x18b   : > { %3498 = vmatpush1.bf16.msra.mxu1 %v3497_v1  ;;  %2988 = vmatprep.subr.bf16.mxu0 %v2987_v2  ;;  %v3007_v1 = vpack.c.bf16 %v826_v58, %v822_v57  ;;  %v821_v2 = vld [vmem:[%s4443_s5 + $0x1000] sm:$0xff]  ;;  %v859_v56 = vld [vmem:[%s4443_s5 + $0x1130] sm:$0xff]  ;;  %v862_v57 = vld [vmem:[%s4443_s5 + $0x1148] sm:$0xff] }
 0x18c   : > { %3500 = vmatprep.subr.bf16.mxu1 %v3499_v45  ;;  %v827_v45 = vld [vmem:[%s4443_s5 + $0x1030] sm:$0xff]  ;;  %v866_v58 = vld [vmem:[%s4443_s5 + $0x1168] sm:$0xff] }
 0x18e   : > { %2990 = vmatpush1.bf16.msra.mxu0 %v2989_v11  ;;  %v3009_v11 = vpack.c.bf16 %v825_v3, %v821_v2  ;;  %v861_v2 = vld [vmem:[%s4443_s5 + $0x1140] sm:$0xff] }
 0x18f   : > { %3502 = vmatpush1.bf16.msra.mxu1 %v3501_v12  ;;  %2992 = vmatprep.subr.bf16.mxu0 %v2991_v13  ;;  %v3521_v12 = vpack.c.bf16 %v827_v45, %v823_v4  ;;  %v3011_v13 = vpack.c.bf16 %v834_v7, %v830_v6  ;;  %v865_v3 = vld [vmem:[%s4443_s5 + $0x1160] sm:$0xff]  ;;  %v863_v4 = vld [vmem:[%s4443_s5 + $0x1150] sm:$0xff]  ;;  %v870_v6 = vld [vmem:[%s4443_s5 + $0x1188] sm:$0xff] }
 0x190   : > { %3504 = vmatprep.subr.bf16.mxu1 %v3503_v16  ;;  %v3523_v16 = vpack.c.bf16 %v836_v10, %v832_v9  ;;  %v867_v45 = vld [vmem:[%s4443_s5 + $0x1170] sm:$0xff]  ;;  %v874_v7 = vld [vmem:[%s4443_s5 + $0x11a8] sm:$0xff]  ;;  %v872_v9 = vld [vmem:[%s4443_s5 + $0x1198] sm:$0xff] }
 0x191   : > { %v876_v10 = vld [vmem:[%s4443_s5 + $0x11b8] sm:$0xff] }
 0x192   : > { %2994 = vmatpush1.bf16.msra.mxu0 %v2993_v22  ;;  %v844_v22 = vld [vmem:[%s4443_s5 + $0x10b8] sm:$0xff] }
 0x193   : > { %3506 = vmatpush1.bf16.msra.mxu1 %v3505_v23  ;;  %2996 = vmatprep.subr.bf16.mxu0 %v2995_v61  ;;  %v3013_v23 = vpack.c.bf16 %v833_v14, %v829_v43  ;;  %v3525_v61 = vpack.c.bf16 %v835_v17, %v831_v15  ;;  %v3527_v28 = vpack.c.bf16 %v844_v22, %v840_v21  ;;  %v869_v43 = vld [vmem:[%s4443_s5 + $0x1180] sm:$0xff]  ;;  %v871_v15 = vld [vmem:[%s4443_s5 + $0x1190] sm:$0xff]  ;;  %v884_v21 = vld [vmem:[%s4443_s5 + $0x11f8] sm:$0xff] }
 0x194   : > { %3508 = vmatprep.subr.bf16.mxu1 %v3507_v27  ;;  %v839_v27 = vld [vmem:[%s4443_s5 + $0x1090] sm:$0xff]  ;;  %v873_v14 = vld [vmem:[%s4443_s5 + $0x11a0] sm:$0xff] }
 0x195   : > { %v875_v17 = vld [vmem:[%s4443_s5 + $0x11b0] sm:$0xff]  ;;  %v3033_v22 = vpack.c.bf16 %v873_v14, %v869_v43  ;;  %v913_v43 = vld [vmem:[%s4443_s5 + $0x12e0] sm:$0xff] }
 0x196   : > { %2998 = vmatpush1.bf16.msra.mxu0 %v2997_v34  ;;  %v3017_v34 = vpack.c.bf16 %v841_v26, %v837_v25  ;;  %v881_v25 = vld [vmem:[%s4443_s5 + $0x11e0] sm:$0xff]  ;;  %v879_v26 = vld [vmem:[%s4443_s5 + $0x11d0] sm:$0xff] }
 0x197   : > { %3510 = vmatpush1.bf16.msra.mxu1 %v3509_v35  ;;  %3000 = vmatprep.subr.bf16.mxu0 %v2999_v36  ;;  %v3529_v35 = vpack.c.bf16 %v843_v29, %v839_v27  ;;  %v3019_v36 = vpack.c.bf16 %v850_v32, %v846_v30  ;;  %v886_v29 = vld [vmem:[%s4443_s5 + $0x1208] sm:$0xff]  ;;  %v888_v32 = vld [vmem:[%s4443_s5 + $0x1218] sm:$0xff]  ;;  %v911_v14 = vld [vmem:[%s4443_s5 + $0x12d0] sm:$0xff] }
 0x198   : > { %3512 = vmatprep.subr.bf16.mxu1 %v3511_v40  ;;  %v890_v30 = vld [vmem:[%s4443_s5 + $0x1228] sm:$0xff] }
 0x19a   : > { %3002 = vmatpush1.bf16.msra.mxu0 %v3001_v48  ;;  %v3021_v48 = vpack.c.bf16 %v849_v38, %v845_v37  ;;  %v889_v37 = vld [vmem:[%s4443_s5 + $0x1220] sm:$0xff]  ;;  %v887_v38 = vld [vmem:[%s4443_s5 + $0x1210] sm:$0xff] }
 0x19b   : > { %3514 = vmatpush1.bf16.msra.mxu1 %v3513_v49  ;;  %3004 = vmatprep.subr.bf16.mxu0 %v3003_v50  ;;  %v3533_v49 = vpack.c.bf16 %v851_v41, %v847_v39  ;;  %v3023_v50 = vpack.c.bf16 %v858_v44, %v854_v42  ;;  %v894_v41 = vld [vmem:[%s4443_s5 + $0x1248] sm:$0xff]  ;;  %v896_v44 = vld [vmem:[%s4443_s5 + $0x1258] sm:$0xff] }
 0x19c   : > { %3516 = vmatprep.subr.bf16.mxu1 %v3515_v54  ;;  %v3535_v54 = vpack.c.bf16 %v860_v47, %v856_v46  ;;  %v898_v42 = vld [vmem:[%s4443_s5 + $0x1268] sm:$0xff]  ;;  %v900_v46 = vld [vmem:[%s4443_s5 + $0x1278] sm:$0xff] }
 0x19e   : > { %3006 = vmatpush1.bf16.msra.mxu0 %v3005_v62  ;;  %v3025_v62 = vpack.c.bf16 %v857_v52, %v853_v51  ;;  %v897_v51 = vld [vmem:[%s4443_s5 + $0x1260] sm:$0xff]  ;;  %v895_v52 = vld [vmem:[%s4443_s5 + $0x1250] sm:$0xff] }
 0x19f   : > { %3518 = vmatpush1.bf16.msra.mxu1 %v3517_v63  ;;  %3008 = vmatprep.subr.bf16.mxu0 %v3007_v1  ;;  %v3537_v63 = vpack.c.bf16 %v859_v56, %v855_v53  ;;  %v3027_v1 = vpack.c.bf16 %v866_v58, %v862_v57  ;;  %v3555_v53 = vpack.c.bf16 %v900_v46, %v896_v44  ;;  %v902_v56 = vld [vmem:[%s4443_s5 + $0x1288] sm:$0xff]  ;;  %v904_v58 = vld [vmem:[%s4443_s5 + $0x1298] sm:$0xff] }
 0x1a0   : > { %3520 = vmatprep.subr.bf16.mxu1 %v3519_v5  ;;  %v3539_v5 = vpack.c.bf16 %v868_v60, %v864_v59  ;;  %v906_v57 = vld [vmem:[%s4443_s5 + $0x12a8] sm:$0xff]  ;;  %v908_v59 = vld [vmem:[%s4443_s5 + $0x12b8] sm:$0xff] }
 0x1a1   : > { %1699 = vmatmul.mubr.f32.vlgmr.msra.gmra.mrb[0].mxu0 %v4898_v0  ;;  %v940_v44 = vld [vmem:[%s4443_s5 + $0x13b8] sm:$0xff] }
 0x1a2   : > { %3010 = vmatpush1.bf16.msra.mxu0 %v3009_v11  ;;  %2267 = vmatmul.mubr.f32.vlgmr.msra.gmra.mrb[0].mxu1 %v4898_v0  ;;  %v848_v0 = vld [vmem:[%s4443_s5 + $0x10d8] sm:$0xff]  ;;  %v3029_v11 = vpack.c.bf16 %v865_v3, %v861_v2  ;;  %v905_v2 = vld [vmem:[%s4443_s5 + $0x12a0] sm:$0xff]  ;;  %v903_v3 = vld [vmem:[%s4443_s5 + $0x1290] sm:$0xff] }
 0x1a3   : > { %3522 = vmatpush1.bf16.msra.mxu1 %v3521_v12  ;;  %3012 = vmatprep.subr.bf16.mxu0 %v3011_v13  ;;  %v3531_v40 = vpack.c.bf16 %v852_v33, %v848_v0  ;;  %v3541_v12 = vpack.c.bf16 %v867_v45, %v863_v4  ;;  %v3031_v13 = vpack.c.bf16 %v874_v7, %v870_v6  ;;  %v892_v0 = vld [vmem:[%s4443_s5 + $0x1238] sm:$0xff]  ;;  %v910_v45 = vld [vmem:[%s4443_s5 + $0x12c8] sm:$0xff] }
 0x1a4   : > { %3524 = vmatprep.subr.bf16.mxu1 %v3523_v16  ;;  %1769 = vmatprep.mubr.f32.mxu0 %v1386_v20  ;;  %v3543_v16 = vpack.c.bf16 %v876_v10, %v872_v9  ;;  %v3551_v39 = vpack.c.bf16 %v892_v0, %v888_v32  ;;  %v3559_v4 = vpack.c.bf16 %v908_v59, %v904_v58  ;;  %v914_v6 = vld [vmem:[%s4443_s5 + $0x12e8] sm:$0xff]  ;;  %v912_v7 = vld [vmem:[%s4443_s5 + $0x12d8] sm:$0xff] }
 0x1a5   : > { %2337 = vmatprep.mubr.f32.mxu1 %v1386_v20  ;;  %v880_v20 = vld [vmem:[%s4443_s5 + $0x11d8] sm:$0xff] }
 0x1a6   : > { %3014 = vmatpush1.bf16.msra.mxu0 %v3013_v23  ;;  %v3545_v23 = vpack.c.bf16 %v875_v17, %v871_v15  ;;  %v3547_v27 = vpack.c.bf16 %v884_v21, %v880_v20  ;;  %v916_v9 = vld [vmem:[%s4443_s5 + $0x12f8] sm:$0xff]  ;;  %v918_v17 = vld [vmem:[%s4443_s5 + $0x1308] sm:$0xff] }
 0x1a7   : > { %3526 = vmatpush1.bf16.msra.mxu1 %v3525_v61  ;;  %3016 = vmatprep.subr.bf16.mxu0 %v3015_v24  ;;  %v3035_v61 = vpack.c.bf16 %v882_v19, %v878_v18  ;;  %v877_v24 = vld [vmem:[%s4443_s5 + $0x11c0] sm:$0xff]  ;;  %v3563_v15 = vpack.c.bf16 %v916_v9, %v912_v7  ;;  %v922_v18 = vld [vmem:[%s4443_s5 + $0x1328] sm:$0xff]  ;;  %v920_v19 = vld [vmem:[%s4443_s5 + $0x1318] sm:$0xff] }
 0x1a8   : > { %3528 = vmatprep.subr.bf16.mxu1 %v3527_v28  ;;  %v883_v28 = vld [vmem:[%s4443_s5 + $0x11f0] sm:$0xff]  ;;  %v3037_v33 = vpack.c.bf16 %v881_v25, %v877_v24  ;;  %v924_v20 = vld [vmem:[%s4443_s5 + $0x1338] sm:$0xff]  ;;  %v921_v24 = vld [vmem:[%s4443_s5 + $0x1320] sm:$0xff] }
 0x1a9   : > { %v919_v25 = vld [vmem:[%s4443_s5 + $0x1310] sm:$0xff]  ;;  %v932_v32 = vld [vmem:[%s4443_s5 + $0x1378] sm:$0xff] }
 0x1aa   : > { %3018 = vmatpush1.bf16.msra.mxu0 %v3017_v34  ;;  %v3549_v34 = vpack.c.bf16 %v883_v28, %v879_v26  ;;  %v3567_v26 = vpack.c.bf16 %v924_v20, %v920_v19  ;;  %v926_v28 = vld [vmem:[%s4443_s5 + $0x1348] sm:$0xff]  ;;  %v948_v58 = vld [vmem:[%s4443_s5 + $0x13f8] sm:$0xff] }
 0x1ab   : > { %3530 = vmatpush1.bf16.msra.mxu1 %v3529_v35  ;;  %3020 = vmatprep.subr.bf16.mxu0 %v3019_v36  ;;  %v3039_v35 = vpack.c.bf16 %v890_v30, %v886_v29  ;;  %v885_v36 = vld [vmem:[%s4443_s5 + $0x1200] sm:$0xff]  ;;  %v930_v29 = vld [vmem:[%s4443_s5 + $0x1368] sm:$0xff]  ;;  %v928_v30 = vld [vmem:[%s4443_s5 + $0x1358] sm:$0xff] }
 0x1ac   : > { %3532 = vmatprep.subr.bf16.mxu1 %v3531_v40  ;;  %v891_v40 = vld [vmem:[%s4443_s5 + $0x1230] sm:$0xff]  ;;  %v3041_v47 = vpack.c.bf16 %v889_v37, %v885_v36  ;;  %v929_v36 = vld [vmem:[%s4443_s5 + $0x1360] sm:$0xff]  ;;  %v952_v7 = vld [vmem:[%s4443_s5 + $0x1418] sm:$0xff] }
 0x1ad   : > { %v927_v37 = vld [vmem:[%s4443_s5 + $0x1350] sm:$0xff]  ;;  %v956_v9 = vld [vmem:[%s4443_s5 + $0x1438] sm:$0xff] }
 0x1ae   : > { %3022 = vmatpush1.bf16.msra.mxu0 %v3021_v48  ;;  %v3553_v48 = vpack.c.bf16 %v891_v40, %v887_v38  ;;  %v3571_v38 = vpack.c.bf16 %v932_v32, %v928_v30  ;;  %v934_v40 = vld [vmem:[%s4443_s5 + $0x1388] sm:$0xff]  ;;  %v960_v19 = vld [vmem:[%s4443_s5 + $0x1458] sm:$0xff] }
 0x1af   : > { %3534 = vmatpush1.bf16.msra.mxu1 %v3533_v49  ;;  %3024 = vmatprep.subr.bf16.mxu0 %v3023_v50  ;;  %v3043_v49 = vpack.c.bf16 %v898_v42, %v894_v41  ;;  %v893_v50 = vld [vmem:[%s4443_s5 + $0x1240] sm:$0xff]  ;;  %v938_v41 = vld [vmem:[%s4443_s5 + $0x13a8] sm:$0xff]  ;;  %v936_v42 = vld [vmem:[%s4443_s5 + $0x1398] sm:$0xff] }
 0x1b0   : > { %3536 = vmatprep.subr.bf16.mxu1 %v3535_v54  ;;  %v899_v54 = vld [vmem:[%s4443_s5 + $0x1270] sm:$0xff]  ;;  %v3045_v60 = vpack.c.bf16 %v897_v51, %v893_v50  ;;  %v937_v50 = vld [vmem:[%s4443_s5 + $0x13a0] sm:$0xff]  ;;  %v964_v20 = vld [vmem:[%s4443_s5 + $0x1478] sm:$0xff] }
 0x1b1   : > { %v935_v51 = vld [vmem:[%s4443_s5 + $0x1390] sm:$0xff]  ;;  %v968_v32 = vld [vmem:[%s4443_s5 + $0x1498] sm:$0xff] }
 0x1b2   : > { %3026 = vmatpush1.bf16.msra.mxu0 %v3025_v62  ;;  %v3557_v62 = vpack.c.bf16 %v899_v54, %v895_v52  ;;  %v3575_v52 = vpack.c.bf16 %v940_v44, %v936_v42  ;;  %v942_v54 = vld [vmem:[%s4443_s5 + $0x13c8] sm:$0xff]  ;;  %v980_v44 = vld [vmem:[%s4443_s5 + $0x14f8] sm:$0xff] }
 0x1b3   : > { %3538 = vmatpush1.bf16.msra.mxu1 %v3537_v63  ;;  %3028 = vmatprep.subr.bf16.mxu0 %v3027_v1  ;;  %v3047_v63 = vpack.c.bf16 %v906_v57, %v902_v56  ;;  %v901_v1 = vld [vmem:[%s4443_s5 + $0x1280] sm:$0xff]  ;;  %v946_v56 = vld [vmem:[%s4443_s5 + $0x13e8] sm:$0xff]  ;;  %v944_v57 = vld [vmem:[%s4443_s5 + $0x13d8] sm:$0xff] }
 0x1b4   : > { %3540 = vmatprep.subr.bf16.mxu1 %v3539_v5  ;;  %v907_v5 = vld [vmem:[%s4443_s5 + $0x12b0] sm:$0xff]  ;;  %v3049_v10 = vpack.c.bf16 %v905_v2, %v901_v1  ;;  %v945_v1 = vld [vmem:[%s4443_s5 + $0x13e0] sm:$0xff]  ;;  %v978_v42 = vld [vmem:[%s4443_s5 + $0x14e8] sm:$0xff] }
 0x1b5   : > { %v943_v2 = vld [vmem:[%s4443_s5 + $0x13d0] sm:$0xff] }
 0x1b6   : > { %3030 = vmatpush1.bf16.msra.mxu0 %v3029_v11  ;;  %v3561_v11 = vpack.c.bf16 %v907_v5, %v903_v3  ;;  %v3579_v3 = vpack.c.bf16 %v948_v58, %v944_v57  ;;  %v950_v5 = vld [vmem:[%s4443_s5 + $0x1408] sm:$0xff]  ;;  %v984_v57 = vld [vmem:[%s4443_s5 + $0x1518] sm:$0xff] }
 0x1b7   : > { %3542 = vmatpush1.bf16.msra.mxu1 %v3541_v12  ;;  %3032 = vmatprep.subr.bf16.mxu0 %v3031_v13  ;;  %v3051_v12 = vpack.c.bf16 %v914_v6, %v910_v45  ;;  %v909_v13 = vld [vmem:[%s4443_s5 + $0x12c0] sm:$0xff]  ;;  %v954_v45 = vld [vmem:[%s4443_s5 + $0x1428] sm:$0xff]  ;;  %v1371_v6 = vcombine.high %v5027_v55, %v5027_v55  ;;  %v955_v55 = vld [vmem:[%s4443_s5 + $0x1430] sm:$0xff] }
 0x1b8   : > { %3544 = vmatprep.subr.bf16.mxu1 %v3543_v16  ;;  %v915_v16 = vld [vmem:[%s4443_s5 + $0x12f0] sm:$0xff]  ;;  %v3053_v21 = vpack.c.bf16 %v913_v43, %v909_v13  ;;  %v949_v13 = vld [vmem:[%s4443_s5 + $0x1400] sm:$0xff]  ;;  %v988_v58 = vld [vmem:[%s4443_s5 + $0x1538] sm:$0xff] }
 0x1b9   : > { %v953_v43 = vld [vmem:[%s4443_s5 + $0x1420] sm:$0xff] }
 0x1ba   : > { %3034 = vmatpush1.bf16.msra.mxu0 %v3033_v22  ;;  %v3565_v22 = vpack.c.bf16 %v915_v16, %v911_v14  ;;  %v951_v14 = vld [vmem:[%s4443_s5 + $0x1410] sm:$0xff]  ;;  %v958_v16 = vld [vmem:[%s4443_s5 + $0x1448] sm:$0xff] }
 0x1bb   : > { %3546 = vmatpush1.bf16.msra.mxu1 %v3545_v23  ;;  %3036 = vmatprep.subr.bf16.mxu0 %v3035_v61  ;;  %v3055_v23 = vpack.c.bf16 %v922_v18, %v918_v17  ;;  %v917_v61 = vld [vmem:[%s4443_s5 + $0x1300] sm:$0xff]  ;;  %v962_v17 = vld [vmem:[%s4443_s5 + $0x1468] sm:$0xff]  ;;  %v5174_v18 = vrot.slane %v1371_v6, %v4558_v31  ;;  %v992_v6 = vld [vmem:[%s4443_s5 + $0x1558] sm:$0xff] }
 0x1bc   : > { %3548 = vmatprep.subr.bf16.mxu1 %v3547_v27  ;;  %v923_v27 = vld [vmem:[%s4443_s5 + $0x1330] sm:$0xff]  ;;  %v3057_v0 = vpack.c.bf16 %v921_v24, %v917_v61  ;;  %v957_v61 = vld [vmem:[%s4443_s5 + $0x1440] sm:$0xff] }
 0x1bd   : > { %v961_v24 = vld [vmem:[%s4443_s5 + $0x1460] sm:$0xff]  ;;  %v1387_v30 = vcombine.high %v5174_v18, %v5174_v18 }
 0x1be   : > { %3038 = vmatpush1.bf16.msra.mxu0 %v3037_v33  ;;  %v3569_v33 = vpack.c.bf16 %v923_v27, %v919_v25  ;;  %v959_v25 = vld [vmem:[%s4443_s5 + $0x1450] sm:$0xff] }
 0x1bf   : > { %3550 = vmatpush1.bf16.msra.mxu1 %v3549_v34  ;;  %3040 = vmatprep.subr.bf16.mxu0 %v3039_v35  ;;  %v3059_v34 = vpack.c.bf16 %v930_v29, %v926_v28  ;;  %v925_v35 = vld [vmem:[%s4443_s5 + $0x1340] sm:$0xff]  ;;  %v963_v27 = vld [vmem:[%s4443_s5 + $0x1470] sm:$0xff]  ;;  %v966_v28 = vld [vmem:[%s4443_s5 + $0x1488] sm:$0xff] }
 0x1c0   : > { %3552 = vmatprep.subr.bf16.mxu1 %v3551_v39  ;;  %v931_v39 = vld [vmem:[%s4443_s5 + $0x1370] sm:$0xff]  ;;  %v3061_v46 = vpack.c.bf16 %v929_v36, %v925_v35  ;;  %v970_v29 = vld [vmem:[%s4443_s5 + $0x14a8] sm:$0xff]  ;;  %v965_v36 = vld [vmem:[%s4443_s5 + $0x1480] sm:$0xff] }
 0x1c1   : > { %v3079_v35 = vpack.c.bf16 %v970_v29, %v966_v28  ;;  %v1010_v28 = vld [vmem:[%s4443_s5 + $0x15e8] sm:$0xff]  ;;  %v1008_v29 = vld [vmem:[%s4443_s5 + $0x15d8] sm:$0xff] }
 0x1c2   : > { %3042 = vmatpush1.bf16.msra.mxu0 %v3041_v47  ;;  %v3573_v47 = vpack.c.bf16 %v931_v39, %v927_v37  ;;  %v969_v37 = vld [vmem:[%s4443_s5 + $0x14a0] sm:$0xff] }
 0x1c3   : > { %3554 = vmatpush1.bf16.msra.mxu1 %v3553_v48  ;;  %3044 = vmatprep.subr.bf16.mxu0 %v3043_v49  ;;  %v3063_v48 = vpack.c.bf16 %v938_v41, %v934_v40  ;;  %v933_v49 = vld [vmem:[%s4443_s5 + $0x1380] sm:$0xff]  ;;  %v971_v40 = vld [vmem:[%s4443_s5 + $0x14b0] sm:$0xff]  ;;  %v974_v41 = vld [vmem:[%s4443_s5 + $0x14c8] sm:$0xff] }
 0x1c4   : > { %3556 = vmatprep.subr.bf16.mxu1 %v3555_v53  ;;  %v939_v53 = vld [vmem:[%s4443_s5 + $0x13b0] sm:$0xff]  ;;  %v3065_v59 = vpack.c.bf16 %v937_v50, %v933_v49  ;;  %v973_v49 = vld [vmem:[%s4443_s5 + $0x14c0] sm:$0xff] }
 0x1c5   : > { %v977_v50 = vld [vmem:[%s4443_s5 + $0x14e0] sm:$0xff] }
 0x1c6   : > { %3046 = vmatpush1.bf16.msra.mxu0 %v3045_v60  ;;  %v3577_v60 = vpack.c.bf16 %v939_v53, %v935_v51  ;;  %v975_v51 = vld [vmem:[%s4443_s5 + $0x14d0] sm:$0xff] }
 0x1c7   : > { %3558 = vmatpush1.bf16.msra.mxu1 %v3557_v62  ;;  %3048 = vmatprep.subr.bf16.mxu0 %v3047_v63  ;;  %v3067_v62 = vpack.c.bf16 %v946_v56, %v942_v54  ;;  %v941_v63 = vld [vmem:[%s4443_s5 + $0x13c0] sm:$0xff]  ;;  %v979_v53 = vld [vmem:[%s4443_s5 + $0x14f0] sm:$0xff]  ;;  %v982_v54 = vld [vmem:[%s4443_s5 + $0x1508] sm:$0xff] }
 0x1c8   : > { %3560 = vmatprep.subr.bf16.mxu1 %v3559_v4  ;;  %v947_v4 = vld [vmem:[%s4443_s5 + $0x13f0] sm:$0xff]  ;;  %v986_v56 = vld [vmem:[%s4443_s5 + $0x1528] sm:$0xff] }
 0x1ca   : > { %3050 = vmatpush1.bf16.msra.mxu0 %v3049_v10  ;;  %v3069_v10 = vpack.c.bf16 %v945_v1, %v941_v63  ;;  %v981_v63 = vld [vmem:[%s4443_s5 + $0x1500] sm:$0xff] }
 0x1cb   : > { %3562 = vmatpush1.bf16.msra.mxu1 %v3561_v11  ;;  %3052 = vmatprep.subr.bf16.mxu0 %v3051_v12  ;;  %v3581_v11 = vpack.c.bf16 %v947_v4, %v943_v2  ;;  %v3071_v12 = vpack.c.bf16 %v954_v45, %v950_v5  ;;  %v985_v1 = vld [vmem:[%s4443_s5 + $0x1520] sm:$0xff]  ;;  %v983_v2 = vld [vmem:[%s4443_s5 + $0x1510] sm:$0xff]  ;;  %v990_v5 = vld [vmem:[%s4443_s5 + $0x1548] sm:$0xff] }
 0x1cc   : > { %3564 = vmatprep.subr.bf16.mxu1 %v3563_v15  ;;  %v3583_v15 = vpack.c.bf16 %v956_v9, %v952_v7  ;;  %v987_v4 = vld [vmem:[%s4443_s5 + $0x1530] sm:$0xff]  ;;  %v994_v45 = vld [vmem:[%s4443_s5 + $0x1568] sm:$0xff]  ;;  %v996_v7 = vld [vmem:[%s4443_s5 + $0x1578] sm:$0xff]  ;;  %v3089_v9 = vpack.c.bf16 %v985_v1, %v981_v63 }
 0x1cd   : > { %v1023_v63 = vld [vmem:[%s4443_s5 + $0x1650] sm:$0xff] }
 0x1ce   : > { %3054 = vmatpush1.bf16.msra.mxu0 %v3053_v21  ;;  %v3073_v21 = vpack.c.bf16 %v953_v43, %v949_v13  ;;  %v993_v13 = vld [vmem:[%s4443_s5 + $0x1560] sm:$0xff]  ;;  %v991_v43 = vld [vmem:[%s4443_s5 + $0x1550] sm:$0xff] }
 0x1cf   : > { %3566 = vmatpush1.bf16.msra.mxu1 %v3565_v22  ;;  %3056 = vmatprep.subr.bf16.mxu0 %v3055_v23  ;;  %v3585_v22 = vpack.c.bf16 %v955_v55, %v951_v14  ;;  %v3075_v23 = vpack.c.bf16 %v962_v17, %v958_v16  ;;  %v3603_v14 = vpack.c.bf16 %v996_v7, %v992_v6  ;;  %v998_v55 = vld [vmem:[%s4443_s5 + $0x1588] sm:$0xff]  ;;  %v1000_v17 = vld [vmem:[%s4443_s5 + $0x1598] sm:$0xff] }
 0x1d0   : > { %3568 = vmatprep.subr.bf16.mxu1 %v3567_v26  ;;  %v3587_v26 = vpack.c.bf16 %v964_v20, %v960_v19  ;;  %v1002_v16 = vld [vmem:[%s4443_s5 + $0x15a8] sm:$0xff]  ;;  %v1004_v19 = vld [vmem:[%s4443_s5 + $0x15b8] sm:$0xff] }
 0x1d2   : > { %3058 = vmatpush1.bf16.msra.mxu0 %v3057_v0  ;;  %v972_v0 = vld [vmem:[%s4443_s5 + $0x14b8] sm:$0xff] }
 0x1d3   : > { %3570 = vmatpush1.bf16.msra.mxu1 %v3569_v33  ;;  %3060 = vmatprep.subr.bf16.mxu0 %v3059_v34  ;;  %v3077_v33 = vpack.c.bf16 %v961_v24, %v957_v61  ;;  %v3589_v34 = vpack.c.bf16 %v963_v27, %v959_v25  ;;  %v3591_v39 = vpack.c.bf16 %v972_v0, %v968_v32  ;;  %v1001_v61 = vld [vmem:[%s4443_s5 + $0x15a0] sm:$0xff]  ;;  %v999_v24 = vld [vmem:[%s4443_s5 + $0x1590] sm:$0xff]  ;;  %v1006_v27 = vld [vmem:[%s4443_s5 + $0x15c8] sm:$0xff] }
 0x1d4   : > { %3572 = vmatprep.subr.bf16.mxu1 %v3571_v38  ;;  %v967_v38 = vld [vmem:[%s4443_s5 + $0x1490] sm:$0xff]  ;;  %v3607_v25 = vpack.c.bf16 %v1004_v19, %v1000_v17 }
 0x1d6   : > { %3062 = vmatpush1.bf16.msra.mxu0 %v3061_v46  ;;  %v3081_v46 = vpack.c.bf16 %v969_v37, %v965_v36  ;;  %v1007_v36 = vld [vmem:[%s4443_s5 + $0x15d0] sm:$0xff] }
 0x1d7   : > { %3574 = vmatpush1.bf16.msra.mxu1 %v3573_v47  ;;  %3064 = vmatprep.subr.bf16.mxu0 %v3063_v48  ;;  %v3593_v47 = vpack.c.bf16 %v971_v40, %v967_v38  ;;  %v3083_v48 = vpack.c.bf16 %v978_v42, %v974_v41  ;;  %v1011_v38 = vld [vmem:[%s4443_s5 + $0x15f0] sm:$0xff]  ;;  %v1018_v40 = vld [vmem:[%s4443_s5 + $0x1628] sm:$0xff]  ;;  %v1016_v41 = vld [vmem:[%s4443_s5 + $0x1618] sm:$0xff] }
 0x1d8   : > { %3576 = vmatprep.subr.bf16.mxu1 %v3575_v52  ;;  %v1020_v42 = vld [vmem:[%s4443_s5 + $0x1638] sm:$0xff] }
 0x1da   : > { %3066 = vmatpush1.bf16.msra.mxu0 %v3065_v59  ;;  %v3085_v59 = vpack.c.bf16 %v977_v50, %v973_v49  ;;  %v1015_v49 = vld [vmem:[%s4443_s5 + $0x1610] sm:$0xff]  ;;  %v3615_v50 = vpack.c.bf16 %v1020_v42, %v1016_v41 }
 0x1db   : > { %3578 = vmatpush1.bf16.msra.mxu1 %v3577_v60  ;;  %3068 = vmatprep.subr.bf16.mxu0 %v3067_v62  ;;  %v3597_v60 = vpack.c.bf16 %v979_v53, %v975_v51  ;;  %v3087_v62 = vpack.c.bf16 %v986_v56, %v982_v54  ;;  %v1019_v51 = vld [vmem:[%s4443_s5 + $0x1630] sm:$0xff]  ;;  %v1026_v53 = vld [vmem:[%s4443_s5 + $0x1668] sm:$0xff]  ;;  %v1024_v54 = vld [vmem:[%s4443_s5 + $0x1658] sm:$0xff] }
 0x1dc   : > { %3580 = vmatprep.subr.bf16.mxu1 %v3579_v3  ;;  %v3599_v3 = vpack.c.bf16 %v988_v58, %v984_v57  ;;  %v1028_v56 = vld [vmem:[%s4443_s5 + $0x1678] sm:$0xff]  ;;  %v3617_v58 = vpack.c.bf16 %v1019_v51, %v1015_v49  ;;  %v1059_v49 = vld [vmem:[%s4443_s5 + $0x1770] sm:$0xff]  ;;  %v1066_v51 = vld [vmem:[%s4443_s5 + $0x17a8] sm:$0xff] }
 0x1dd   : > { %v3619_v1 = vpack.c.bf16 %v1028_v56, %v1024_v54 }
 0x1de   : > { %3070 = vmatpush1.bf16.msra.mxu0 %v3069_v10  ;;  %v3601_v10 = vpack.c.bf16 %v987_v4, %v983_v2  ;;  %v1027_v2 = vld [vmem:[%s4443_s5 + $0x1670] sm:$0xff]  ;;  %v1034_v4 = vld [vmem:[%s4443_s5 + $0x16a8] sm:$0xff] }
 0x1df   : > { %3582 = vmatpush1.bf16.msra.mxu1 %v3581_v11  ;;  %3072 = vmatprep.subr.bf16.mxu0 %v3071_v12  ;;  %v3091_v11 = vpack.c.bf16 %v994_v45, %v990_v5  ;;  %v989_v12 = vld [vmem:[%s4443_s5 + $0x1540] sm:$0xff]  ;;  %v1032_v5 = vld [vmem:[%s4443_s5 + $0x1698] sm:$0xff]  ;;  %v3621_v7 = vpack.c.bf16 %v1027_v2, %v1023_v63  ;;  %v1067_v63 = vld [vmem:[%s4443_s5 + $0x17b0] sm:$0xff] }
 0x1e0   : > { %3584 = vmatprep.subr.bf16.mxu1 %v3583_v15  ;;  %v995_v15 = vld [vmem:[%s4443_s5 + $0x1570] sm:$0xff]  ;;  %v3093_v20 = vpack.c.bf16 %v993_v13, %v989_v12  ;;  %v1036_v45 = vld [vmem:[%s4443_s5 + $0x16b8] sm:$0xff]  ;;  %v1074_v2 = vld [vmem:[%s4443_s5 + $0x17e8] sm:$0xff] }
 0x1e1   : > { %1770 = vmatmul.mubr.f32.vlgmr.msra.gmra.mrb[0].mxu0 %v5037_v8  ;;  %v1031_v12 = vld [vmem:[%s4443_s5 + $0x1690] sm:$0xff]  ;;  %v3623_v13 = vpack.c.bf16 %v1036_v45, %v1032_v5 }
 0x1e2   : > { %3074 = vmatpush1.bf16.msra.mxu0 %v3073_v21  ;;  %2338 = vmatmul.mubr.f32.vlgmr.msra.gmra.mrb[0].mxu1 %v5037_v8  ;;  %v976_v8 = vld [vmem:[%s4443_s5 + $0x14d8] sm:$0xff]  ;;  %v3605_v21 = vpack.c.bf16 %v995_v15, %v991_v43  ;;  %v1035_v43 = vld [vmem:[%s4443_s5 + $0x16b0] sm:$0xff]  ;;  %v1042_v15 = vld [vmem:[%s4443_s5 + $0x16e8] sm:$0xff] }
 0x1e3   : > { %3586 = vmatpush1.bf16.msra.mxu1 %v3585_v22  ;;  %3076 = vmatprep.subr.bf16.mxu0 %v3075_v23  ;;  %v3595_v52 = vpack.c.bf16 %v980_v44, %v976_v8  ;;  %v3095_v22 = vpack.c.bf16 %v1002_v16, %v998_v55  ;;  %v997_v23 = vld [vmem:[%s4443_s5 + $0x1580] sm:$0xff]  ;;  %v3613_v44 = vpack.c.bf16 %v1011_v38, %v1007_v36  ;;  %v1040_v55 = vld [vmem:[%s4443_s5 + $0x16d8] sm:$0xff]  ;;  %v1051_v36 = vld [vmem:[%s4443_s5 + $0x1730] sm:$0xff] }
 0x1e4   : > { %3588 = vmatprep.subr.bf16.mxu1 %v3587_v26  ;;  %1840 = vmatprep.mubr.f32.mxu0 %v1387_v30  ;;  %v1003_v26 = vld [vmem:[%s4443_s5 + $0x15b0] sm:$0xff]  ;;  %v3097_v32 = vpack.c.bf16 %v1001_v61, %v997_v23  ;;  %v1044_v16 = vld [vmem:[%s4443_s5 + $0x16f8] sm:$0xff]  ;;  %v3625_v19 = vpack.c.bf16 %v1035_v43, %v1031_v12  ;;  %v1058_v38 = vld [vmem:[%s4443_s5 + $0x1768] sm:$0xff] }
 0x1e5   : > { %2408 = vmatprep.mubr.f32.mxu1 %v1387_v30  ;;  %v1012_v30 = vld [vmem:[%s4443_s5 + $0x15f8] sm:$0xff]  ;;  %v3609_v0 = vpack.c.bf16 %v1003_v26, %v999_v24  ;;  %v1039_v23 = vld [vmem:[%s4443_s5 + $0x16d0] sm:$0xff]  ;;  %v3627_v61 = vpack.c.bf16 %v1044_v16, %v1040_v55  ;;  %v1050_v26 = vld [vmem:[%s4443_s5 + $0x1728] sm:$0xff] }
 0x1e6   : > { %3078 = vmatpush1.bf16.msra.mxu0 %v3077_v33  ;;  %v3099_v33 = vpack.c.bf16 %v1010_v28, %v1006_v27  ;;  %v3611_v37 = vpack.c.bf16 %v1012_v30, %v1008_v29  ;;  %v1043_v24 = vld [vmem:[%s4443_s5 + $0x16f0] sm:$0xff]  ;;  %v1048_v27 = vld [vmem:[%s4443_s5 + $0x1718] sm:$0xff]  ;;  %v1082_v43 = vld [vmem:[%s4443_s5 + $0x1828] sm:$0xff] }
 0x1e7   : > { %3590 = vmatpush1.bf16.msra.mxu1 %v3589_v34  ;;  %3080 = vmatprep.subr.bf16.mxu0 %v3079_v35  ;;  %v1005_v34 = vld [vmem:[%s4443_s5 + $0x15c0] sm:$0xff]  ;;  %v1052_v28 = vld [vmem:[%s4443_s5 + $0x1738] sm:$0xff]  ;;  %v3629_v30 = vpack.c.bf16 %v1043_v24, %v1039_v23  ;;  %v1075_v12 = vld [vmem:[%s4443_s5 + $0x17f0] sm:$0xff] }
 0x1e8   : > { %3592 = vmatprep.subr.bf16.mxu1 %v3591_v39  ;;  %v1009_v35 = vld [vmem:[%s4443_s5 + $0x15e0] sm:$0xff]  ;;  %v1014_v39 = vld [vmem:[%s4443_s5 + $0x1608] sm:$0xff]  ;;  %v5303_v55 = vld [vmem:[%s4568_s28 + $0x18] sm:$0xff] }
 0x1e9   : > { %v3101_v8 = vpack.c.bf16 %v1009_v35, %v1005_v34  ;;  %v1047_v34 = vld [vmem:[%s4443_s5 + $0x1710] sm:$0xff]  ;;  %v3631_v35 = vpack.c.bf16 %v1052_v28, %v1048_v27  ;;  %v1086_v24 = vld [vmem:[%s4443_s5 + $0x1848] sm:$0xff]  ;;  %v1088_v27 = vld [vmem:[%s4443_s5 + $0x1858] sm:$0xff] }
 0x1ea   : > { %3082 = vmatpush1.bf16.msra.mxu0 %v3081_v46  ;;  %v3103_v46 = vpack.c.bf16 %v1018_v40, %v1014_v39  ;;  %v1056_v39 = vld [vmem:[%s4443_s5 + $0x1758] sm:$0xff]  ;;  %v3633_v42 = vpack.c.bf16 %v1051_v36, %v1047_v34  ;;  %v1087_v34 = vld [vmem:[%s4443_s5 + $0x1850] sm:$0xff] }
 0x1eb   : > { %3594 = vmatpush1.bf16.msra.mxu1 %v3593_v47  ;;  %3084 = vmatprep.subr.bf16.mxu0 %v3083_v48  ;;  %v1013_v47 = vld [vmem:[%s4443_s5 + $0x1600] sm:$0xff]  ;;  %v1060_v40 = vld [vmem:[%s4443_s5 + $0x1778] sm:$0xff]  ;;  %v1091_v36 = vld [vmem:[%s4443_s5 + $0x1870] sm:$0xff] }
 0x1ec   : > { %3596 = vmatprep.subr.bf16.mxu1 %v3595_v52  ;;  %v1017_v48 = vld [vmem:[%s4443_s5 + $0x1620] sm:$0xff]  ;;  %v1022_v52 = vld [vmem:[%s4443_s5 + $0x1648] sm:$0xff]  ;;  %v1092_v28 = vld [vmem:[%s4443_s5 + $0x1878] sm:$0xff] }
 0x1ed   : > { %v3105_v57 = vpack.c.bf16 %v1017_v48, %v1013_v47  ;;  %v1055_v47 = vld [vmem:[%s4443_s5 + $0x1750] sm:$0xff]  ;;  %v3635_v48 = vpack.c.bf16 %v1060_v40, %v1056_v39  ;;  %v1096_v40 = vld [vmem:[%s4443_s5 + $0x1898] sm:$0xff] }
 0x1ee   : > { %3086 = vmatpush1.bf16.msra.mxu0 %v3085_v59  ;;  %v3107_v59 = vpack.c.bf16 %v1026_v53, %v1022_v52  ;;  %v1064_v52 = vld [vmem:[%s4443_s5 + $0x1798] sm:$0xff]  ;;  %v3637_v56 = vpack.c.bf16 %v1059_v49, %v1055_v47  ;;  %v1097_v47 = vld [vmem:[%s4443_s5 + $0x18a0] sm:$0xff] }
 0x1ef   : > { %3598 = vmatpush1.bf16.msra.mxu1 %v3597_v60  ;;  %3088 = vmatprep.subr.bf16.mxu0 %v3087_v62  ;;  %v1021_v60 = vld [vmem:[%s4443_s5 + $0x1640] sm:$0xff]  ;;  %v1068_v53 = vld [vmem:[%s4443_s5 + $0x17b8] sm:$0xff] }
 0x1f0   : > { %3600 = vmatprep.subr.bf16.mxu1 %v3599_v3  ;;  %v1025_v62 = vld [vmem:[%s4443_s5 + $0x1660] sm:$0xff]  ;;  %v1030_v3 = vld [vmem:[%s4443_s5 + $0x1688] sm:$0xff] }
 0x1f1   : > { %v3109_v6 = vpack.c.bf16 %v1025_v62, %v1021_v60  ;;  %v1063_v60 = vld [vmem:[%s4443_s5 + $0x1790] sm:$0xff]  ;;  %v3639_v62 = vpack.c.bf16 %v1068_v53, %v1064_v52  ;;  %v1106_v52 = vld [vmem:[%s4443_s5 + $0x18e8] sm:$0xff]  ;;  %v1108_v53 = vld [vmem:[%s4443_s5 + $0x18f8] sm:$0xff] }
 0x1f2   : > { %3090 = vmatpush1.bf16.msra.mxu0 %v3089_v9  ;;  %v3111_v9 = vpack.c.bf16 %v1034_v4, %v1030_v3  ;;  %v1072_v3 = vld [vmem:[%s4443_s5 + $0x17d8] sm:$0xff]  ;;  %v3641_v45 = vpack.c.bf16 %v1067_v63, %v1063_v60  ;;  %v1103_v60 = vld [vmem:[%s4443_s5 + $0x18d0] sm:$0xff] }
 0x1f3   : > { %3602 = vmatpush1.bf16.msra.mxu1 %v3601_v10  ;;  %3092 = vmatprep.subr.bf16.mxu0 %v3091_v11  ;;  %v1029_v10 = vld [vmem:[%s4443_s5 + $0x1680] sm:$0xff]  ;;  %v1076_v4 = vld [vmem:[%s4443_s5 + $0x17f8] sm:$0xff]  ;;  %v1107_v63 = vld [vmem:[%s4443_s5 + $0x18f0] sm:$0xff] }
 0x1f4   : > { %3604 = vmatprep.subr.bf16.mxu1 %v3603_v14  ;;  %v1033_v11 = vld [vmem:[%s4443_s5 + $0x16a0] sm:$0xff]  ;;  %v1038_v14 = vld [vmem:[%s4443_s5 + $0x16c8] sm:$0xff] }
 0x1f5   : > { %v3113_v17 = vpack.c.bf16 %v1033_v11, %v1029_v10  ;;  %v1071_v10 = vld [vmem:[%s4443_s5 + $0x17d0] sm:$0xff]  ;;  %v3643_v11 = vpack.c.bf16 %v1076_v4, %v1072_v3  ;;  %v1112_v3 = vld [vmem:[%s4443_s5 + $0x1918] sm:$0xff] }
 0x1f6   : > { %3094 = vmatpush1.bf16.msra.mxu0 %v3093_v20  ;;  %v3115_v20 = vpack.c.bf16 %v1042_v15, %v1038_v14  ;;  %v1080_v14 = vld [vmem:[%s4443_s5 + $0x1818] sm:$0xff] }
 0x1f7   : > { %3606 = vmatpush1.bf16.msra.mxu1 %v3605_v21  ;;  %3096 = vmatprep.subr.bf16.mxu0 %v3095_v22  ;;  %v1037_v21 = vld [vmem:[%s4443_s5 + $0x16c0] sm:$0xff]  ;;  %v1084_v15 = vld [vmem:[%s4443_s5 + $0x1838] sm:$0xff] }
 0x1f8   : > { %3608 = vmatprep.subr.bf16.mxu1 %v3607_v25  ;;  %v1041_v22 = vld [vmem:[%s4443_s5 + $0x16e0] sm:$0xff]  ;;  %v1046_v25 = vld [vmem:[%s4443_s5 + $0x1708] sm:$0xff]  ;;  %v3647_v23 = vpack.c.bf16 %v1084_v15, %v1080_v14  ;;  %v1116_v4 = vld [vmem:[%s4443_s5 + $0x1938] sm:$0xff] }
 0x1f9   : > { %v3117_v29 = vpack.c.bf16 %v1041_v22, %v1037_v21  ;;  %v1081_v21 = vld [vmem:[%s4443_s5 + $0x1820] sm:$0xff]  ;;  %v1079_v22 = vld [vmem:[%s4443_s5 + $0x1810] sm:$0xff]  ;;  %v1120_v14 = vld [vmem:[%s4443_s5 + $0x1958] sm:$0xff] }
 0x1fa   : > { %3098 = vmatpush1.bf16.msra.mxu0 %v3097_v32  ;;  %v3119_v32 = vpack.c.bf16 %v1050_v26, %v1046_v25  ;;  %v1090_v25 = vld [vmem:[%s4443_s5 + $0x1868] sm:$0xff]  ;;  %v5313_v26 = vrot.slane %v5303_v55, %v4558_v31  ;;  %v1124_v15 = vld [vmem:[%s4443_s5 + $0x1978] sm:$0xff] }
 0x1fb   : > { %3610 = vmatpush1.bf16.msra.mxu1 %v3609_v0  ;;  %3100 = vmatprep.subr.bf16.mxu0 %v3099_v33  ;;  %v1045_v0 = vld [vmem:[%s4443_s5 + $0x1700] sm:$0xff] }
 0x1fc   : > { %3612 = vmatprep.subr.bf16.mxu1 %v3611_v37  ;;  %v1049_v33 = vld [vmem:[%s4443_s5 + $0x1720] sm:$0xff]  ;;  %v1054_v37 = vld [vmem:[%s4443_s5 + $0x1748] sm:$0xff]  ;;  %v1403_v39 = vcombine.high %v5313_v26, %v5313_v26 }
 0x1fd   : > { %v3121_v41 = vpack.c.bf16 %v1049_v33, %v1045_v0  ;;  %v1085_v0 = vld [vmem:[%s4443_s5 + $0x1840] sm:$0xff] }
 0x1fe   : > { %3102 = vmatpush1.bf16.msra.mxu0 %v3101_v8  ;;  %v3123_v8 = vpack.c.bf16 %v1058_v38, %v1054_v37  ;;  %v1089_v33 = vld [vmem:[%s4443_s5 + $0x1860] sm:$0xff]  ;;  %v1094_v37 = vld [vmem:[%s4443_s5 + $0x1888] sm:$0xff] }
 0x1ff   : > { %3614 = vmatpush1.bf16.msra.mxu1 %v3613_v44  ;;  %3104 = vmatprep.subr.bf16.mxu0 %v3103_v46  ;;  %v1053_v44 = vld [vmem:[%s4443_s5 + $0x1740] sm:$0xff]  ;;  %v1098_v38 = vld [vmem:[%s4443_s5 + $0x18a8] sm:$0xff] }
 0x200   : > { %3616 = vmatprep.subr.bf16.mxu1 %v3615_v50  ;;  %v1057_v46 = vld [vmem:[%s4443_s5 + $0x1760] sm:$0xff]  ;;  %v1062_v50 = vld [vmem:[%s4443_s5 + $0x1788] sm:$0xff] }
 0x201   : > { %v3125_v54 = vpack.c.bf16 %v1057_v46, %v1053_v44  ;;  %v3143_v44 = vpack.c.bf16 %v1098_v38, %v1094_v37  ;;  %v1093_v46 = vld [vmem:[%s4443_s5 + $0x1880] sm:$0xff]  ;;  %v1134_v37 = vld [vmem:[%s4443_s5 + $0x19c8] sm:$0xff] }
 0x202   : > { %3106 = vmatpush1.bf16.msra.mxu0 %v3105_v57  ;;  %v3127_v57 = vpack.c.bf16 %v1066_v51, %v1062_v50  ;;  %v1099_v50 = vld [vmem:[%s4443_s5 + $0x18b0] sm:$0xff]  ;;  %v1102_v51 = vld [vmem:[%s4443_s5 + $0x18c8] sm:$0xff] }
 0x203   : > { %3618 = vmatpush1.bf16.msra.mxu1 %v3617_v58  ;;  %3108 = vmatprep.subr.bf16.mxu0 %v3107_v59  ;;  %v1061_v58 = vld [vmem:[%s4443_s5 + $0x1780] sm:$0xff]  ;;  %v1138_v38 = vld [vmem:[%s4443_s5 + $0x19e8] sm:$0xff] }
 0x204   : > { %3620 = vmatprep.subr.bf16.mxu1 %v3619_v1  ;;  %v1065_v59 = vld [vmem:[%s4443_s5 + $0x17a0] sm:$0xff]  ;;  %v1070_v1 = vld [vmem:[%s4443_s5 + $0x17c8] sm:$0xff] }
 0x205   : > { %v3129_v5 = vpack.c.bf16 %v1065_v59, %v1061_v58  ;;  %v1101_v58 = vld [vmem:[%s4443_s5 + $0x18c0] sm:$0xff] }
 0x206   : > { %3110 = vmatpush1.bf16.msra.mxu0 %v3109_v6  ;;  %v3131_v6 = vpack.c.bf16 %v1074_v2, %v1070_v1  ;;  %v1105_v59 = vld [vmem:[%s4443_s5 + $0x18e0] sm:$0xff]  ;;  %v1110_v1 = vld [vmem:[%s4443_s5 + $0x1908] sm:$0xff] }
 0x207   : > { %3622 = vmatpush1.bf16.msra.mxu1 %v3621_v7  ;;  %3112 = vmatprep.subr.bf16.mxu0 %v3111_v9  ;;  %v1069_v7 = vld [vmem:[%s4443_s5 + $0x17c0] sm:$0xff]  ;;  %v1114_v2 = vld [vmem:[%s4443_s5 + $0x1928] sm:$0xff] }
 0x208   : > { %3624 = vmatprep.subr.bf16.mxu1 %v3623_v13  ;;  %v1073_v9 = vld [vmem:[%s4443_s5 + $0x17e0] sm:$0xff]  ;;  %v1078_v13 = vld [vmem:[%s4443_s5 + $0x1808] sm:$0xff] }
 0x209   : > { %v3133_v16 = vpack.c.bf16 %v1073_v9, %v1069_v7  ;;  %v1109_v7 = vld [vmem:[%s4443_s5 + $0x1900] sm:$0xff] }
 0x20a   : > { %3114 = vmatpush1.bf16.msra.mxu0 %v3113_v17  ;;  %v3645_v17 = vpack.c.bf16 %v1075_v12, %v1071_v10  ;;  %v1113_v9 = vld [vmem:[%s4443_s5 + $0x1920] sm:$0xff]  ;;  %v1111_v10 = vld [vmem:[%s4443_s5 + $0x1910] sm:$0xff] }
 0x20b   : > { %3626 = vmatpush1.bf16.msra.mxu1 %v3625_v19  ;;  %3116 = vmatprep.subr.bf16.mxu0 %v3115_v20  ;;  %v3135_v19 = vpack.c.bf16 %v1082_v43, %v1078_v13  ;;  %v1077_v20 = vld [vmem:[%s4443_s5 + $0x1800] sm:$0xff]  ;;  %v1115_v12 = vld [vmem:[%s4443_s5 + $0x1930] sm:$0xff]  ;;  %v1118_v13 = vld [vmem:[%s4443_s5 + $0x1948] sm:$0xff] }
 0x20c   : > { %3628 = vmatprep.subr.bf16.mxu1 %v3627_v61  ;;  %v1083_v61 = vld [vmem:[%s4443_s5 + $0x1830] sm:$0xff]  ;;  %v1122_v43 = vld [vmem:[%s4443_s5 + $0x1968] sm:$0xff] }
 0x20e   : > { %3118 = vmatpush1.bf16.msra.mxu0 %v3117_v29  ;;  %v3137_v29 = vpack.c.bf16 %v1081_v21, %v1077_v20  ;;  %v1117_v20 = vld [vmem:[%s4443_s5 + $0x1940] sm:$0xff] }
 0x20f   : > { %3630 = vmatpush1.bf16.msra.mxu1 %v3629_v30  ;;  %3120 = vmatprep.subr.bf16.mxu0 %v3119_v32  ;;  %v3649_v30 = vpack.c.bf16 %v1083_v61, %v1079_v22  ;;  %v3139_v32 = vpack.c.bf16 %v1090_v25, %v1086_v24  ;;  %v1121_v21 = vld [vmem:[%s4443_s5 + $0x1960] sm:$0xff]  ;;  %v1119_v22 = vld [vmem:[%s4443_s5 + $0x1950] sm:$0xff]  ;;  %v1126_v24 = vld [vmem:[%s4443_s5 + $0x1988] sm:$0xff] }
 0x210   : > { %3632 = vmatprep.subr.bf16.mxu1 %v3631_v35  ;;  %v3651_v35 = vpack.c.bf16 %v1092_v28, %v1088_v27  ;;  %v1123_v61 = vld [vmem:[%s4443_s5 + $0x1970] sm:$0xff]  ;;  %v1130_v25 = vld [vmem:[%s4443_s5 + $0x19a8] sm:$0xff]  ;;  %v1128_v27 = vld [vmem:[%s4443_s5 + $0x1998] sm:$0xff] }
 0x211   : > { %v1132_v28 = vld [vmem:[%s4443_s5 + $0x19b8] sm:$0xff] }
 0x212   : > { %3122 = vmatpush1.bf16.msra.mxu0 %v3121_v41  ;;  %v1100_v41 = vld [vmem:[%s4443_s5 + $0x18b8] sm:$0xff] }
 0x213   : > { %3634 = vmatpush1.bf16.msra.mxu1 %v3633_v42  ;;  %3124 = vmatprep.subr.bf16.mxu0 %v3123_v8  ;;  %v3141_v42 = vpack.c.bf16 %v1089_v33, %v1085_v0  ;;  %v3653_v8 = vpack.c.bf16 %v1091_v36, %v1087_v34  ;;  %v3655_v49 = vpack.c.bf16 %v1100_v41, %v1096_v40  ;;  %v1125_v0 = vld [vmem:[%s4443_s5 + $0x1980] sm:$0xff]  ;;  %v1127_v34 = vld [vmem:[%s4443_s5 + $0x1990] sm:$0xff]  ;;  %v1140_v40 = vld [vmem:[%s4443_s5 + $0x19f8] sm:$0xff] }
 0x214   : > { %3636 = vmatprep.subr.bf16.mxu1 %v3635_v48  ;;  %v1095_v48 = vld [vmem:[%s4443_s5 + $0x1890] sm:$0xff]  ;;  %v1129_v33 = vld [vmem:[%s4443_s5 + $0x19a0] sm:$0xff] }
 0x215   : > { %v1131_v36 = vld [vmem:[%s4443_s5 + $0x19b0] sm:$0xff]  ;;  %v3161_v41 = vpack.c.bf16 %v1129_v33, %v1125_v0  ;;  %v1169_v0 = vld [vmem:[%s4443_s5 + $0x1ae0] sm:$0xff] }
 0x216   : > { %3126 = vmatpush1.bf16.msra.mxu0 %v3125_v54  ;;  %v3145_v54 = vpack.c.bf16 %v1097_v47, %v1093_v46  ;;  %v1137_v46 = vld [vmem:[%s4443_s5 + $0x19e0] sm:$0xff]  ;;  %v1135_v47 = vld [vmem:[%s4443_s5 + $0x19d0] sm:$0xff] }
 0x217   : > { %3638 = vmatpush1.bf16.msra.mxu1 %v3637_v56  ;;  %3128 = vmatprep.subr.bf16.mxu0 %v3127_v57  ;;  %v3657_v56 = vpack.c.bf16 %v1099_v50, %v1095_v48  ;;  %v3147_v57 = vpack.c.bf16 %v1106_v52, %v1102_v51  ;;  %v1142_v50 = vld [vmem:[%s4443_s5 + $0x1a08] sm:$0xff]  ;;  %v1144_v52 = vld [vmem:[%s4443_s5 + $0x1a18] sm:$0xff]  ;;  %v1167_v33 = vld [vmem:[%s4443_s5 + $0x1ad0] sm:$0xff] }
 0x218   : > { %3640 = vmatprep.subr.bf16.mxu1 %v3639_v62  ;;  %v1146_v51 = vld [vmem:[%s4443_s5 + $0x1a28] sm:$0xff] }
 0x21a   : > { %3130 = vmatpush1.bf16.msra.mxu0 %v3129_v5  ;;  %v3149_v5 = vpack.c.bf16 %v1105_v59, %v1101_v58  ;;  %v1145_v58 = vld [vmem:[%s4443_s5 + $0x1a20] sm:$0xff]  ;;  %v1143_v59 = vld [vmem:[%s4443_s5 + $0x1a10] sm:$0xff] }
 0x21b   : > { %3642 = vmatpush1.bf16.msra.mxu1 %v3641_v45  ;;  %3132 = vmatprep.subr.bf16.mxu0 %v3131_v6  ;;  %v3661_v45 = vpack.c.bf16 %v1107_v63, %v1103_v60  ;;  %v3151_v6 = vpack.c.bf16 %v1114_v2, %v1110_v1  ;;  %v1150_v63 = vld [vmem:[%s4443_s5 + $0x1a48] sm:$0xff]  ;;  %v1152_v2 = vld [vmem:[%s4443_s5 + $0x1a58] sm:$0xff] }
 0x21c   : > { %3644 = vmatprep.subr.bf16.mxu1 %v3643_v11  ;;  %v3663_v11 = vpack.c.bf16 %v1116_v4, %v1112_v3  ;;  %v1154_v1 = vld [vmem:[%s4443_s5 + $0x1a68] sm:$0xff]  ;;  %v1156_v3 = vld [vmem:[%s4443_s5 + $0x1a78] sm:$0xff] }
 0x21e   : > { %3134 = vmatpush1.bf16.msra.mxu0 %v3133_v16  ;;  %v3153_v16 = vpack.c.bf16 %v1113_v9, %v1109_v7  ;;  %v1153_v7 = vld [vmem:[%s4443_s5 + $0x1a60] sm:$0xff]  ;;  %v1151_v9 = vld [vmem:[%s4443_s5 + $0x1a50] sm:$0xff] }
 0x21f   : > { %3646 = vmatpush1.bf16.msra.mxu1 %v3645_v17  ;;  %3136 = vmatprep.subr.bf16.mxu0 %v3135_v19  ;;  %v3665_v17 = vpack.c.bf16 %v1115_v12, %v1111_v10  ;;  %v3155_v19 = vpack.c.bf16 %v1122_v43, %v1118_v13  ;;  %v3683_v10 = vpack.c.bf16 %v1156_v3, %v1152_v2  ;;  %v1158_v12 = vld [vmem:[%s4443_s5 + $0x1a88] sm:$0xff]  ;;  %v1160_v43 = vld [vmem:[%s4443_s5 + $0x1a98] sm:$0xff] }
 0x220   : > { %3648 = vmatprep.subr.bf16.mxu1 %v3647_v23  ;;  %v3667_v23 = vpack.c.bf16 %v1124_v15, %v1120_v14  ;;  %v1162_v13 = vld [vmem:[%s4443_s5 + $0x1aa8] sm:$0xff]  ;;  %v1164_v14 = vld [vmem:[%s4443_s5 + $0x1ab8] sm:$0xff] }
 0x221   : > { %1841 = vmatmul.mubr.f32.vlgmr.msra.gmra.mrb[0].mxu0 %v5174_v18  ;;  %v1196_v2 = vld [vmem:[%s4443_s5 + $0x1bb8] sm:$0xff] }
 0x222   : > { %3138 = vmatpush1.bf16.msra.mxu0 %v3137_v29  ;;  %2409 = vmatmul.mubr.f32.vlgmr.msra.gmra.mrb[0].mxu1 %v5174_v18  ;;  %v1104_v18 = vld [vmem:[%s4443_s5 + $0x18d8] sm:$0xff]  ;;  %v3157_v29 = vpack.c.bf16 %v1121_v21, %v1117_v20  ;;  %v1161_v20 = vld [vmem:[%s4443_s5 + $0x1aa0] sm:$0xff]  ;;  %v1159_v21 = vld [vmem:[%s4443_s5 + $0x1a90] sm:$0xff] }
 0x223   : > { %3650 = vmatpush1.bf16.msra.mxu1 %v3649_v30  ;;  %3140 = vmatprep.subr.bf16.mxu0 %v3139_v32  ;;  %v3659_v62 = vpack.c.bf16 %v1108_v53, %v1104_v18  ;;  %v3669_v30 = vpack.c.bf16 %v1123_v61, %v1119_v22  ;;  %v3159_v32 = vpack.c.bf16 %v1130_v25, %v1126_v24  ;;  %v1148_v18 = vld [vmem:[%s4443_s5 + $0x1a38] sm:$0xff]  ;;  %v1166_v61 = vld [vmem:[%s4443_s5 + $0x1ac8] sm:$0xff] }
 0x224   : > { %3652 = vmatprep.subr.bf16.mxu1 %v3651_v35  ;;  %1911 = vmatprep.mubr.f32.mxu0 %v1403_v39  ;;  %v3671_v35 = vpack.c.bf16 %v1132_v28, %v1128_v27  ;;  %v3679_v60 = vpack.c.bf16 %v1148_v18, %v1144_v52  ;;  %v3687_v22 = vpack.c.bf16 %v1164_v14, %v1160_v43  ;;  %v1170_v24 = vld [vmem:[%s4443_s5 + $0x1ae8] sm:$0xff]  ;;  %v1168_v25 = vld [vmem:[%s4443_s5 + $0x1ad8] sm:$0xff] }
 0x225   : > { %2479 = vmatprep.mubr.f32.mxu1 %v1403_v39  ;;  %v1136_v39 = vld [vmem:[%s4443_s5 + $0x19d8] sm:$0xff] }
 0x226   : > { %3142 = vmatpush1.bf16.msra.mxu0 %v3141_v42  ;;  %v3673_v42 = vpack.c.bf16 %v1131_v36, %v1127_v34  ;;  %v3675_v48 = vpack.c.bf16 %v1140_v40, %v1136_v39  ;;  %v1172_v27 = vld [vmem:[%s4443_s5 + $0x1af8] sm:$0xff]  ;;  %v1174_v36 = vld [vmem:[%s4443_s5 + $0x1b08] sm:$0xff] }
 0x227   : > { %3654 = vmatpush1.bf16.msra.mxu1 %v3653_v8  ;;  %3144 = vmatprep.subr.bf16.mxu0 %v3143_v44  ;;  %v3163_v8 = vpack.c.bf16 %v1138_v38, %v1134_v37  ;;  %v1133_v44 = vld [vmem:[%s4443_s5 + $0x19c0] sm:$0xff]  ;;  %v3691_v34 = vpack.c.bf16 %v1172_v27, %v1168_v25  ;;  %v1178_v37 = vld [vmem:[%s4443_s5 + $0x1b28] sm:$0xff]  ;;  %v1176_v38 = vld [vmem:[%s4443_s5 + $0x1b18] sm:$0xff] }
 0x228   : > { %3656 = vmatprep.subr.bf16.mxu1 %v3655_v49  ;;  %v1139_v49 = vld [vmem:[%s4443_s5 + $0x19f0] sm:$0xff]  ;;  %v3165_v53 = vpack.c.bf16 %v1137_v46, %v1133_v44  ;;  %v1180_v39 = vld [vmem:[%s4443_s5 + $0x1b38] sm:$0xff]  ;;  %v1177_v44 = vld [vmem:[%s4443_s5 + $0x1b20] sm:$0xff] }
 0x229   : > { %v1175_v46 = vld [vmem:[%s4443_s5 + $0x1b10] sm:$0xff]  ;;  %v1188_v52 = vld [vmem:[%s4443_s5 + $0x1b78] sm:$0xff] }
 0x22a   : > { %3146 = vmatpush1.bf16.msra.mxu0 %v3145_v54  ;;  %v3677_v54 = vpack.c.bf16 %v1139_v49, %v1135_v47  ;;  %v3695_v47 = vpack.c.bf16 %v1180_v39, %v1176_v38  ;;  %v1182_v49 = vld [vmem:[%s4443_s5 + $0x1b48] sm:$0xff]  ;;  %v1204_v43 = vld [vmem:[%s4443_s5 + $0x1bf8] sm:$0xff] }
 0x22b   : > { %3658 = vmatpush1.bf16.msra.mxu1 %v3657_v56  ;;  %3148 = vmatprep.subr.bf16.mxu0 %v3147_v57  ;;  %v3167_v56 = vpack.c.bf16 %v1146_v51, %v1142_v50  ;;  %v1141_v57 = vld [vmem:[%s4443_s5 + $0x1a00] sm:$0xff]  ;;  %v1186_v50 = vld [vmem:[%s4443_s5 + $0x1b68] sm:$0xff]  ;;  %v1184_v51 = vld [vmem:[%s4443_s5 + $0x1b58] sm:$0xff] }
 0x22c   : > { %3660 = vmatprep.subr.bf16.mxu1 %v3659_v62  ;;  %v1147_v62 = vld [vmem:[%s4443_s5 + $0x1a30] sm:$0xff]  ;;  %v3169_v4 = vpack.c.bf16 %v1145_v58, %v1141_v57  ;;  %v1185_v57 = vld [vmem:[%s4443_s5 + $0x1b60] sm:$0xff]  ;;  %v1208_v25 = vld [vmem:[%s4443_s5 + $0x1c18] sm:$0xff] }
 0x22d   : > { %v1183_v58 = vld [vmem:[%s4443_s5 + $0x1b50] sm:$0xff]  ;;  %v1212_v27 = vld [vmem:[%s4443_s5 + $0x1c38] sm:$0xff] }
 0x22e   : > { %3150 = vmatpush1.bf16.msra.mxu0 %v3149_v5  ;;  %v3681_v5 = vpack.c.bf16 %v1147_v62, %v1143_v59  ;;  %v3699_v59 = vpack.c.bf16 %v1188_v52, %v1184_v51  ;;  %v1190_v62 = vld [vmem:[%s4443_s5 + $0x1b88] sm:$0xff]  ;;  %v1216_v38 = vld [vmem:[%s4443_s5 + $0x1c58] sm:$0xff] }
 0x22f   : > { %3662 = vmatpush1.bf16.msra.mxu1 %v3661_v45  ;;  %3152 = vmatprep.subr.bf16.mxu0 %v3151_v6  ;;  %v3171_v45 = vpack.c.bf16 %v1154_v1, %v1150_v63  ;;  %v1149_v6 = vld [vmem:[%s4443_s5 + $0x1a40] sm:$0xff]  ;;  %v1194_v63 = vld [vmem:[%s4443_s5 + $0x1ba8] sm:$0xff]  ;;  %v1192_v1 = vld [vmem:[%s4443_s5 + $0x1b98] sm:$0xff] }
 0x230   : > { %3664 = vmatprep.subr.bf16.mxu1 %v3663_v11  ;;  %v1155_v11 = vld [vmem:[%s4443_s5 + $0x1a70] sm:$0xff]  ;;  %v3173_v15 = vpack.c.bf16 %v1153_v7, %v1149_v6  ;;  %v1193_v6 = vld [vmem:[%s4443_s5 + $0x1ba0] sm:$0xff]  ;;  %v1220_v39 = vld [vmem:[%s4443_s5 + $0x1c78] sm:$0xff] }
 0x231   : > { %v1191_v7 = vld [vmem:[%s4443_s5 + $0x1b90] sm:$0xff]  ;;  %v1224_v52 = vld [vmem:[%s4443_s5 + $0x1c98] sm:$0xff] }
 0x232   : > { %3154 = vmatpush1.bf16.msra.mxu0 %v3153_v16  ;;  %v3685_v16 = vpack.c.bf16 %v1155_v11, %v1151_v9  ;;  %v3703_v9 = vpack.c.bf16 %v1196_v2, %v1192_v1  ;;  %v1198_v11 = vld [vmem:[%s4443_s5 + $0x1bc8] sm:$0xff]  ;;  %v1236_v2 = vld [vmem:[%s4443_s5 + $0x1cf8] sm:$0xff] }
 0x233   : > { %3666 = vmatpush1.bf16.msra.mxu1 %v3665_v17  ;;  %3156 = vmatprep.subr.bf16.mxu0 %v3155_v19  ;;  %v3175_v17 = vpack.c.bf16 %v1162_v13, %v1158_v12  ;;  %v1157_v19 = vld [vmem:[%s4443_s5 + $0x1a80] sm:$0xff]  ;;  %v1202_v12 = vld [vmem:[%s4443_s5 + $0x1be8] sm:$0xff]  ;;  %v1200_v13 = vld [vmem:[%s4443_s5 + $0x1bd8] sm:$0xff] }
 0x234   : > { %3668 = vmatprep.subr.bf16.mxu1 %v3667_v23  ;;  %v1163_v23 = vld [vmem:[%s4443_s5 + $0x1ab0] sm:$0xff]  ;;  %v3177_v28 = vpack.c.bf16 %v1161_v20, %v1157_v19  ;;  %v1201_v19 = vld [vmem:[%s4443_s5 + $0x1be0] sm:$0xff]  ;;  %v1234_v1 = vld [vmem:[%s4443_s5 + $0x1ce8] sm:$0xff] }
 0x235   : > { %v1199_v20 = vld [vmem:[%s4443_s5 + $0x1bd0] sm:$0xff] }
 0x236   : > { %3158 = vmatpush1.bf16.msra.mxu0 %v3157_v29  ;;  %v3689_v29 = vpack.c.bf16 %v1163_v23, %v1159_v21  ;;  %v3707_v21 = vpack.c.bf16 %v1204_v43, %v1200_v13  ;;  %v1206_v23 = vld [vmem:[%s4443_s5 + $0x1c08] sm:$0xff]  ;;  %v1240_v13 = vld [vmem:[%s4443_s5 + $0x1d18] sm:$0xff] }
 0x237   : > { %3670 = vmatpush1.bf16.msra.mxu1 %v3669_v30  ;;  %3160 = vmatprep.subr.bf16.mxu0 %v3159_v32  ;;  %v3179_v30 = vpack.c.bf16 %v1170_v24, %v1166_v61  ;;  %v1165_v32 = vld [vmem:[%s4443_s5 + $0x1ac0] sm:$0xff]  ;;  %v1210_v61 = vld [vmem:[%s4443_s5 + $0x1c28] sm:$0xff]  ;;  %v1388_v24 = vcombine.high %v5303_v55, %v5303_v55  ;;  %v1211_v55 = vld [vmem:[%s4443_s5 + $0x1c30] sm:$0xff] }
 0x238   : > { %3672 = vmatprep.subr.bf16.mxu1 %v3671_v35  ;;  %v1171_v35 = vld [vmem:[%s4443_s5 + $0x1af0] sm:$0xff]  ;;  %v3181_v40 = vpack.c.bf16 %v1169_v0, %v1165_v32  ;;  %v1205_v32 = vld [vmem:[%s4443_s5 + $0x1c00] sm:$0xff]  ;;  %v1244_v43 = vld [vmem:[%s4443_s5 + $0x1d38] sm:$0xff] }
 0x239   : > { %v1209_v0 = vld [vmem:[%s4443_s5 + $0x1c20] sm:$0xff] }
 0x23a   : > { %3162 = vmatpush1.bf16.msra.mxu0 %v3161_v41  ;;  %v3693_v41 = vpack.c.bf16 %v1171_v35, %v1167_v33  ;;  %v1207_v33 = vld [vmem:[%s4443_s5 + $0x1c10] sm:$0xff]  ;;  %v1214_v35 = vld [vmem:[%s4443_s5 + $0x1c48] sm:$0xff] }
 0x23b   : > { %3674 = vmatpush1.bf16.msra.mxu1 %v3673_v42  ;;  %3164 = vmatprep.subr.bf16.mxu0 %v3163_v8  ;;  %v3183_v42 = vpack.c.bf16 %v1178_v37, %v1174_v36  ;;  %v1173_v8 = vld [vmem:[%s4443_s5 + $0x1b00] sm:$0xff]  ;;  %v1218_v36 = vld [vmem:[%s4443_s5 + $0x1c68] sm:$0xff]  ;;  %v5450_v37 = vrot.slane %v1388_v24, %v4558_v31  ;;  %v1248_v24 = vld [vmem:[%s4443_s5 + $0x1d58] sm:$0xff] }
 0x23c   : > { %3676 = vmatprep.subr.bf16.mxu1 %v3675_v48  ;;  %v1179_v48 = vld [vmem:[%s4443_s5 + $0x1b30] sm:$0xff]  ;;  %v3185_v18 = vpack.c.bf16 %v1177_v44, %v1173_v8  ;;  %v1213_v8 = vld [vmem:[%s4443_s5 + $0x1c40] sm:$0xff] }
 0x23d   : > { %v1217_v44 = vld [vmem:[%s4443_s5 + $0x1c60] sm:$0xff]  ;;  %v1404_v51 = vcombine.high %v5450_v37, %v5450_v37 }
 0x23e   : > { %3166 = vmatpush1.bf16.msra.mxu0 %v3165_v53  ;;  %v3697_v53 = vpack.c.bf16 %v1179_v48, %v1175_v46  ;;  %v1215_v46 = vld [vmem:[%s4443_s5 + $0x1c50] sm:$0xff] }
 0x23f   : > { %3678 = vmatpush1.bf16.msra.mxu1 %v3677_v54  ;;  %3168 = vmatprep.subr.bf16.mxu0 %v3167_v56  ;;  %v3187_v54 = vpack.c.bf16 %v1186_v50, %v1182_v49  ;;  %v1181_v56 = vld [vmem:[%s4443_s5 + $0x1b40] sm:$0xff]  ;;  %v1219_v48 = vld [vmem:[%s4443_s5 + $0x1c70] sm:$0xff]  ;;  %v1222_v49 = vld [vmem:[%s4443_s5 + $0x1c88] sm:$0xff] }
 0x240   : > { %3680 = vmatprep.subr.bf16.mxu1 %v3679_v60  ;;  %v1187_v60 = vld [vmem:[%s4443_s5 + $0x1b70] sm:$0xff]  ;;  %v3189_v3 = vpack.c.bf16 %v1185_v57, %v1181_v56  ;;  %v1226_v50 = vld [vmem:[%s4443_s5 + $0x1ca8] sm:$0xff]  ;;  %v1221_v57 = vld [vmem:[%s4443_s5 + $0x1c80] sm:$0xff] }
 0x241   : > { %v3207_v56 = vpack.c.bf16 %v1226_v50, %v1222_v49  ;;  %v1266_v49 = vld [vmem:[%s4443_s5 + $0x1de8] sm:$0xff]  ;;  %v1264_v50 = vld [vmem:[%s4443_s5 + $0x1dd8] sm:$0xff] }
 0x242   : > { %3170 = vmatpush1.bf16.msra.mxu0 %v3169_v4  ;;  %v3701_v4 = vpack.c.bf16 %v1187_v60, %v1183_v58  ;;  %v1225_v58 = vld [vmem:[%s4443_s5 + $0x1ca0] sm:$0xff] }
 0x243   : > { %3682 = vmatpush1.bf16.msra.mxu1 %v3681_v5  ;;  %3172 = vmatprep.subr.bf16.mxu0 %v3171_v45  ;;  %v3191_v5 = vpack.c.bf16 %v1194_v63, %v1190_v62  ;;  %v1189_v45 = vld [vmem:[%s4443_s5 + $0x1b80] sm:$0xff]  ;;  %v1227_v62 = vld [vmem:[%s4443_s5 + $0x1cb0] sm:$0xff]  ;;  %v1230_v63 = vld [vmem:[%s4443_s5 + $0x1cc8] sm:$0xff] }
 0x244   : > { %3684 = vmatprep.subr.bf16.mxu1 %v3683_v10  ;;  %v1195_v10 = vld [vmem:[%s4443_s5 + $0x1bb0] sm:$0xff]  ;;  %v3193_v14 = vpack.c.bf16 %v1193_v6, %v1189_v45  ;;  %v1229_v45 = vld [vmem:[%s4443_s5 + $0x1cc0] sm:$0xff] }
 0x245   : > { %v1233_v6 = vld [vmem:[%s4443_s5 + $0x1ce0] sm:$0xff] }
 0x246   : > { %3174 = vmatpush1.bf16.msra.mxu0 %v3173_v15  ;;  %v3705_v15 = vpack.c.bf16 %v1195_v10, %v1191_v7  ;;  %v1231_v7 = vld [vmem:[%s4443_s5 + $0x1cd0] sm:$0xff] }
 0x247   : > { %3686 = vmatpush1.bf16.msra.mxu1 %v3685_v16  ;;  %3176 = vmatprep.subr.bf16.mxu0 %v3175_v17  ;;  %v3195_v16 = vpack.c.bf16 %v1202_v12, %v1198_v11  ;;  %v1197_v17 = vld [vmem:[%s4443_s5 + $0x1bc0] sm:$0xff]  ;;  %v1235_v10 = vld [vmem:[%s4443_s5 + $0x1cf0] sm:$0xff]  ;;  %v1238_v11 = vld [vmem:[%s4443_s5 + $0x1d08] sm:$0xff] }
 0x248   : > { %3688 = vmatprep.subr.bf16.mxu1 %v3687_v22  ;;  %v1203_v22 = vld [vmem:[%s4443_s5 + $0x1bf0] sm:$0xff]  ;;  %v1242_v12 = vld [vmem:[%s4443_s5 + $0x1d28] sm:$0xff] }
 0x24a   : > { %3178 = vmatpush1.bf16.msra.mxu0 %v3177_v28  ;;  %v3197_v28 = vpack.c.bf16 %v1201_v19, %v1197_v17  ;;  %v1237_v17 = vld [vmem:[%s4443_s5 + $0x1d00] sm:$0xff] }
 0x24b   : > { %3690 = vmatpush1.bf16.msra.mxu1 %v3689_v29  ;;  %3180 = vmatprep.subr.bf16.mxu0 %v3179_v30  ;;  %v3709_v29 = vpack.c.bf16 %v1203_v22, %v1199_v20  ;;  %v3199_v30 = vpack.c.bf16 %v1210_v61, %v1206_v23  ;;  %v1241_v19 = vld [vmem:[%s4443_s5 + $0x1d20] sm:$0xff]  ;;  %v1239_v20 = vld [vmem:[%s4443_s5 + $0x1d10] sm:$0xff]  ;;  %v1246_v23 = vld [vmem:[%s4443_s5 + $0x1d48] sm:$0xff] }
 0x24c   : > { %3692 = vmatprep.subr.bf16.mxu1 %v3691_v34  ;;  %v3711_v34 = vpack.c.bf16 %v1212_v27, %v1208_v25  ;;  %v1243_v22 = vld [vmem:[%s4443_s5 + $0x1d30] sm:$0xff]  ;;  %v1250_v61 = vld [vmem:[%s4443_s5 + $0x1d68] sm:$0xff]  ;;  %v1252_v25 = vld [vmem:[%s4443_s5 + $0x1d78] sm:$0xff]  ;;  %v3217_v27 = vpack.c.bf16 %v1241_v19, %v1237_v17 }
 0x24d   : > { %v1279_v17 = vld [vmem:[%s4443_s5 + $0x1e50] sm:$0xff] }
 0x24e   : > { %3182 = vmatpush1.bf16.msra.mxu0 %v3181_v40  ;;  %v3201_v40 = vpack.c.bf16 %v1209_v0, %v1205_v32  ;;  %v1249_v32 = vld [vmem:[%s4443_s5 + $0x1d60] sm:$0xff]  ;;  %v1247_v0 = vld [vmem:[%s4443_s5 + $0x1d50] sm:$0xff] }
 0x24f   : > { %3694 = vmatpush1.bf16.msra.mxu1 %v3693_v41  ;;  %3184 = vmatprep.subr.bf16.mxu0 %v3183_v42  ;;  %v3713_v41 = vpack.c.bf16 %v1211_v55, %v1207_v33  ;;  %v3203_v42 = vpack.c.bf16 %v1218_v36, %v1214_v35  ;;  %v3731_v33 = vpack.c.bf16 %v1252_v25, %v1248_v24  ;;  %v1254_v55 = vld [vmem:[%s4443_s5 + $0x1d88] sm:$0xff]  ;;  %v1256_v36 = vld [vmem:[%s4443_s5 + $0x1d98] sm:$0xff] }
 0x250   : > { %3696 = vmatprep.subr.bf16.mxu1 %v3695_v47  ;;  %v3715_v47 = vpack.c.bf16 %v1220_v39, %v1216_v38  ;;  %v1258_v35 = vld [vmem:[%s4443_s5 + $0x1da8] sm:$0xff]  ;;  %v1260_v38 = vld [vmem:[%s4443_s5 + $0x1db8] sm:$0xff] }
 0x252   : > { %3186 = vmatpush1.bf16.msra.mxu0 %v3185_v18  ;;  %v1228_v18 = vld [vmem:[%s4443_s5 + $0x1cb8] sm:$0xff] }
 0x253   : > { %3698 = vmatpush1.bf16.msra.mxu1 %v3697_v53  ;;  %3188 = vmatprep.subr.bf16.mxu0 %v3187_v54  ;;  %v3205_v53 = vpack.c.bf16 %v1217_v44, %v1213_v8  ;;  %v3717_v54 = vpack.c.bf16 %v1219_v48, %v1215_v46  ;;  %v3719_v60 = vpack.c.bf16 %v1228_v18, %v1224_v52  ;;  %v1257_v8 = vld [vmem:[%s4443_s5 + $0x1da0] sm:$0xff]  ;;  %v1255_v44 = vld [vmem:[%s4443_s5 + $0x1d90] sm:$0xff]  ;;  %v1262_v48 = vld [vmem:[%s4443_s5 + $0x1dc8] sm:$0xff] }
 0x254   : > { %3700 = vmatprep.subr.bf16.mxu1 %v3699_v59  ;;  %v1223_v59 = vld [vmem:[%s4443_s5 + $0x1c90] sm:$0xff]  ;;  %v3735_v46 = vpack.c.bf16 %v1260_v38, %v1256_v36 }
 0x256   : > { %3190 = vmatpush1.bf16.msra.mxu0 %v3189_v3  ;;  %v3209_v3 = vpack.c.bf16 %v1225_v58, %v1221_v57  ;;  %v1263_v57 = vld [vmem:[%s4443_s5 + $0x1dd0] sm:$0xff] }
 0x257   : > { %3702 = vmatpush1.bf16.msra.mxu1 %v3701_v4  ;;  %3192 = vmatprep.subr.bf16.mxu0 %v3191_v5  ;;  %v3721_v4 = vpack.c.bf16 %v1227_v62, %v1223_v59  ;;  %v3211_v5 = vpack.c.bf16 %v1234_v1, %v1230_v63  ;;  %v1267_v59 = vld [vmem:[%s4443_s5 + $0x1df0] sm:$0xff]  ;;  %v1274_v62 = vld [vmem:[%s4443_s5 + $0x1e28] sm:$0xff]  ;;  %v1272_v63 = vld [vmem:[%s4443_s5 + $0x1e18] sm:$0xff] }
 0x258   : > { %3704 = vmatprep.subr.bf16.mxu1 %v3703_v9  ;;  %v1276_v1 = vld [vmem:[%s4443_s5 + $0x1e38] sm:$0xff] }
 0x25a   : > { %3194 = vmatpush1.bf16.msra.mxu0 %v3193_v14  ;;  %v3213_v14 = vpack.c.bf16 %v1233_v6, %v1229_v45  ;;  %v1271_v45 = vld [vmem:[%s4443_s5 + $0x1e10] sm:$0xff]  ;;  %v3743_v6 = vpack.c.bf16 %v1276_v1, %v1272_v63 }
 0x25b   : > { %3706 = vmatpush1.bf16.msra.mxu1 %v3705_v15  ;;  %3196 = vmatprep.subr.bf16.mxu0 %v3195_v16  ;;  %v3725_v15 = vpack.c.bf16 %v1235_v10, %v1231_v7  ;;  %v3215_v16 = vpack.c.bf16 %v1242_v12, %v1238_v11  ;;  %v1275_v7 = vld [vmem:[%s4443_s5 + $0x1e30] sm:$0xff]  ;;  %v1282_v10 = vld [vmem:[%s4443_s5 + $0x1e68] sm:$0xff]  ;;  %v1280_v11 = vld [vmem:[%s4443_s5 + $0x1e58] sm:$0xff] }
 0x25c   : > { %3708 = vmatprep.subr.bf16.mxu1 %v3707_v21  ;;  %v3727_v21 = vpack.c.bf16 %v1244_v43, %v1240_v13  ;;  %v1284_v12 = vld [vmem:[%s4443_s5 + $0x1e78] sm:$0xff]  ;;  %v3745_v43 = vpack.c.bf16 %v1275_v7, %v1271_v45  ;;  %v1315_v45 = vld [vmem:[%s4443_s5 + $0x1f70] sm:$0xff]  ;;  %v1322_v7 = vld [vmem:[%s4443_s5 + $0x1fa8] sm:$0xff] }
 0x25d   : > { %v3747_v19 = vpack.c.bf16 %v1284_v12, %v1280_v11 }
 0x25e   : > { %3198 = vmatpush1.bf16.msra.mxu0 %v3197_v28  ;;  %v3729_v28 = vpack.c.bf16 %v1243_v22, %v1239_v20  ;;  %v1283_v20 = vld [vmem:[%s4443_s5 + $0x1e70] sm:$0xff]  ;;  %v1290_v22 = vld [vmem:[%s4443_s5 + $0x1ea8] sm:$0xff] }
 0x25f   : > { %3710 = vmatpush1.bf16.msra.mxu1 %v3709_v29  ;;  %3200 = vmatprep.subr.bf16.mxu0 %v3199_v30  ;;  %v3219_v29 = vpack.c.bf16 %v1250_v61, %v1246_v23  ;;  %v1245_v30 = vld [vmem:[%s4443_s5 + $0x1d40] sm:$0xff]  ;;  %v1288_v23 = vld [vmem:[%s4443_s5 + $0x1e98] sm:$0xff]  ;;  %v3749_v25 = vpack.c.bf16 %v1283_v20, %v1279_v17  ;;  %v1323_v17 = vld [vmem:[%s4443_s5 + $0x1fb0] sm:$0xff] }
 0x260   : > { %3712 = vmatprep.subr.bf16.mxu1 %v3711_v34  ;;  %v1251_v34 = vld [vmem:[%s4443_s5 + $0x1d70] sm:$0xff]  ;;  %v3221_v39 = vpack.c.bf16 %v1249_v32, %v1245_v30  ;;  %v1292_v61 = vld [vmem:[%s4443_s5 + $0x1eb8] sm:$0xff]  ;;  %v1330_v20 = vld [vmem:[%s4443_s5 + $0x1fe8] sm:$0xff] }
 0x261   : > { %1912 = vmatmul.mubr.f32.vlgmr.msra.gmra.mrb[0].mxu0 %v5313_v26  ;;  %v1287_v30 = vld [vmem:[%s4443_s5 + $0x1e90] sm:$0xff]  ;;  %v3751_v32 = vpack.c.bf16 %v1292_v61, %v1288_v23 }
 0x262   : > { %3202 = vmatpush1.bf16.msra.mxu0 %v3201_v40  ;;  %2480 = vmatmul.mubr.f32.vlgmr.msra.gmra.mrb[0].mxu1 %v5313_v26  ;;  %v1232_v26 = vld [vmem:[%s4443_s5 + $0x1cd8] sm:$0xff]  ;;  %v3733_v40 = vpack.c.bf16 %v1251_v34, %v1247_v0  ;;  %v1291_v0 = vld [vmem:[%s4443_s5 + $0x1eb0] sm:$0xff]  ;;  %v1298_v34 = vld [vmem:[%s4443_s5 + $0x1ee8] sm:$0xff] }
 0x263   : > { %3714 = vmatpush1.bf16.msra.mxu1 %v3713_v41  ;;  %3204 = vmatprep.subr.bf16.mxu0 %v3203_v42  ;;  %v3723_v9 = vpack.c.bf16 %v1236_v2, %v1232_v26  ;;  %v3223_v41 = vpack.c.bf16 %v1258_v35, %v1254_v55  ;;  %v1253_v42 = vld [vmem:[%s4443_s5 + $0x1d80] sm:$0xff]  ;;  %v3741_v2 = vpack.c.bf16 %v1267_v59, %v1263_v57  ;;  %v1296_v55 = vld [vmem:[%s4443_s5 + $0x1ed8] sm:$0xff]  ;;  %v1307_v57 = vld [vmem:[%s4443_s5 + $0x1f30] sm:$0xff] }
 0x264   : > { %3716 = vmatprep.subr.bf16.mxu1 %v3715_v47  ;;  %1982 = vmatprep.mubr.f32.mxu0 %v1404_v51  ;;  %v1259_v47 = vld [vmem:[%s4443_s5 + $0x1db0] sm:$0xff]  ;;  %v3225_v52 = vpack.c.bf16 %v1257_v8, %v1253_v42  ;;  %v1300_v35 = vld [vmem:[%s4443_s5 + $0x1ef8] sm:$0xff]  ;;  %v3753_v38 = vpack.c.bf16 %v1291_v0, %v1287_v30  ;;  %v1314_v59 = vld [vmem:[%s4443_s5 + $0x1f68] sm:$0xff] }
 0x265   : > { %2550 = vmatprep.mubr.f32.mxu1 %v1404_v51  ;;  %v1268_v51 = vld [vmem:[%s4443_s5 + $0x1df8] sm:$0xff]  ;;  %v3737_v18 = vpack.c.bf16 %v1259_v47, %v1255_v44  ;;  %v1295_v42 = vld [vmem:[%s4443_s5 + $0x1ed0] sm:$0xff]  ;;  %v3755_v8 = vpack.c.bf16 %v1300_v35, %v1296_v55  ;;  %v1306_v47 = vld [vmem:[%s4443_s5 + $0x1f28] sm:$0xff] }
 0x266   : > { %3206 = vmatpush1.bf16.msra.mxu0 %v3205_v53  ;;  %v3227_v53 = vpack.c.bf16 %v1266_v49, %v1262_v48  ;;  %v3739_v58 = vpack.c.bf16 %v1268_v51, %v1264_v50  ;;  %v1299_v44 = vld [vmem:[%s4443_s5 + $0x1ef0] sm:$0xff]  ;;  %v1304_v48 = vld [vmem:[%s4443_s5 + $0x1f18] sm:$0xff] }
 0x267   : > { %3718 = vmatpush1.bf16.msra.mxu1 %v3717_v54  ;;  %3208 = vmatprep.subr.bf16.mxu0 %v3207_v56  ;;  %v1261_v54 = vld [vmem:[%s4443_s5 + $0x1dc0] sm:$0xff]  ;;  %v1308_v49 = vld [vmem:[%s4443_s5 + $0x1f38] sm:$0xff]  ;;  %v3757_v51 = vpack.c.bf16 %v1299_v44, %v1295_v42  ;;  %v1331_v30 = vld [vmem:[%s4443_s5 + $0x1ff0] sm:$0xff] }
 0x268   : > { %3720 = vmatprep.subr.bf16.mxu1 %v3719_v60  ;;  %v1265_v56 = vld [vmem:[%s4443_s5 + $0x1de0] sm:$0xff]  ;;  %v1270_v60 = vld [vmem:[%s4443_s5 + $0x1e08] sm:$0xff] }
 0x269   : > { %v3229_v26 = vpack.c.bf16 %v1265_v56, %v1261_v54  ;;  %v1303_v54 = vld [vmem:[%s4443_s5 + $0x1f10] sm:$0xff]  ;;  %v3759_v56 = vpack.c.bf16 %v1308_v49, %v1304_v48 }
 0x26a   : > { %3210 = vmatpush1.bf16.msra.mxu0 %v3209_v3  ;;  %v3231_v3 = vpack.c.bf16 %v1274_v62, %v1270_v60  ;;  %v1312_v60 = vld [vmem:[%s4443_s5 + $0x1f58] sm:$0xff]  ;;  %v3761_v1 = vpack.c.bf16 %v1307_v57, %v1303_v54 }
 0x26b   : > { %3722 = vmatpush1.bf16.msra.mxu1 %v3721_v4  ;;  %3212 = vmatprep.subr.bf16.mxu0 %v3211_v5  ;;  %v1269_v4 = vld [vmem:[%s4443_s5 + $0x1e00] sm:$0xff]  ;;  %v1316_v62 = vld [vmem:[%s4443_s5 + $0x1f78] sm:$0xff] }
 0x26c   : > { %3724 = vmatprep.subr.bf16.mxu1 %v3723_v9  ;;  %v1273_v5 = vld [vmem:[%s4443_s5 + $0x1e20] sm:$0xff]  ;;  %v1278_v9 = vld [vmem:[%s4443_s5 + $0x1e48] sm:$0xff] }
 0x26d   : > { %v3233_v13 = vpack.c.bf16 %v1273_v5, %v1269_v4  ;;  %v1311_v4 = vld [vmem:[%s4443_s5 + $0x1f50] sm:$0xff]  ;;  %v3763_v5 = vpack.c.bf16 %v1316_v62, %v1312_v60 }
 0x26e   : > { %3214 = vmatpush1.bf16.msra.mxu0 %v3213_v14  ;;  %v3235_v14 = vpack.c.bf16 %v1282_v10, %v1278_v9  ;;  %v1320_v9 = vld [vmem:[%s4443_s5 + $0x1f98] sm:$0xff]  ;;  %v3765_v12 = vpack.c.bf16 %v1315_v45, %v1311_v4 }
 0x26f   : > { %3726 = vmatpush1.bf16.msra.mxu1 %v3725_v15  ;;  %3216 = vmatprep.subr.bf16.mxu0 %v3215_v16  ;;  %v1277_v15 = vld [vmem:[%s4443_s5 + $0x1e40] sm:$0xff]  ;;  %v1324_v10 = vld [vmem:[%s4443_s5 + $0x1fb8] sm:$0xff] }
 0x270   : > { %3728 = vmatprep.subr.bf16.mxu1 %v3727_v21  ;;  %v1281_v16 = vld [vmem:[%s4443_s5 + $0x1e60] sm:$0xff]  ;;  %v1286_v21 = vld [vmem:[%s4443_s5 + $0x1e88] sm:$0xff] }
 0x271   : > { %v3237_v24 = vpack.c.bf16 %v1281_v16, %v1277_v15  ;;  %v1319_v15 = vld [vmem:[%s4443_s5 + $0x1f90] sm:$0xff]  ;;  %v3767_v16 = vpack.c.bf16 %v1324_v10, %v1320_v9 }
 0x272   : > { %3218 = vmatpush1.bf16.msra.mxu0 %v3217_v27  ;;  %v3239_v27 = vpack.c.bf16 %v1290_v22, %v1286_v21  ;;  %v1328_v21 = vld [vmem:[%s4443_s5 + $0x1fd8] sm:$0xff]  ;;  %v3769_v61 = vpack.c.bf16 %v1323_v17, %v1319_v15 }
 0x273   : > { %3730 = vmatpush1.bf16.msra.mxu1 %v3729_v28  ;;  %3220 = vmatprep.subr.bf16.mxu0 %v3219_v29  ;;  %v1285_v28 = vld [vmem:[%s4443_s5 + $0x1e80] sm:$0xff]  ;;  %v1332_v22 = vld [vmem:[%s4443_s5 + $0x1ff8] sm:$0xff] }
 0x274   : > { %3732 = vmatprep.subr.bf16.mxu1 %v3731_v33  ;;  %v1289_v29 = vld [vmem:[%s4443_s5 + $0x1ea0] sm:$0xff]  ;;  %v1294_v33 = vld [vmem:[%s4443_s5 + $0x1ec8] sm:$0xff] }
 0x275   : > { %v3241_v36 = vpack.c.bf16 %v1289_v29, %v1285_v28  ;;  %v3771_v28 = vpack.c.bf16 %v1332_v22, %v1328_v21  ;;  %v1327_v29 = vld [vmem:[%s4443_s5 + $0x1fd0] sm:$0xff] }
 0x276   : > { %3222 = vmatpush1.bf16.msra.mxu0 %v3221_v39  ;;  %v3243_v39 = vpack.c.bf16 %v1298_v34, %v1294_v33  ;;  %v3773_v0 = vpack.c.bf16 %v1331_v30, %v1327_v29 }
 0x277   : > { %3734 = vmatpush1.bf16.msra.mxu1 %v3733_v40  ;;  %3224 = vmatprep.subr.bf16.mxu0 %v3223_v41  ;;  %v1293_v40 = vld [vmem:[%s4443_s5 + $0x1ec0] sm:$0xff] }
 0x278   : > { %3736 = vmatprep.subr.bf16.mxu1 %v3735_v46  ;;  %v1297_v41 = vld [vmem:[%s4443_s5 + $0x1ee0] sm:$0xff]  ;;  %v1302_v46 = vld [vmem:[%s4443_s5 + $0x1f08] sm:$0xff] }
 0x279   : > { %v3245_v50 = vpack.c.bf16 %v1297_v41, %v1293_v40  ;;  %v308_v41 = vld [vmem:[%s4458_s4] sm:$0xff] }
 0x27a   : > { %3226 = vmatpush1.bf16.msra.mxu0 %v3225_v52  ;;  %v3247_v52 = vpack.c.bf16 %v1306_v47, %v1302_v46 }
 0x27b   : > { %3738 = vmatpush1.bf16.msra.mxu1 %v3737_v18  ;;  %3228 = vmatprep.subr.bf16.mxu0 %v3227_v53  ;;  %v1301_v18 = vld [vmem:[%s4443_s5 + $0x1f00] sm:$0xff] }
 0x27c   : > { %3740 = vmatprep.subr.bf16.mxu1 %v3739_v58  ;;  %v1305_v53 = vld [vmem:[%s4443_s5 + $0x1f20] sm:$0xff]  ;;  %v1310_v58 = vld [vmem:[%s4443_s5 + $0x1f48] sm:$0xff] }
 0x27d   : > { %v3249_v63 = vpack.c.bf16 %v1305_v53, %v1301_v18 }
 0x27e   : > { %3230 = vmatpush1.bf16.msra.mxu0 %v3229_v26  ;;  %v3251_v26 = vpack.c.bf16 %v1314_v59, %v1310_v58 }
 0x27f   : > { %3742 = vmatpush1.bf16.msra.mxu1 %v3741_v2  ;;  %3232 = vmatprep.subr.bf16.mxu0 %v3231_v3  ;;  %v1309_v2 = vld [vmem:[%s4443_s5 + $0x1f40] sm:$0xff] }
 0x280   : > { %3744 = vmatprep.subr.bf16.mxu1 %v3743_v6  ;;  %v1313_v3 = vld [vmem:[%s4443_s5 + $0x1f60] sm:$0xff]  ;;  %v1318_v6 = vld [vmem:[%s4443_s5 + $0x1f88] sm:$0xff] }
 0x281   : > { %v3253_v11 = vpack.c.bf16 %v1313_v3, %v1309_v2 }
 0x282   : > { %3234 = vmatpush1.bf16.msra.mxu0 %v3233_v13  ;;  %v3255_v13 = vpack.c.bf16 %v1322_v7, %v1318_v6 }
 0x283   : > { %3746 = vmatpush1.bf16.msra.mxu1 %v3745_v43  ;;  %3236 = vmatprep.subr.bf16.mxu0 %v3235_v14  ;;  %v1317_v43 = vld [vmem:[%s4443_s5 + $0x1f80] sm:$0xff] }
 0x284   : > { %3748 = vmatprep.subr.bf16.mxu1 %v3747_v19  ;;  %v1321_v14 = vld [vmem:[%s4443_s5 + $0x1fa0] sm:$0xff]  ;;  %v1326_v19 = vld [vmem:[%s4443_s5 + $0x1fc8] sm:$0xff] }
 0x285   : > { %v3257_v23 = vpack.c.bf16 %v1321_v14, %v1317_v43 }
 0x286   : > { %3238 = vmatpush1.bf16.msra.mxu0 %v3237_v24  ;;  %v3259_v24 = vpack.c.bf16 %v1330_v20, %v1326_v19 }
 0x287   : > { %3750 = vmatpush1.bf16.msra.mxu1 %v3749_v25  ;;  %3240 = vmatprep.subr.bf16.mxu0 %v3239_v27  ;;  %v1325_v25 = vld [vmem:[%s4443_s5 + $0x1fc0] sm:$0xff] }
 0x288   : > { %3752 = vmatprep.subr.bf16.mxu1 %v3751_v32  ;;  %v1329_v27 = vld [vmem:[%s4443_s5 + $0x1fe0] sm:$0xff] }
 0x289   : > { %v3261_v32 = vpack.c.bf16 %v1329_v27, %v1325_v25 }
 0x28a   : > { %3242 = vmatpush1.bf16.msra.mxu0 %v3241_v36 }
 0x28b   : > { %3754 = vmatpush1.bf16.msra.mxu1 %v3753_v38  ;;  %3244 = vmatprep.subr.bf16.mxu0 %v3243_v39 }
 0x28c   : > { %3756 = vmatprep.subr.bf16.mxu1 %v3755_v8 }
 0x28e   : > { %3246 = vmatpush1.bf16.msra.mxu0 %v3245_v50 }
 0x28f   : > { %3758 = vmatpush1.bf16.msra.mxu1 %v3757_v51  ;;  %3248 = vmatprep.subr.bf16.mxu0 %v3247_v52 }
 0x290   : > { %3760 = vmatprep.subr.bf16.mxu1 %v3759_v56 }
 0x292   : > { %3250 = vmatpush1.bf16.msra.mxu0 %v3249_v63 }
 0x293   : > { %3762 = vmatpush1.bf16.msra.mxu1 %v3761_v1  ;;  %3252 = vmatprep.subr.bf16.mxu0 %v3251_v26 }
 0x294   : > { %3764 = vmatprep.subr.bf16.mxu1 %v3763_v5 }
 0x296   : > { %3254 = vmatpush1.bf16.msra.mxu0 %v3253_v11 }
 0x297   : > { %3766 = vmatpush1.bf16.msra.mxu1 %v3765_v12  ;;  %3256 = vmatprep.subr.bf16.mxu0 %v3255_v13 }
 0x298   : > { %3768 = vmatprep.subr.bf16.mxu1 %v3767_v16 }
 0x29a   : > { %3258 = vmatpush1.bf16.msra.mxu0 %v3257_v23 }
 0x29b   : > { %3770 = vmatpush1.bf16.msra.mxu1 %v3769_v61  ;;  %3260 = vmatprep.subr.bf16.mxu0 %v3259_v24 }
 0x29c   : > { %3772 = vmatprep.subr.bf16.mxu1 %v3771_v28 }
 0x29e   : > { %3262 = vmatpush1.bf16.msra.mxu0 %v3261_v32 }
 0x29f   : > { %3774 = vmatpush1.bf16.msra.mxu1 %v3773_v0 }
 0x2a1   : > { %1983 = vmatmul.mubr.f32.vlgmr.msra.gmra.mrb[0].mxu0 %v5450_v37 }
 0x2a2   : > { %2551 = vmatmul.mubr.f32.vlgmr.msra.gmra.mrb[0].mxu1 %v5450_v37 }
 0x374   : > { %v1984_v33 = vpop.f32.mrb[0].mxu0 }
 0x375   : > { %v2552_v34 = vpop.f32.mrb[0].mxu1  ;;  %v1986_v55 = vpop.f32.mrb[1].mxu0 }
 0x376   : > { %v2561_v35 = vcombine.low %v1984_v33, %v1986_v55  ;;  %v2554_v36 = vpop.f32.mrb[1].mxu1 }
 0x377   : > { %v2562_v38 = vcombine.low %v2552_v34, %v2554_v36 }
 0x378   : > { %v2569_v39 = vrot.slane %v2561_v35, %v4558_v31 }
 0x379   : > { %v2576_v40 = vrot.slane %v2562_v38, %v4558_v31  ;;  %2584 = sbr.rel (%p2742_p7) target bundleno = 915 (0x393), region = 52 }
 0x37b   : > { %v2577_v42 = vcombine.low %v2569_v39, %v2576_v40 }
 0x37d   : > { %v2579_v8 = vadd.f32 %v2577_v42, %v308_v41 }
 0x37f   : > { %2580 = vst [vmem:[%s4458_s4] sm:$0xff] %v2579_v8 }
 0x386   : > { %v2585_v37 = vld [vmem:[%s4458_s4] sm:$0xff] }
 0x387   : > { %3930 = vtanh.f32 %v2585_v37 }
 0x391   : > { %v3931_v44 = vpop.eup %3930 }
 0x392   : > { %2587 = vst [vmem:[%s4458_s4] sm:$0xff] %v3931_v44 }
 0x393 PF: > { %s2750_s27 = sshll.u32 %s4138_s19, 7  ;;  %s5684_s30 = sld [smem:[#allocation17_spill]] }
 0x394   : > { %s2603_s6 = sshll.u32 %s4458_s4, 4  ;;  %s2589_s18 = scalar_lea.sflag [#allocation4], %s4450_s25  ;;  %s2604_s6 = int_to_ptr.vmem [resolvable:$true] %s2603_s6 }
 0x395   : > { %s4020_s5 = scalar_lea.vmem %s2604_s6, 128  ;;  %s4160_s26 = smov [#allocation8]  }
 0x396   : > { %p4021_p4 = scmp.ne.s32.totalorder %s2604_s6, %s4020_s5  ;;  %s4024_s23 = sshll.u32 %s4160_s26, 4  ;;  %s4025_s23 = int_to_ptr.vmem [resolvable:$false] %s4024_s23 }
 0x397   : > { %s4026_s24 = scalar_lea.vmem %s4025_s23, 256  ;;  %p4027_p10 = scmp.lt.s32.totalorder %s2604_s6, %s4025_s23 }
 0x398   : > { %p4022_p12 = pnand %p4021_p4, %p4389_p5  ;;  %p4028_p13 = scmp.lt.s32.totalorder %s4026_s24, %s4020_s5 }
 0x399   : > { %s5587_s29 = scalar_lea.hbm %s5684_s30, %s2750_s27 }
 0x39a   : > { %p4023_p3 = pneg %p4022_p12  ;;  %p4029_p0 = por %p4028_p13, %p4027_p10 }
 0x39c   : > { %p4030_p8 = pnand %p4029_p0, %p4023_p3 }
 0x39e   : > { %4033 = shalt.err (!%p4030_p8)
}
 0x39f   : > { %s4034_s19 = scalar_lea.hbm %s5587_s29, 128  ;;  %s4038_s3 = scalar_lea.hbm %s5684_s30, 256 }
 0x3a0   : > { %p4035_p11 = scmp.ne.s32.totalorder %s5587_s29, %s4034_s19  ;;  %p4039_p6 = scmp.lt.u32.totalorder %s5587_s29, %s5684_s30 }
 0x3a1   : > { %p4040_p1 = scmp.lt.u32.totalorder %s4038_s3, %s4034_s19  ;;  %p4042_p4 = scmp.lt.u32.totalorder %s4034_s19, %s5587_s29 }
 0x3a2   : > { %p4036_p2 = pnand %p4035_p11, %p4389_p5 }
 0x3a3   : > { %p4041_p7 = por %p4040_p1, %p4039_p6 }
 0x3a4   : > { %p4037_p9 = pneg %p4036_p2 }
 0x3a5   : > { %p4043_p12 = por %p4042_p4, %p4041_p7 }
 0x3a7   : > { %p4044_p3 = pnand %p4043_p12, %p4037_p9 }
 0x3a9   : > { %4047 = shalt.err (!%p4044_p3)
}
 0x3aa   : > { %3811 = dma.vmem_to_hbm [thread:$0]  (%p4389_p5), %s2604_s6, 128, %s5587_s29, %s2589_s18  }
 0x3ab PF: > { %p3831_p10 = scmp.ge.s32.totalorder %s4150_s22, 2  ;;  %s2615_s28 = sand.u32 1, %s4110_s12  }
 0x3ac   : > { %p5685_p13 = scmp.ne.s32.totalorder %s5669_s9, 0  ;;  %s2616_s27 = scalar_lea.sflag [#allocation4], %s2615_s28 }
 0x3ae   : > { %p3825_p0 = pnand %p3831_p10, %p5685_p13 }
 0x3b0   : > { %4105 = dma.done.wait (!%p3825_p0), %s2616_s27, 128  }
 0x3b1   : > { %4107 = vsyncadd (!%p3825_p0), %s2616_s27, 4294967168  ;;  %s20_s22 = sadd.s32 1, %s4150_s22   ;;  %s5686_s18 = sld [smem:[#allocation13_spill]] }
 0x3b2   : > { %p17_p8 = scmp.ge.s32.totalorder %s20_s22, 6   ;;  %s5687_s20 = sld [smem:[#allocation14_spill]] }
 0x3b3   : > { %s5688_s1 = sld [smem:[#allocation15_spill]]  ;;  %s5689_s12 = smov %s4114_s13 }
 0x3b4   : > { %s5690_s13 = smov %s4118_s14  ;;  %s5691_s14 = smov %s4357_s11 }
 0x3b5   : > { %s5692_s15 = smov %s4126_s16  ;;  %s5693_s16 = smov %s4130_s17 }
 0x3b6   : > { %s5694_s17 = smov %s4266_s10  ;;  %s5695_s19 = smov %s4146_s21 }
 0x3b7   :  { %19 = sbr.rel (!%p17_p8) target bundleno = 13 (0xd), region = 102 }
 0x3b9   : > { %s5696_s21 = smov %s5688_s1 }
 0x3be   :  { %2621 = vsyncpa [#allocation3], 1 }
 0x3bf   :  { %2623 = vsyncpa [#allocation3 + $0x1], 1 }
 0x3c0   :  { %2624 = vsyncpa [#allocation6], 1 }
 0x3c1   :  { %2626 = vsyncpa [#allocation6 + $0x1], 1 }
 0x3c2   :  { %2627 = vsyncpa [#allocation4], 1 }
 0x3c3   :  { %2629 = vsyncpa [#allocation4 + $0x1], 1 }

</bundles_post_ra>
